<compile_context>
chip_gen: v7x
topology: tpu7x:2x2x1
jax: 0.10.0
libtpu: 0.0.40
codegen_flags: <defaults>
</compile_context>

<pallas_src>
import numpy as np

import jax
import jax.numpy as jnp
from jax.experimental import pallas as pl
from jax.experimental.pallas import tpu as pltpu


# ---------------------------------------------------------------------------
# Fused kernel
# ---------------------------------------------------------------------------

def _sigmoid(a):
    # sigmoid(x) = 0.5*(1 + tanh(x/2)); tanh runs on the EUP slot, f32 math.
    return 0.5 * jnp.tanh(0.5 * a) + 0.5


def _lenet_kernel(x_ref,
                  r1_ref, b1_ref, e1e_ref, e1o_ref,
                  r2_ref, b2_ref, e2e_ref, e2o_ref,
                  r3_ref, fb1_ref, w2t_ref, fb2_ref, w3p_ref, fb3_ref,
                  out_ref):
    f32 = jnp.float32
    bf16 = jnp.bfloat16
    tb = x_ref.shape[0]                                       # samples per step

    def dot(a, w_ref):
        # bf16 x bf16 MXU dot, f32 accumulation.
        return jnp.dot(a.astype(bf16), w_ref[...], preferred_element_type=f32)

    x = x_ref[...]                                            # (TB, 28, 28) f32

    # ---- conv1 (5x5, 1->6) + sigmoid: one fused banded matmul for all TB.
    # operand rows = (sample, out row y); K index = kernel-row i * 28 + in col.
    a1 = jnp.concatenate([x[:, i:i + 24, :] for i in range(5)], axis=-1)
    a1 = a1.reshape(tb * 24, 5 * 28)                          # (TB*24, 140)
    h1 = _sigmoid(dot(a1, r1_ref) + b1_ref[...])              # (TB*24, 144) [b*24+y, c*24+x]

    # ---- maxpool 2x2: columns via 0/1 selector matmuls (lane-dense),
    # rows via a sublane pair-max on the VPU (no tiny MXU pushes).
    cp1 = jnp.maximum(dot(h1, e1e_ref), dot(h1, e1o_ref))     # (TB*24, 72)
    p1 = cp1.reshape(tb, 12, 2, 72).max(axis=2)               # (TB, 12, 72) [b, y, c*12+x]

    # ---- conv2 (5x5, 6->16) + sigmoid, same fused banded-matmul trick.
    a2 = jnp.concatenate([p1[:, i:i + 8, :] for i in range(5)], axis=-1)
    a2 = a2.reshape(tb * 8, 5 * 72)                           # (TB*8, 360)
    h2 = _sigmoid(dot(a2, r2_ref) + b2_ref[...])              # (TB*8, 128) [b*8+y, co*8+x]

    cp2 = jnp.maximum(dot(h2, e2e_ref), dot(h2, e2o_ref))     # (TB*8, 64)
    p2 = cp2.reshape(tb, 4, 2, 64).max(axis=2)                # (TB, 4, 64) [b, y, co*4+x]

    # ---- fc stack: one (TB, K) x (K, N) dot per layer.
    f = p2.reshape(tb, 4 * 64)          # flatten order matches r3f packing
    z1 = _sigmoid(dot(f, r3_ref) + fb1_ref[...])              # (TB, 120)
    z2 = _sigmoid(dot(z1, w2t_ref) + fb2_ref[...])            # (TB, 84)
    z3 = dot(z2, w3p_ref) + fb3_ref[...]                      # (TB, 128); cols >= 10 are 0

    out_ref[...] = z3.astype(out_ref.dtype)


# ---------------------------------------------------------------------------
# One-time weight preparation (outside jit): fused banded conv matmuls,
# column-pool selectors, transposed FC weights, padded final layer — all
# MXU operands packed in bf16, biases kept in f32.
# ---------------------------------------------------------------------------

def prepare_params(params):
    w1 = np.asarray(params["cw1"], np.float32)    # (6, 1, 5, 5)
    b1 = np.asarray(params["cb1"], np.float32)    # (6,)
    w2 = np.asarray(params["cw2"], np.float32)    # (16, 6, 5, 5)
    b2 = np.asarray(params["cb2"], np.float32)    # (16,)
    fw1 = np.asarray(params["fw1"], np.float32)   # (120, 256)
    fb1 = np.asarray(params["fb1"], np.float32)
    fw2 = np.asarray(params["fw2"], np.float32)   # (84, 120)
    fb2 = np.asarray(params["fb2"], np.float32)
    fw3 = np.asarray(params["fw3"], np.float32)   # (10, 84)
    fb3 = np.asarray(params["fb3"], np.float32)

    # conv1 fused banded weight: r1f[i*28 + xin, c*24 + xo] = w1[c, 0, i, xin - xo]
    r1 = np.zeros((5, 28, 6 * 24), np.float32)
    for c in range(6):
        for i in range(5):
            for xo in range(24):
                for j in range(5):
                    r1[i, xo + j, c * 24 + xo] = w1[c, 0, i, j]
    r1f = r1.reshape(5 * 28, 6 * 24)

    # conv2 fused banded weight: r2f[i*72 + c*12 + xin, co*8 + xo] = w2[co, c, i, xin - xo]
    r2 = np.zeros((5, 6 * 12, 16 * 8), np.float32)
    for co in range(16):
        for c in range(6):
            for i in range(5):
                for xo in range(8):
                    for j in range(5):
                        r2[i, c * 12 + xo + j, co * 8 + xo] = w2[co, c, i, j]
    r2f = r2.reshape(5 * 72, 16 * 8)

    # 2x2 max-pool column (lane) selectors; the row half is done in-kernel
    # with a sublane pair-max, so no row selectors are needed any more.
    e1e = np.zeros((6 * 24, 6 * 12), np.float32)
    e1o = np.zeros((6 * 24, 6 * 12), np.float32)
    for c in range(6):
        for xp in range(12):
            e1e[c * 24 + 2 * xp, c * 12 + xp] = 1.0
            e1o[c * 24 + 2 * xp + 1, c * 12 + xp] = 1.0
    e2e = np.zeros((16 * 8, 16 * 4), np.float32)
    e2o = np.zeros((16 * 8, 16 * 4), np.float32)
    for co in range(16):
        for xp in range(4):
            e2e[co * 8 + 2 * xp, co * 4 + xp] = 1.0
            e2o[co * 8 + 2 * xp + 1, co * 4 + xp] = 1.0

    # fc1 weight re-ordered so the kernel-side flatten (y*64 + co*4 + x)
    # matches PyTorch's view(B, -1) order (co*16 + y*4 + x), as one (256,120).
    r3f = np.transpose(fw1.reshape(120, 16, 4, 4), (2, 1, 3, 0)).reshape(256, 120)

    # final layer padded to 128 lanes for an unmasked lane-dense output store.
    w3p = np.zeros((84, 128), np.float32)
    w3p[:, :10] = fw3.T
    fb3p = np.zeros((1, 128), np.float32)
    fb3p[0, :10] = fb3

    bf = jnp.bfloat16
    f32 = jnp.float32
    return dict(
        r1f=jnp.asarray(r1f, bf), b1r=jnp.asarray(np.repeat(b1, 24)[None, :], f32),
        e1e=jnp.asarray(e1e, bf), e1o=jnp.asarray(e1o, bf),
        r2f=jnp.asarray(r2f, bf), b2r=jnp.asarray(np.repeat(b2, 8)[None, :], f32),
        e2e=jnp.asarray(e2e, bf), e2o=jnp.asarray(e2o, bf),
        r3f=jnp.asarray(r3f, bf), fb1r=jnp.asarray(fb1[None, :], f32),
        w2t=jnp.asarray(np.ascontiguousarray(fw2.T), bf),
        fb2r=jnp.asarray(fb2[None, :], f32),
        w3p=jnp.asarray(w3p, bf), fb3r=jnp.asarray(fb3p, f32),
    )


_WEIGHT_ORDER = ("r1f", "b1r", "e1e", "e1o",
                 "r2f", "b2r", "e2e", "e2o",
                 "r3f", "fb1r", "w2t", "fb2r", "w3p", "fb3r")


def _replicated_spec(shape):
    nd = len(shape)
    return pl.BlockSpec(tuple(shape), lambda *_, _nd=nd: (0,) * _nd)


# ---------------------------------------------------------------------------
# Forward wrapper: one pallas_call, grid over batch blocks of TB samples.
# ---------------------------------------------------------------------------

def lenet_forward(x, prep, tb=8):
    b, c, h, w = x.shape
    assert (c, h, w) == (1, 28, 28), (c, h, w)
    assert tb % 8 == 0, tb
    bp = ((b + tb - 1) // tb) * tb
    x3 = x.reshape(b, 28, 28).astype(jnp.float32)
    if bp != b:
        x3 = jnp.concatenate(
            [x3, jnp.zeros((bp - b, 28, 28), jnp.float32)], axis=0)

    weights = [prep[k] for k in _WEIGHT_ORDER]
    in_specs = [pl.BlockSpec((tb, 28, 28), lambda i: (i, 0, 0))]
    in_specs += [_replicated_spec(wt.shape) for wt in weights]

    out = pl.pallas_call(
        _lenet_kernel,
        grid=(bp // tb,),
        in_specs=in_specs,
        out_specs=pl.BlockSpec((tb, 128), lambda i: (i, 0)),
        out_shape=jax.ShapeDtypeStruct((bp, 128), jnp.float32),
        compiler_params=pltpu.CompilerParams(
            dimension_semantics=("parallel",)),
    )(x3, *weights)
    return out[:b, :10]


# ---------------------------------------------------------------------------
# Plain-JAX reference (for correctness check) and parameter init.
# ---------------------------------------------------------------------------

def lenet_reference(x, params):
    dn = ("NCHW", "OIHW", "NCHW")
    hi = jax.lax.Precision.HIGHEST
    h = jax.lax.conv_general_dilated(x, params["cw1"], (1, 1), "VALID",
                                     dimension_numbers=dn, precision=hi)
    h = jax.nn.sigmoid(h + params["cb1"][None, :, None, None])
    h = jax.lax.reduce_window(h, -jnp.inf, jax.lax.max,
                              (1, 1, 2, 2), (1, 1, 2, 2), "VALID")
    h = jax.lax.conv_general_dilated(h, params["cw2"], (1, 1), "VALID",
                                     dimension_numbers=dn, precision=hi)
    h = jax.nn.sigmoid(h + params["cb2"][None, :, None, None])
    h = jax.lax.reduce_window(h, -jnp.inf, jax.lax.max,
                              (1, 1, 2, 2), (1, 1, 2, 2), "VALID")
    f = h.reshape(x.shape[0], -1)
    z = jax.nn.sigmoid(jnp.dot(f, params["fw1"].T, precision=hi) + params["fb1"])
    z = jax.nn.sigmoid(jnp.dot(z, params["fw2"].T, precision=hi) + params["fb2"])
    return jnp.dot(z, params["fw3"].T, precision=hi) + params["fb3"]


def init_params(key):
    ks = jax.random.split(key, 10)
    s = 0.1
    return {
        "cw1": s * jax.random.normal(ks[0], (6, 1, 5, 5), jnp.float32),
        "cb1": s * jax.random.normal(ks[1], (6,), jnp.float32),
        "cw2": s * jax.random.normal(ks[2], (16, 6, 5, 5), jnp.float32),
        "cb2": s * jax.random.normal(ks[3], (16,), jnp.float32),
        "fw1": s * jax.random.normal(ks[4], (120, 16 * 4 * 4), jnp.float32),
        "fb1": s * jax.random.normal(ks[5], (120,), jnp.float32),
        "fw2": s * jax.random.normal(ks[6], (84, 120), jnp.float32),
        "fb2": s * jax.random.normal(ks[7], (84,), jnp.float32),
        "fw3": s * jax.random.normal(ks[8], (10, 84), jnp.float32),
        "fb3": s * jax.random.normal(ks[9], (10,), jnp.float32),
    }


if __name__ == "__main__":
    key = jax.random.PRNGKey(0)
    k_param, k_x = jax.random.split(key)
    params = init_params(k_param)
    prep = prepare_params(params)          # one-time weight packing, outside jit

    B, TB = 16, 8                          # 2 batch blocks -> both v7x TCs busy
    x = jax.random.normal(k_x, (B, 1, 28, 28), jnp.float32)

    fwd = jax.jit(lenet_forward, static_argnames=("tb",))
    out = jax.block_until_ready(fwd(x, prep, tb=TB))
    assert out.shape == (B, 10), out.shape

    ref = jax.block_until_ready(lenet_reference(x, params))
    # bf16 MXU operands with f32 accumulation -> loosened but meaningful bound.
    np.testing.assert_allclose(np.asarray(out), np.asarray(ref),
                               atol=2e-2, rtol=2e-2)
    print("KERNEL_OK")
</pallas_src>

<mosaic_0001>
module attributes {stable_mosaic.version = 11 : i64} {
  func.func @_lenet_kernel(%arg0: i32, %arg1: memref<8x28x28xf32, #tpu.memory_space<vmem>>, %arg2: memref<140x144xbf16, #tpu.memory_space<vmem>>, %arg3: memref<1x144xf32, #tpu.memory_space<vmem>>, %arg4: memref<144x72xbf16, #tpu.memory_space<vmem>>, %arg5: memref<144x72xbf16, #tpu.memory_space<vmem>>, %arg6: memref<360x128xbf16, #tpu.memory_space<vmem>>, %arg7: memref<1x128xf32, #tpu.memory_space<vmem>>, %arg8: memref<128x64xbf16, #tpu.memory_space<vmem>>, %arg9: memref<128x64xbf16, #tpu.memory_space<vmem>>, %arg10: memref<256x120xbf16, #tpu.memory_space<vmem>>, %arg11: memref<1x120xf32, #tpu.memory_space<vmem>>, %arg12: memref<120x84xbf16, #tpu.memory_space<vmem>>, %arg13: memref<1x84xf32, #tpu.memory_space<vmem>>, %arg14: memref<84x128xbf16, #tpu.memory_space<vmem>>, %arg15: memref<1x128xf32, #tpu.memory_space<vmem>>, %arg16: memref<8x128xf32, #tpu.memory_space<vmem>>) attributes {dimension_semantics = [#tpu.dimension_semantics<parallel>], iteration_bounds = array<i64: 2>, scalar_prefetch = 0 : i64, scratch_operands = 0 : i64, tpu.core_type = #tpu.core_type<tc>, window_params = [{transform_indices = @transform_0, window_bounds = array<i64: 8, 28, 28>}, {pipeline_mode = #tpu.pipeline_mode<synchronous>, transform_indices = @transform_1, window_bounds = array<i64: 140, 144>}, {pipeline_mode = #tpu.pipeline_mode<synchronous>, transform_indices = @transform_2, window_bounds = array<i64: 1, 144>}, {pipeline_mode = #tpu.pipeline_mode<synchronous>, transform_indices = @transform_3, window_bounds = array<i64: 144, 72>}, {pipeline_mode = #tpu.pipeline_mode<synchronous>, transform_indices = @transform_4, window_bounds = array<i64: 144, 72>}, {pipeline_mode = #tpu.pipeline_mode<synchronous>, transform_indices = @transform_5, window_bounds = array<i64: 360, 128>}, {pipeline_mode = #tpu.pipeline_mode<synchronous>, transform_indices = @transform_6, window_bounds = array<i64: 1, 128>}, {pipeline_mode = #tpu.pipeline_mode<synchronous>, transform_indices = @transform_7, window_bounds = array<i64: 128, 64>}, {pipeline_mode = #tpu.pipeline_mode<synchronous>, transform_indices = @transform_8, window_bounds = array<i64: 128, 64>}, {pipeline_mode = #tpu.pipeline_mode<synchronous>, transform_indices = @transform_9, window_bounds = array<i64: 256, 120>}, {pipeline_mode = #tpu.pipeline_mode<synchronous>, transform_indices = @transform_10, window_bounds = array<i64: 1, 120>}, {pipeline_mode = #tpu.pipeline_mode<synchronous>, transform_indices = @transform_11, window_bounds = array<i64: 120, 84>}, {pipeline_mode = #tpu.pipeline_mode<synchronous>, transform_indices = @transform_12, window_bounds = array<i64: 1, 84>}, {pipeline_mode = #tpu.pipeline_mode<synchronous>, transform_indices = @transform_13, window_bounds = array<i64: 84, 128>}, {pipeline_mode = #tpu.pipeline_mode<synchronous>, transform_indices = @transform_14, window_bounds = array<i64: 1, 128>}, {transform_indices = @transform_15, window_bounds = array<i64: 8, 128>}]} {
    %c0 = arith.constant 0 : index
    %c0_0 = arith.constant 0 : index
    %c0_1 = arith.constant 0 : index
    %0 = vector.load %arg1[%c0, %c0_0, %c0_1] : memref<8x28x28xf32, #tpu.memory_space<vmem>>, vector<8x28x28xf32>
    %1 = vector.extract_strided_slice %0 {offsets = [0, 0, 0], sizes = [8, 24, 28], strides = [1, 1, 1]} : vector<8x28x28xf32> to vector<8x24x28xf32>
    %2 = vector.extract_strided_slice %0 {offsets = [0, 1, 0], sizes = [8, 24, 28], strides = [1, 1, 1]} : vector<8x28x28xf32> to vector<8x24x28xf32>
    %3 = vector.extract_strided_slice %0 {offsets = [0, 2, 0], sizes = [8, 24, 28], strides = [1, 1, 1]} : vector<8x28x28xf32> to vector<8x24x28xf32>
    %4 = vector.extract_strided_slice %0 {offsets = [0, 3, 0], sizes = [8, 24, 28], strides = [1, 1, 1]} : vector<8x28x28xf32> to vector<8x24x28xf32>
    %5 = vector.extract_strided_slice %0 {offsets = [0, 4, 0], sizes = [8, 24, 28], strides = [1, 1, 1]} : vector<8x28x28xf32> to vector<8x24x28xf32>
    %6 = tpu.concatenate %1, %2, %3, %4, %5 in 2 : vector<8x24x28xf32>, vector<8x24x28xf32>, vector<8x24x28xf32>, vector<8x24x28xf32>, vector<8x24x28xf32> -> vector<8x24x140xf32>
    %7 = vector.shape_cast %6 : vector<8x24x140xf32> to vector<192x140xf32>
    %8 = arith.truncf %7 : vector<192x140xf32> to vector<192x140xbf16>
    %c0_2 = arith.constant 0 : index
    %c0_3 = arith.constant 0 : index
    %9 = vector.load %arg2[%c0_2, %c0_3] : memref<140x144xbf16, #tpu.memory_space<vmem>>, vector<140x144xbf16>
    %cst = arith.constant dense<0.000000e+00> : vector<192x144xf32>
    %10 = tpu.matmul %8, %9, %cst {dimension_numbers = #tpu.dot_dimension_numbers<[1], [0], [0], [1], [0, 0, 1, 1], [], []>} : vector<192x140xbf16>, vector<140x144xbf16>, vector<192x144xf32> -> vector<192x144xf32>
    %c0_4 = arith.constant 0 : index
    %c0_5 = arith.constant 0 : index
    %11 = vector.load %arg3[%c0_4, %c0_5] : memref<1x144xf32, #tpu.memory_space<vmem>>, vector<1x144xf32>
    %12 = vector.broadcast %11 : vector<1x144xf32> to vector<192x144xf32>
    %13 = arith.addf %10, %12 : vector<192x144xf32>
    %cst_6 = arith.constant 5.000000e-01 : f32
    %14 = vector.broadcast %cst_6 : f32 to vector<192x144xf32>
    %15 = arith.mulf %14, %13 : vector<192x144xf32>
    %16 = math.tanh %15 : vector<192x144xf32>
    %cst_7 = arith.constant 5.000000e-01 : f32
    %17 = vector.broadcast %cst_7 : f32 to vector<192x144xf32>
    %18 = arith.mulf %17, %16 : vector<192x144xf32>
    %cst_8 = arith.constant 5.000000e-01 : f32
    %19 = vector.broadcast %cst_8 : f32 to vector<192x144xf32>
    %20 = arith.addf %18, %19 : vector<192x144xf32>
    %21 = arith.truncf %20 : vector<192x144xf32> to vector<192x144xbf16>
    %c0_9 = arith.constant 0 : index
    %c0_10 = arith.constant 0 : index
    %22 = vector.load %arg4[%c0_9, %c0_10] : memref<144x72xbf16, #tpu.memory_space<vmem>>, vector<144x72xbf16>
    %cst_11 = arith.constant dense<0.000000e+00> : vector<192x72xf32>
    %23 = tpu.matmul %21, %22, %cst_11 {dimension_numbers = #tpu.dot_dimension_numbers<[1], [0], [0], [1], [0, 0, 1, 1], [], []>} : vector<192x144xbf16>, vector<144x72xbf16>, vector<192x72xf32> -> vector<192x72xf32>
    %24 = arith.truncf %20 : vector<192x144xf32> to vector<192x144xbf16>
    %c0_12 = arith.constant 0 : index
    %c0_13 = arith.constant 0 : index
    %25 = vector.load %arg5[%c0_12, %c0_13] : memref<144x72xbf16, #tpu.memory_space<vmem>>, vector<144x72xbf16>
    %cst_14 = arith.constant dense<0.000000e+00> : vector<192x72xf32>
    %26 = tpu.matmul %24, %25, %cst_14 {dimension_numbers = #tpu.dot_dimension_numbers<[1], [0], [0], [1], [0, 0, 1, 1], [], []>} : vector<192x144xbf16>, vector<144x72xbf16>, vector<192x72xf32> -> vector<192x72xf32>
    %27 = arith.maximumf %23, %26 : vector<192x72xf32>
    %28 = vector.shape_cast %27 : vector<192x72xf32> to vector<8x12x2x72xf32>
    %cst_15 = arith.constant dense<0xFF800000> : vector<8x12x72xf32>
    %29 = vector.multi_reduction <maximumf>, %28, %cst_15 [2] : vector<8x12x2x72xf32> to vector<8x12x72xf32>
    %30 = vector.extract_strided_slice %29 {offsets = [0, 0, 0], sizes = [8, 8, 72], strides = [1, 1, 1]} : vector<8x12x72xf32> to vector<8x8x72xf32>
    %31 = vector.extract_strided_slice %29 {offsets = [0, 1, 0], sizes = [8, 8, 72], strides = [1, 1, 1]} : vector<8x12x72xf32> to vector<8x8x72xf32>
    %32 = vector.extract_strided_slice %29 {offsets = [0, 2, 0], sizes = [8, 8, 72], strides = [1, 1, 1]} : vector<8x12x72xf32> to vector<8x8x72xf32>
    %33 = vector.extract_strided_slice %29 {offsets = [0, 3, 0], sizes = [8, 8, 72], strides = [1, 1, 1]} : vector<8x12x72xf32> to vector<8x8x72xf32>
    %34 = vector.extract_strided_slice %29 {offsets = [0, 4, 0], sizes = [8, 8, 72], strides = [1, 1, 1]} : vector<8x12x72xf32> to vector<8x8x72xf32>
    %35 = tpu.concatenate %30, %31, %32, %33, %34 in 2 : vector<8x8x72xf32>, vector<8x8x72xf32>, vector<8x8x72xf32>, vector<8x8x72xf32>, vector<8x8x72xf32> -> vector<8x8x360xf32>
    %36 = vector.shape_cast %35 : vector<8x8x360xf32> to vector<64x360xf32>
    %37 = arith.truncf %36 : vector<64x360xf32> to vector<64x360xbf16>
    %c0_16 = arith.constant 0 : index
    %c0_17 = arith.constant 0 : index
    %38 = vector.load %arg6[%c0_16, %c0_17] : memref<360x128xbf16, #tpu.memory_space<vmem>>, vector<360x128xbf16>
    %cst_18 = arith.constant dense<0.000000e+00> : vector<64x128xf32>
    %39 = tpu.matmul %37, %38, %cst_18 {dimension_numbers = #tpu.dot_dimension_numbers<[1], [0], [0], [1], [0, 0, 1, 1], [], []>} : vector<64x360xbf16>, vector<360x128xbf16>, vector<64x128xf32> -> vector<64x128xf32>
    %c0_19 = arith.constant 0 : index
    %c0_20 = arith.constant 0 : index
    %40 = vector.load %arg7[%c0_19, %c0_20] : memref<1x128xf32, #tpu.memory_space<vmem>>, vector<1x128xf32>
    %41 = vector.broadcast %40 : vector<1x128xf32> to vector<64x128xf32>
    %42 = arith.addf %39, %41 : vector<64x128xf32>
    %cst_21 = arith.constant 5.000000e-01 : f32
    %43 = vector.broadcast %cst_21 : f32 to vector<64x128xf32>
    %44 = arith.mulf %43, %42 : vector<64x128xf32>
    %45 = math.tanh %44 : vector<64x128xf32>
    %cst_22 = arith.constant 5.000000e-01 : f32
    %46 = vector.broadcast %cst_22 : f32 to vector<64x128xf32>
    %47 = arith.mulf %46, %45 : vector<64x128xf32>
    %cst_23 = arith.constant 5.000000e-01 : f32
    %48 = vector.broadcast %cst_23 : f32 to vector<64x128xf32>
    %49 = arith.addf %47, %48 : vector<64x128xf32>
    %50 = arith.truncf %49 : vector<64x128xf32> to vector<64x128xbf16>
    %c0_24 = arith.constant 0 : index
    %c0_25 = arith.constant 0 : index
    %51 = vector.load %arg8[%c0_24, %c0_25] : memref<128x64xbf16, #tpu.memory_space<vmem>>, vector<128x64xbf16>
    %cst_26 = arith.constant dense<0.000000e+00> : vector<64x64xf32>
    %52 = tpu.matmul %50, %51, %cst_26 {dimension_numbers = #tpu.dot_dimension_numbers<[1], [0], [0], [1], [0, 0, 1, 1], [], []>} : vector<64x128xbf16>, vector<128x64xbf16>, vector<64x64xf32> -> vector<64x64xf32>
    %53 = arith.truncf %49 : vector<64x128xf32> to vector<64x128xbf16>
    %c0_27 = arith.constant 0 : index
    %c0_28 = arith.constant 0 : index
    %54 = vector.load %arg9[%c0_27, %c0_28] : memref<128x64xbf16, #tpu.memory_space<vmem>>, vector<128x64xbf16>
    %cst_29 = arith.constant dense<0.000000e+00> : vector<64x64xf32>
    %55 = tpu.matmul %53, %54, %cst_29 {dimension_numbers = #tpu.dot_dimension_numbers<[1], [0], [0], [1], [0, 0, 1, 1], [], []>} : vector<64x128xbf16>, vector<128x64xbf16>, vector<64x64xf32> -> vector<64x64xf32>
    %56 = arith.maximumf %52, %55 : vector<64x64xf32>
    %57 = vector.shape_cast %56 : vector<64x64xf32> to vector<8x4x2x64xf32>
    %cst_30 = arith.constant dense<0xFF800000> : vector<8x4x64xf32>
    %58 = vector.multi_reduction <maximumf>, %57, %cst_30 [2] : vector<8x4x2x64xf32> to vector<8x4x64xf32>
    %59 = vector.shape_cast %58 : vector<8x4x64xf32> to vector<8x256xf32>
    %60 = arith.truncf %59 : vector<8x256xf32> to vector<8x256xbf16>
    %c0_31 = arith.constant 0 : index
    %c0_32 = arith.constant 0 : index
    %61 = vector.load %arg10[%c0_31, %c0_32] : memref<256x120xbf16, #tpu.memory_space<vmem>>, vector<256x120xbf16>
    %cst_33 = arith.constant dense<0.000000e+00> : vector<8x120xf32>
    %62 = tpu.matmul %60, %61, %cst_33 {dimension_numbers = #tpu.dot_dimension_numbers<[1], [0], [0], [1], [0, 0, 1, 1], [], []>} : vector<8x256xbf16>, vector<256x120xbf16>, vector<8x120xf32> -> vector<8x120xf32>
    %c0_34 = arith.constant 0 : index
    %c0_35 = arith.constant 0 : index
    %63 = vector.load %arg11[%c0_34, %c0_35] : memref<1x120xf32, #tpu.memory_space<vmem>>, vector<1x120xf32>
    %64 = vector.broadcast %63 : vector<1x120xf32> to vector<8x120xf32>
    %65 = arith.addf %62, %64 : vector<8x120xf32>
    %cst_36 = arith.constant 5.000000e-01 : f32
    %66 = vector.broadcast %cst_36 : f32 to vector<8x120xf32>
    %67 = arith.mulf %66, %65 : vector<8x120xf32>
    %68 = math.tanh %67 : vector<8x120xf32>
    %cst_37 = arith.constant 5.000000e-01 : f32
    %69 = vector.broadcast %cst_37 : f32 to vector<8x120xf32>
    %70 = arith.mulf %69, %68 : vector<8x120xf32>
    %cst_38 = arith.constant 5.000000e-01 : f32
    %71 = vector.broadcast %cst_38 : f32 to vector<8x120xf32>
    %72 = arith.addf %70, %71 : vector<8x120xf32>
    %73 = arith.truncf %72 : vector<8x120xf32> to vector<8x120xbf16>
    %c0_39 = arith.constant 0 : index
    %c0_40 = arith.constant 0 : index
    %74 = vector.load %arg12[%c0_39, %c0_40] : memref<120x84xbf16, #tpu.memory_space<vmem>>, vector<120x84xbf16>
    %cst_41 = arith.constant dense<0.000000e+00> : vector<8x84xf32>
    %75 = tpu.matmul %73, %74, %cst_41 {dimension_numbers = #tpu.dot_dimension_numbers<[1], [0], [0], [1], [0, 0, 1, 1], [], []>} : vector<8x120xbf16>, vector<120x84xbf16>, vector<8x84xf32> -> vector<8x84xf32>
    %c0_42 = arith.constant 0 : index
    %c0_43 = arith.constant 0 : index
    %76 = vector.load %arg13[%c0_42, %c0_43] : memref<1x84xf32, #tpu.memory_space<vmem>>, vector<1x84xf32>
    %77 = vector.broadcast %76 : vector<1x84xf32> to vector<8x84xf32>
    %78 = arith.addf %75, %77 : vector<8x84xf32>
    %cst_44 = arith.constant 5.000000e-01 : f32
    %79 = vector.broadcast %cst_44 : f32 to vector<8x84xf32>
    %80 = arith.mulf %79, %78 : vector<8x84xf32>
    %81 = math.tanh %80 : vector<8x84xf32>
    %cst_45 = arith.constant 5.000000e-01 : f32
    %82 = vector.broadcast %cst_45 : f32 to vector<8x84xf32>
    %83 = arith.mulf %82, %81 : vector<8x84xf32>
    %cst_46 = arith.constant 5.000000e-01 : f32
    %84 = vector.broadcast %cst_46 : f32 to vector<8x84xf32>
    %85 = arith.addf %83, %84 : vector<8x84xf32>
    %86 = arith.truncf %85 : vector<8x84xf32> to vector<8x84xbf16>
    %c0_47 = arith.constant 0 : index
    %c0_48 = arith.constant 0 : index
    %87 = vector.load %arg14[%c0_47, %c0_48] : memref<84x128xbf16, #tpu.memory_space<vmem>>, vector<84x128xbf16>
    %cst_49 = arith.constant dense<0.000000e+00> : vector<8x128xf32>
    %88 = tpu.matmul %86, %87, %cst_49 {dimension_numbers = #tpu.dot_dimension_numbers<[1], [0], [0], [1], [0, 0, 1, 1], [], []>} : vector<8x84xbf16>, vector<84x128xbf16>, vector<8x128xf32> -> vector<8x128xf32>
    %c0_50 = arith.constant 0 : index
    %c0_51 = arith.constant 0 : index
    %89 = vector.load %arg15[%c0_50, %c0_51] : memref<1x128xf32, #tpu.memory_space<vmem>>, vector<1x128xf32>
    %90 = vector.broadcast %89 : vector<1x128xf32> to vector<8x128xf32>
    %91 = arith.addf %88, %90 : vector<8x128xf32>
    %c0_52 = arith.constant 0 : index
    %c0_53 = arith.constant 0 : index
    %92 = vector.load %arg16[%c0_52, %c0_53] : memref<8x128xf32, #tpu.memory_space<vmem>>, vector<8x128xf32>
    tpu.vector_store %arg16[%c0_52, %c0_53], %91 {strides = array<i32>} : memref<8x128xf32, #tpu.memory_space<vmem>>, vector<8x128xf32>,
    return
  }
  func.func @transform_0(%arg0: i32) -> (i32, i32, i32) {
    %c0_i32 = arith.constant 0 : i32
    %c0_i32_0 = arith.constant 0 : i32
    %c0_i32_1 = arith.constant 0 : i32
    return %arg0, %c0_i32, %c0_i32_0 : i32, i32, i32
  }
  func.func @transform_1(%arg0: i32) -> (i32, i32) {
    %c0_i32 = arith.constant 0 : i32
    %c0_i32_0 = arith.constant 0 : i32
    %c0_i32_1 = arith.constant 0 : i32
    return %c0_i32, %c0_i32_0 : i32, i32
  }
  func.func @transform_2(%arg0: i32) -> (i32, i32) {
    %c0_i32 = arith.constant 0 : i32
    %c0_i32_0 = arith.constant 0 : i32
    %c0_i32_1 = arith.constant 0 : i32
    return %c0_i32, %c0_i32_0 : i32, i32
  }
  func.func @transform_3(%arg0: i32) -> (i32, i32) {
    %c0_i32 = arith.constant 0 : i32
    %c0_i32_0 = arith.constant 0 : i32
    %c0_i32_1 = arith.constant 0 : i32
    return %c0_i32, %c0_i32_0 : i32, i32
  }
  func.func @transform_4(%arg0: i32) -> (i32, i32) {
    %c0_i32 = arith.constant 0 : i32
    %c0_i32_0 = arith.constant 0 : i32
    %c0_i32_1 = arith.constant 0 : i32
    return %c0_i32, %c0_i32_0 : i32, i32
  }
  func.func @transform_5(%arg0: i32) -> (i32, i32) {
    %c0_i32 = arith.constant 0 : i32
    %c0_i32_0 = arith.constant 0 : i32
    %c0_i32_1 = arith.constant 0 : i32
    return %c0_i32, %c0_i32_0 : i32, i32
  }
  func.func @transform_6(%arg0: i32) -> (i32, i32) {
    %c0_i32 = arith.constant 0 : i32
    %c0_i32_0 = arith.constant 0 : i32
    %c0_i32_1 = arith.constant 0 : i32
    return %c0_i32, %c0_i32_0 : i32, i32
  }
  func.func @transform_7(%arg0: i32) -> (i32, i32) {
    %c0_i32 = arith.constant 0 : i32
    %c0_i32_0 = arith.constant 0 : i32
    %c0_i32_1 = arith.constant 0 : i32
    return %c0_i32, %c0_i32_0 : i32, i32
  }
  func.func @transform_8(%arg0: i32) -> (i32, i32) {
    %c0_i32 = arith.constant 0 : i32
    %c0_i32_0 = arith.constant 0 : i32
    %c0_i32_1 = arith.constant 0 : i32
    return %c0_i32, %c0_i32_0 : i32, i32
  }
  func.func @transform_9(%arg0: i32) -> (i32, i32) {
    %c0_i32 = arith.constant 0 : i32
    %c0_i32_0 = arith.constant 0 : i32
    %c0_i32_1 = arith.constant 0 : i32
    return %c0_i32, %c0_i32_0 : i32, i32
  }
  func.func @transform_10(%arg0: i32) -> (i32, i32) {
    %c0_i32 = arith.constant 0 : i32
    %c0_i32_0 = arith.constant 0 : i32
    %c0_i32_1 = arith.constant 0 : i32
    return %c0_i32, %c0_i32_0 : i32, i32
  }
  func.func @transform_11(%arg0: i32) -> (i32, i32) {
    %c0_i32 = arith.constant 0 : i32
    %c0_i32_0 = arith.constant 0 : i32
    %c0_i32_1 = arith.constant 0 : i32
    return %c0_i32, %c0_i32_0 : i32, i32
  }
  func.func @transform_12(%arg0: i32) -> (i32, i32) {
    %c0_i32 = arith.constant 0 : i32
    %c0_i32_0 = arith.constant 0 : i32
    %c0_i32_1 = arith.constant 0 : i32
    return %c0_i32, %c0_i32_0 : i32, i32
  }
  func.func @transform_13(%arg0: i32) -> (i32, i32) {
    %c0_i32 = arith.constant 0 : i32
    %c0_i32_0 = arith.constant 0 : i32
    %c0_i32_1 = arith.constant 0 : i32
    return %c0_i32, %c0_i32_0 : i32, i32
  }
  func.func @transform_14(%arg0: i32) -> (i32, i32) {
    %c0_i32 = arith.constant 0 : i32
    %c0_i32_0 = arith.constant 0 : i32
    %c0_i32_1 = arith.constant 0 : i32
    return %c0_i32, %c0_i32_0 : i32, i32
  }
  func.func @transform_15(%arg0: i32) -> (i32, i32) {
    %c0_i32 = arith.constant 0 : i32
    %c0_i32_0 = arith.constant 0 : i32
    return %arg0, %c0_i32 : i32, i32
  }
}

</mosaic_0001>

<bundles_post_ra>
// kernel: lenet_forward.1
= control target key start
LH: loop header
LB: loop body
LE: loop exit
PB: predicated region body
PF: predicated region fallthrough
CT: control target
= control target key end

     0   :  { %20 = vsyncpa [#allocation3], 0  ;;  %s9187_s0 = inlined_call_operand.vmem [shape: f32[16,28,28], index: 0, kind: input, shape index: {}]   ;;  %s9188_s1 = inlined_call_operand.vmem [shape: bf16[140,144], index: 1, kind: input, shape index: {}]   ;;  %s9189_s2 = inlined_call_operand.vmem [shape: f32[1,144], index: 2, kind: input, shape index: {}]   ;;  %s9190_s3 = inlined_call_operand.vmem [shape: bf16[144,72], index: 3, kind: input, shape index: {}]   ;;  %s9191_s4 = inlined_call_operand.vmem [shape: bf16[144,72], index: 4, kind: input, shape index: {}]   ;;  %s9192_s5 = inlined_call_operand.vmem [shape: bf16[360,128], index: 5, kind: input, shape index: {}]   ;;  %s9193_s6 = inlined_call_operand.vmem [shape: f32[1,128], index: 6, kind: input, shape index: {}]   ;;  %s9194_s7 = inlined_call_operand.vmem [shape: bf16[128,64], index: 7, kind: input, shape index: {}]   ;;  %s9195_s8 = inlined_call_operand.vmem [shape: bf16[128,64], index: 8, kind: input, shape index: {}]   ;;  %s9196_s9 = inlined_call_operand.vmem [shape: bf16[256,120], index: 9, kind: input, shape index: {}]   ;;  %s9197_s10 = inlined_call_operand.vmem [shape: f32[1,120], index: 10, kind: input, shape index: {}]   ;;  %s9198_s11 = inlined_call_operand.vmem [shape: bf16[120,84], index: 11, kind: input, shape index: {}]   ;;  %s9199_s12 = inlined_call_operand.vmem [shape: f32[1,84], index: 12, kind: input, shape index: {}]   ;;  %s9200_s13 = inlined_call_operand.vmem [shape: bf16[84,128], index: 13, kind: input, shape index: {}]   ;;  %s9201_s14 = inlined_call_operand.vmem [shape: f32[1,128], index: 14, kind: input, shape index: {}]   ;;  %s9202_s15 = inlined_call_operand.hbm [shape: f32[16,128], index: 15, kind: output, shape index: {}]  }
   0x1   :  { %22 = vsyncpa [#allocation3 + $0x1], 0  ;;  %s6755_s18 = smov 0   ;;  %s6757_s19 = smov 0  }
   0x2   :  { %s6759_s20 = smov 0   ;;  %s6761_s21 = smov 0  }
   0x3 LB: > { %9279 = sst [smem:[#allocation5_spill]] %s6646_s18  ;;  %s6776_s22 = sadd.s32 4294967295, %s6658_s21   ;;  %s6658_s21 = sphi %s6761_s21, %s9441_s21   ;;  %s6654_s20 = sphi %s6759_s20, %s9443_s20   ;;  %s6650_s19 = sphi %s6757_s19, %s9445_s19   ;;  %s6646_s18 = sphi %s6755_s18, %s9444_s18  }
   0x4   : > { %9280 = sst [smem:[#allocation6_spill]] %s6654_s20  ;;  %s5583_s23 = sadd.s32 4294967294, %s6658_s21  }
   0x5   : > { %s6780_s24 = sadd.s32 1, %s6658_s21   ;;  %s355_s25 = sadd.s32 1, %s6654_s20 }
   0x6   : > { %9281 = sst [smem:[#allocation7_spill]] %s6780_s24  ;;  %s352_s26 = ssub.s32 %s6658_s21, %s6780_s24 }
   0x7   : > { %p365_p0 = scmp.ne.s32.totalorder %s6654_s20, %s6650_s19  ;;  %p353_p1 = scmp.eq.s32.totalorder %s352_s26, 0 }
   0x8   : > { %p366_p2 = scmp.eq.s32.totalorder %s6776_s22, 1  ;;  %p371_p3 = scmp.ne.s32.totalorder %s6650_s19, %s6646_s18 }
   0x9   : > { %p372_p4 = scmp.eq.s32.totalorder %s5583_s23, 1  ;;  %p5586_p7 = scmp.ge.s32.totalorder %s6658_s21, 1 }
   0xa   : > { %s6791_s27 = scalar_select %p353_p1, %s6654_s20, %s355_s25  }
   0xb   : > { %p6793_p5 = por %p366_p2, %p365_p0  ;;  %p6797_p6 = por %p372_p4, %p371_p3 }
   0xc   : > { %9282 = sst [smem:[#allocation8_spill]] %s6791_s27  ;;  %p442_p8 = scmp.lt.s32.totalorder %s6658_s21, 3 }
   0xd   : > { %s9284_s29 = scalar_select %p6797_p6, 1, 0 }
   0xe   : > { %p443_p9 = pnand %p5586_p7, %p442_p8 }
   0xf   : > { %9285 = sst [smem:[#allocation9_spill]] %s9284_s29 }
  0x10   : > { %446 = sbr.rel (%p443_p9) target bundleno = 2356 (0x934), region = 80 }
  0x17   : > { %s5588_s30 = sshll.u32 %s6776_s22, 3  ;;  %v6346_v0 = vld [vmem:[%s9188_s1 + $0x4] ss:$8 sps:$4 sm:$0xff]   ;;  %v6348_v1 = vld [vmem:[%s9188_s1] ss:$8 sps:$4 sm:$0xff]   ;;  %vm563_vm0 = vcmask 1046528  }
  0x18   : > { %p492_p10 = scmp.lt.s32.totalorder %s5588_s30, 15  ;;  %1364 = vmatprep.subr.bf16.mxu0 %v6346_v0  ;;  %v6349_v2 = vld [vmem:[%s9188_s1 + $0x14] ss:$8 sps:$4 sm:$0xff]   ;;  %v6351_v3 = vld [vmem:[%s9188_s1 + $0x10] ss:$8 sps:$4 sm:$0xff]   ;;  %vm821_vm1 = vcmask 1044480  }
  0x19   : > { %1365 = vmatpush1.bf16.msra.mxu0 %v6348_v1  ;;  %v6352_v4 = vld [vmem:[%s9188_s1 + $0x24] ss:$8 sps:$4 sm:$0xff]   ;;  %vm692_vm2 = vcmask 1045504   ;;  %vm950_vm3 = vcmask 1043456   ;;  %v6354_v12 = vld [vmem:[%s9188_s1 + $0x20] ss:$8 sps:$4 sm:$0xff]  }
  0x1a   : > { %s9447_s30 = smov (!%p492_p10, %s5588_s30), 15  ;;  %1366 = vmatprep.subr.bf16.mxu0 %v6349_v2  ;;  %v6355_v17 = vld [vmem:[%s9188_s1 + $0x34] ss:$8 sps:$4 sm:$0xff]   ;;  %v6357_v33 = vld [vmem:[%s9188_s1 + $0x30] ss:$8 sps:$4 sm:$0xff]   ;;  %s6660_s26 = smov 28  }
  0x1b   : > { %s5747_s29 = sshll.u32 %s9447_s30, 5  ;;  %s6661_s16 = smov 84   ;;  %v6358_v1 = vld [vmem:[%s9188_s1 + $0x44] ss:$8 sps:$4 sm:$0xff]   ;;  %vm1079_vm4 = vcmask 228352   ;;  %vm1104_vm5 = vcmask 457728  }
  0x1c   : > { %s6822_s25 = scalar_lea.vmem %s9187_s0, %s5747_s29  ;;  %s6662_s17 = smov 56   ;;  %vm1129_vm6 = vcmask 687104   ;;  %vm1154_vm7 = vcmask 916480   ;;  %vm1321_vm8 = vcmask 97280   ;;  %vm1805_vm9 = vcmask 130048  }
  0x1d   : > { %v499_v5 = vld [vmem:[%s6822_s25] sm:$0xff]  ;;  %v500_v6 = vld [vmem:[%s6822_s25 + $0x8] sm:$0xff]  ;;  %v6827_v7 = vld [vmem:[%s6822_s25 + $0x10] sm:$0xff]  ;;  %1367 = vmatpush1.bf16.msra.mxu0 %v6351_v3  ;;  %s6663_s23 = smov 112   ;;  %vm2724_vm10 = vcmask 582656   ;;  %vm3461_vm11 = vcmask 1041409  }
  0x1e   : > { %v564_v8 = vrot.slane %v499_v5, 1  ;;  %v565_v9 = vrot.slane %v500_v6, 1  ;;  %v567_v10 = vrot.slane %v6827_v7, 1  ;;  %v822_v11 = vrot.slane %v499_v5, 3  ;;  %1368 = vmatprep.subr.bf16.mxu0 %v6352_v4  ;;  %v502_v22 = vld [vmem:[%s6822_s25 + $0x18] sm:$0xf] }
  0x1f   : > { %v823_v13 = vrot.slane %v500_v6, 3  ;;  %v825_v14 = vrot.slane %v6827_v7, 3  ;;  %v693_v15 = vrot.slane %v499_v5, 2  ;;  %v694_v16 = vrot.slane %v500_v6, 2  ;;  %v503_v23 = vld [vmem:[%s6822_s25 + $0x20] sm:$0xff]  ;;  %v6843_v24 = vld [vmem:[%s6822_s25 + $0x28] sm:$0xff] }
  0x20   : > { %v566_v18 = vsel %vm563_vm0, %v564_v8, %v565_v9  ;;  %v568_v19 = vsel %vm563_vm0, %v565_v9, %v567_v10  ;;  %v696_v20 = vrot.slane %v6827_v7, 2  ;;  %v951_v21 = vrot.slane %v499_v5, 4  ;;  %v505_v46 = vld [vmem:[%s6822_s25 + $0x30] sm:$0xff]  ;;  %v506_v51 = vld [vmem:[%s6822_s25 + $0x38] sm:$0xf]  ;;  %v6873_v0 = vld [vmem:[%s6822_s25 + $0x40] sm:$0xff] }
  0x21   : > { %v6021_v25 = vpack.i.bf16 %v568_v19, %v566_v18  ;;  %v824_v26 = vsel %vm821_vm1, %v822_v11, %v823_v13  ;;  %v826_v27 = vsel %vm821_vm1, %v823_v13, %v825_v14  ;;  %v695_v28 = vsel %vm692_vm2, %v693_v15, %v694_v16  ;;  %1369 = vmatpush1.bf16.msra.mxu0 %v6354_v12  ;;  %v6880_v4 = vld [vmem:[%s6822_s25 + $0x48] sm:$0xff]  ;;  %v6361_v11 = vld [vmem:[%s9188_s1 + $0x54] ss:$8 sps:$4 sm:$0xff]   ;;  %v6363_v15 = vld [vmem:[%s9188_s1 + $0x50] ss:$8 sps:$4 sm:$0xff]   ;;  %s6672_s30 = smov 64  }
  0x22   : > { %v6031_v29 = vpack.i.bf16 %v826_v27, %v824_v26  ;;  %v697_v30 = vsel %vm692_vm2, %v694_v16, %v696_v20  ;;  %v952_v31 = vrot.slane %v500_v6, 4  ;;  %v954_v32 = vrot.slane %v6827_v7, 4  ;;  %1370 = vmatprep.subr.bf16.mxu0 %v6355_v17  ;;  %v6360_v5 = vld [vmem:[%s9188_s1 + $0x40] ss:$8 sps:$4 sm:$0xff]   ;;  %v6364_v19 = vld [vmem:[%s9188_s1 + $0x64] ss:$8 sps:$4 sm:$0xff]  }
  0x23   : > { %6022 = vrot.lane.b32.xlu0 %v6021_v25, %s6660_s26  ;;  %v6026_v34 = vpack.i.bf16 %v697_v30, %v695_v28  ;;  %v569_v35 = vrot.slane %v502_v22, 1  ;;  %v571_v36 = vrot.slane %v503_v23, 1  ;;  %v572_v37 = vrot.slane %v6843_v24, 1 }
  0x24   : > { %6032 = vrot.lane.b32.xlu1 %v6031_v29, %s6661_s16  ;;  %v953_v38 = vsel %vm950_vm3, %v951_v21, %v952_v31  ;;  %v955_v39 = vsel %vm950_vm3, %v952_v31, %v954_v32  ;;  %v698_v40 = vrot.slane %v502_v22, 2  ;;  %v700_v41 = vrot.slane %v503_v23, 2 }
  0x25   : > { %v6036_v42 = vpack.i.bf16 %v955_v39, %v953_v38  ;;  %v570_v43 = vsel %vm563_vm0, %v567_v10, %v569_v35  ;;  %v573_v44 = vsel %vm563_vm0, %v571_v36, %v572_v37  ;;  %v701_v45 = vrot.slane %v6843_v24, 2  ;;  %1371 = vmatpush1.bf16.msra.mxu0 %v6357_v33  ;;  %v6889_v10 = vld [vmem:[%s6822_s25 + $0x50] sm:$0xff]  ;;  %v6922_v35 = vld [vmem:[%s6822_s25 + $0x60] sm:$0xff] }
  0x26   : > { %v6041_v47 = vpack.i.bf16 %v573_v44, %v570_v43  ;;  %v699_v48 = vsel %vm692_vm2, %v696_v20, %v698_v40  ;;  %v827_v49 = vrot.slane %v502_v22, 3  ;;  %v829_v50 = vrot.slane %v503_v23, 3  ;;  %1372 = vmatprep.subr.bf16.mxu0 %v6358_v1  ;;  %v6367_v36 = vld [vmem:[%s9188_s1 + $0x74] ss:$8 sps:$4 sm:$0xff]  }
  0x27   : > { %6027 = vrot.lane.b32.xlu0 %v6026_v34, %s6662_s17  ;;  %v702_v52 = vsel %vm692_vm2, %v700_v41, %v701_v45  ;;  %v830_v53 = vrot.slane %v6843_v24, 3  ;;  %v956_v54 = vrot.slane %v502_v22, 4  ;;  %v958_v55 = vrot.slane %v503_v23, 4  ;;  %v6919_v34 = vld [vmem:[%s6822_s25 + $0x58] sm:$0xf]  ;;  %v6931_v41 = vld [vmem:[%s6822_s25 + $0x68] sm:$0xff] }
  0x28   : > { %6037 = vrot.lane.b32.xlu1 %v6036_v42, %s6663_s23  ;;  %v6046_v56 = vpack.i.bf16 %v702_v52, %v699_v48  ;;  %v828_v57 = vsel %vm821_vm1, %v825_v14, %v827_v49  ;;  %v959_v58 = vrot.slane %v6843_v24, 4  ;;  %v574_v59 = vrot.slane %v505_v46, 1  ;;  %v6366_v24 = vld [vmem:[%s9188_s1 + $0x60] ss:$8 sps:$4 sm:$0xff]   ;;  %v6369_v42 = vld [vmem:[%s9188_s1 + $0x70] ss:$8 sps:$4 sm:$0xff]  }
  0x29   : > { %v831_v60 = vsel %vm821_vm1, %v829_v50, %v830_v53  ;;  %v957_v61 = vsel %vm950_vm3, %v954_v32, %v956_v54  ;;  %v576_v62 = vrot.slane %v506_v51, 1  ;;  %v703_v63 = vrot.slane %v505_v46, 2  ;;  %1373 = vmatpush1.bf16.msra.mxu0 %v6360_v5 }
  0x2a   : > { %v960_v2 = vsel %vm950_vm3, %v958_v55, %v959_v58  ;;  %v705_v3 = vrot.slane %v506_v51, 2  ;;  %v6051_v6 = vpack.i.bf16 %v831_v60, %v828_v57  ;;  %v575_v7 = vsel %vm563_vm0, %v572_v37, %v574_v59  ;;  %1374 = vmatprep.subr.bf16.mxu0 %v6361_v11 }
  0x2b   : > { %6042 = vrot.lane.b32.xlu0 %v6041_v47, %s6660_s26  ;;  %v577_v8 = vsel %vm563_vm0, %v574_v59, %v576_v62  ;;  %v832_v9 = vrot.slane %v505_v46, 3  ;;  %v6056_v12 = vpack.i.bf16 %v960_v2, %v957_v61  ;;  %v834_v13 = vrot.slane %v506_v51, 3  ;;  %v6370_v47 = vld [vmem:[%s9188_s1 + $0x84] ss:$8 sps:$4 sm:$0x3f]  }
  0x2c   : > { %6047 = vrot.lane.b32.xlu1 %v6046_v56, %s6662_s17  ;;  %v961_v14 = vrot.slane %v505_v46, 4  ;;  %v704_v16 = vsel %vm692_vm2, %v701_v45, %v703_v63  ;;  %v706_v17 = vsel %vm692_vm2, %v703_v63, %v705_v3  ;;  %v963_v18 = vrot.slane %v506_v51, 4  ;;  %v513_v63 = vld [vmem:[%s6822_s25 + $0x70] sm:$0xff] }
  0x2d   : > { %v6061_v20 = vpack.i.bf16 %v577_v8, %v575_v7  ;;  %v833_v21 = vsel %vm821_vm1, %v830_v53, %v832_v9  ;;  %v835_v22 = vsel %vm821_vm1, %v832_v9, %v834_v13  ;;  %v578_v23 = vrot.slane %v6873_v0, 1  ;;  %1375 = vmatpush1.bf16.msra.mxu0 %v6363_v15  ;;  %v6980_v15 = vld [vmem:[%s6822_s25 + $0x90] sm:$0xff] }
  0x2e   : > { %v962_v25 = vsel %vm950_vm3, %v959_v58, %v961_v14  ;;  %v964_v26 = vsel %vm950_vm3, %v961_v14, %v963_v18  ;;  %v579_v27 = vrot.slane %v6880_v4, 1  ;;  %v581_v28 = vrot.slane %v6889_v10, 1  ;;  %1376 = vmatprep.subr.bf16.mxu0 %v6364_v19  ;;  %v6977_v14 = vld [vmem:[%s6822_s25 + $0x88] sm:$0xff] }
  0x2f   : > { %6052 = vrot.lane.b32.xlu0 %v6051_v6, %s6661_s16  ;;  %v6066_v29 = vpack.i.bf16 %v706_v17, %v704_v16  ;;  %v707_v30 = vrot.slane %v6873_v0, 2  ;;  %v708_v31 = vrot.slane %v6880_v4, 2  ;;  %v710_v32 = vrot.slane %v6889_v10, 2 }
  0x30   : > { %6057 = vrot.lane.b32.xlu1 %v6056_v12, %s6663_s23  ;;  %v6071_v33 = vpack.i.bf16 %v835_v22, %v833_v21  ;;  %v6076_v37 = vpack.i.bf16 %v964_v26, %v962_v25  ;;  %v836_v38 = vrot.slane %v6873_v0, 3  ;;  %v837_v39 = vrot.slane %v6880_v4, 3 }
  0x31   : > { %v839_v40 = vrot.slane %v6889_v10, 3  ;;  %v580_v43 = vsel %vm563_vm0, %v578_v23, %v579_v27  ;;  %v582_v44 = vsel %vm563_vm0, %v579_v27, %v581_v28  ;;  %v965_v45 = vrot.slane %v6873_v0, 4  ;;  %1377 = vmatpush1.bf16.msra.mxu0 %v6366_v24  ;;  %v514_v0 = vld [vmem:[%s6822_s25 + $0x78] sm:$0xf] }
  0x32   : > { %v966_v46 = vrot.slane %v6880_v4, 4  ;;  %v709_v48 = vsel %vm692_vm2, %v707_v30, %v708_v31  ;;  %v711_v49 = vsel %vm692_vm2, %v708_v31, %v710_v32  ;;  %v968_v50 = vrot.slane %v6889_v10, 4  ;;  %1378 = vmatprep.subr.bf16.mxu0 %v6367_v36  ;;  %v6973_v10 = vld [vmem:[%s6822_s25 + $0x80] sm:$0xff] }
  0x33   : > { %6062 = vrot.lane.b32.xlu0 %v6061_v20, %s6660_s26  ;;  %v583_v51 = vrot.slane %v6919_v34, 1  ;;  %v585_v52 = vrot.slane %v6922_v35, 1  ;;  %v586_v53 = vrot.slane %v6931_v41, 1  ;;  %v6081_v54 = vpack.i.bf16 %v582_v44, %v580_v43 }
  0x34   : > { %6067 = vrot.lane.b32.xlu1 %v6066_v29, %s6662_s17  ;;  %v6086_v55 = vpack.i.bf16 %v711_v49, %v709_v48  ;;  %v838_v56 = vsel %vm821_vm1, %v836_v38, %v837_v39  ;;  %v840_v57 = vsel %vm821_vm1, %v837_v39, %v839_v40  ;;  %v967_v58 = vsel %vm950_vm3, %v965_v45, %v966_v46  ;;  %v7013_v48 = vld [vmem:[%s6822_s25 + $0xa8] sm:$0xff] }
  0x35   : > { %v969_v59 = vsel %vm950_vm3, %v966_v46, %v968_v50  ;;  %v712_v60 = vrot.slane %v6919_v34, 2  ;;  %v714_v61 = vrot.slane %v6922_v35, 2  ;;  %v715_v62 = vrot.slane %v6931_v41, 2  ;;  %1379 = vmatpush1.bf16.msra.mxu0 %v6369_v42  ;;  %v7002_v42 = vld [vmem:[%s6822_s25 + $0x98] sm:$0xf] }
  0x36   : > { %v584_v1 = vsel %vm563_vm0, %v581_v28, %v583_v51  ;;  %v587_v2 = vsel %vm563_vm0, %v585_v52, %v586_v53  ;;  %v841_v3 = vrot.slane %v6919_v34, 3  ;;  %v843_v4 = vrot.slane %v6922_v35, 3  ;;  %5609 = vmatprep.subr.msk.bf16.mxu0 %vm692_vm2, %v6370_v47  ;;  %v7010_v47 = vld [vmem:[%s6822_s25 + $0xa0] sm:$0xff] }
  0x37   : > { %6072 = vrot.lane.b32.xlu0 %v6071_v33, %s6661_s16  ;;  %v844_v5 = vrot.slane %v6931_v41, 3  ;;  %v970_v6 = vrot.slane %v6919_v34, 4  ;;  %v6091_v7 = vpack.i.bf16 %v840_v57, %v838_v56  ;;  %v972_v8 = vrot.slane %v6922_v35, 4  ;;  %v7029_v57 = vld [vmem:[%s6822_s25 + $0xb8] sm:$0xf] }
  0x38   : > { %6077 = vrot.lane.b32.xlu1 %v6076_v37, %s6663_s23  ;;  %v973_v9 = vrot.slane %v6931_v41, 4  ;;  %v6096_v11 = vpack.i.bf16 %v969_v59, %v967_v58  ;;  %v6101_v12 = vpack.i.bf16 %v587_v2, %v584_v1  ;;  %v588_v13 = vrot.slane %v513_v63, 1 }
  0x39   : > { %v713_v16 = vsel %vm692_vm2, %v710_v32, %v712_v60  ;;  %v716_v17 = vsel %vm692_vm2, %v714_v61, %v715_v62  ;;  %v590_v18 = vrot.slane %v514_v0, 1  ;;  %v717_v19 = vrot.slane %v513_v63, 2 }
  0x3a   : > { %v842_v20 = vsel %vm821_vm1, %v839_v40, %v841_v3  ;;  %v845_v21 = vsel %vm821_vm1, %v843_v4, %v844_v5  ;;  %v719_v22 = vrot.slane %v514_v0, 2  ;;  %v846_v23 = vrot.slane %v513_v63, 3 }
  0x3b   : > { %6082 = vrot.lane.b32.xlu0 %v6081_v54, %s6660_s26  ;;  %v971_v24 = vsel %vm950_vm3, %v968_v50, %v970_v6  ;;  %v974_v25 = vsel %vm950_vm3, %v972_v8, %v973_v9  ;;  %v848_v26 = vrot.slane %v514_v0, 3  ;;  %v975_v27 = vrot.slane %v513_v63, 4 }
  0x3c   : > { %6087 = vrot.lane.b32.xlu1 %v6086_v55, %s6662_s17  ;;  %v6106_v28 = vpack.i.bf16 %v716_v17, %v713_v16  ;;  %v977_v29 = vrot.slane %v514_v0, 4  ;;  %v592_v30 = vrot.slane %v6973_v10, 1  ;;  %v6111_v31 = vpack.i.bf16 %v845_v21, %v842_v20 }
  0x3d   : > { %v593_v32 = vrot.slane %v6977_v14, 1  ;;  %v595_v33 = vrot.slane %v6980_v15, 1  ;;  %v6116_v34 = vpack.i.bf16 %v974_v25, %v971_v24  ;;  %v589_v35 = vsel %vm563_vm0, %v586_v53, %v588_v13  ;;  %v7024_v53 = vld [vmem:[%s6822_s25 + $0xb0] sm:$0xff] }
  0x3e   : > { %v591_v36 = vsel %vm563_vm0, %v588_v13, %v590_v18  ;;  %v718_v37 = vsel %vm692_vm2, %v715_v62, %v717_v19  ;;  %v720_v38 = vsel %vm692_vm2, %v717_v19, %v719_v22  ;;  %v847_v39 = vsel %vm821_vm1, %v844_v5, %v846_v23 }
  0x3f   : > { %6092 = vrot.lane.b32.xlu0 %v6091_v7, %s6661_s16  ;;  %v849_v40 = vsel %vm821_vm1, %v846_v23, %v848_v26  ;;  %v721_v41 = vrot.slane %v6973_v10, 2  ;;  %v976_v43 = vsel %vm950_vm3, %v973_v9, %v975_v27  ;;  %v978_v44 = vsel %vm950_vm3, %v975_v27, %v977_v29  ;;  %v7082_v26 = vld [vmem:[%s6822_s25 + $0xc0] sm:$0xff]  ;;  %v7085_v27 = vld [vmem:[%s6822_s25 + $0xc8] sm:$0xff] }
  0x40   : > { %6097 = vrot.lane.b32.xlu1 %v6096_v11, %s6663_s23  ;;  %v722_v45 = vrot.slane %v6977_v14, 2  ;;  %v724_v46 = vrot.slane %v6980_v15, 2  ;;  %v7016_v49 = vsel %vm563_vm0, %v592_v30, %v593_v32  ;;  %v7019_v50 = vsel %vm563_vm0, %v593_v32, %v595_v33  ;;  %v7096_v32 = vld [vmem:[%s6822_s25 + $0xd0] sm:$0xff] }
  0x41   : > { %v850_v51 = vrot.slane %v6973_v10, 3  ;;  %v851_v52 = vrot.slane %v6977_v14, 3  ;;  %v6121_v54 = vpack.i.bf16 %v591_v36, %v589_v35  ;;  %v853_v55 = vrot.slane %v6980_v15, 3 }
  0x42   : > { %v979_v56 = vrot.slane %v6973_v10, 4  ;;  %v6126_v58 = vpack.i.bf16 %v720_v38, %v718_v37  ;;  %v6131_v59 = vpack.i.bf16 %v849_v40, %v847_v39  ;;  %v980_v60 = vrot.slane %v6977_v14, 4  ;;  %v7108_v37 = vld [vmem:[%s6822_s25 + $0xd8] sm:$0xf] }
  0x43   : > { %6102 = vrot.lane.b32.xlu0 %v6101_v12, %s6660_s26  ;;  %v982_v61 = vrot.slane %v6980_v15, 4  ;;  %v6136_v62 = vpack.i.bf16 %v978_v44, %v976_v43  ;;  %v6141_v63 = vpack.i.bf16 %v7019_v50, %v7016_v49  ;;  %v723_v0 = vsel %vm692_vm2, %v721_v41, %v722_v45  ;;  %v7119_v43 = vld [vmem:[%s6822_s25 + $0xe8] sm:$0xff] }
  0x44   : > { %6107 = vrot.lane.b32.xlu1 %v6106_v28, %s6662_s17  ;;  %v597_v1 = vrot.slane %v7002_v42, 1  ;;  %v725_v2 = vsel %vm692_vm2, %v722_v45, %v724_v46  ;;  %v599_v3 = vrot.slane %v7010_v47, 1  ;;  %v600_v4 = vrot.slane %v7013_v48, 1 }
  0x45   : > { %v726_v5 = vrot.slane %v7002_v42, 2  ;;  %v7044_v6 = vsel %vm821_vm1, %v850_v51, %v851_v52  ;;  %v7047_v7 = vsel %vm821_vm1, %v851_v52, %v853_v55  ;;  %v728_v8 = vrot.slane %v7010_v47, 2 }
  0x46   : > { %v602_v9 = vrot.slane %v7024_v53, 1  ;;  %v7053_v10 = vsel %vm950_vm3, %v979_v56, %v980_v60  ;;  %v7056_v11 = vsel %vm950_vm3, %v980_v60, %v982_v61  ;;  %v729_v12 = vrot.slane %v7013_v48, 2 }
  0x47   : > { %6112 = vrot.lane.b32.xlu0 %v6111_v31, %s6661_s16  ;;  %v604_v13 = vrot.slane %v7029_v57, 1  ;;  %v7062_v14 = vsel %vm563_vm0, %v595_v33, %v597_v1  ;;  %v855_v15 = vrot.slane %v7002_v42, 3  ;;  %v857_v16 = vrot.slane %v7010_v47, 3 }
  0x48   : > { %6117 = vrot.lane.b32.xlu1 %v6116_v34, %s6663_s23  ;;  %v7067_v17 = vsel %vm563_vm0, %v600_v4, %v602_v9  ;;  %v7070_v18 = vsel %vm563_vm0, %v599_v3, %v600_v4  ;;  %v858_v19 = vrot.slane %v7013_v48, 3  ;;  %v860_v21 = vrot.slane %v7024_v53, 3  ;;  %v7148_v3 = vld [vmem:[%s6822_s25 + $0xf0] sm:$0xff] }
  0x49   : > { %v7074_v20 = vsel %vm563_vm0, %v602_v9, %v604_v13  ;;  %v6146_v22 = vpack.i.bf16 %v725_v2, %v723_v0  ;;  %v984_v23 = vrot.slane %v7002_v42, 4  ;;  %v862_v25 = vrot.slane %v7029_v57, 3  ;;  %v7116_v42 = vld [vmem:[%s6822_s25 + $0xe0] sm:$0xff] }
  0x4a   : > { %v6181_v24 = vpack.i.bf16 %v7074_v20, %v7067_v17  ;;  %v6151_v28 = vpack.i.bf16 %v7047_v7, %v7044_v6  ;;  %v986_v29 = vrot.slane %v7010_v47, 4  ;;  %v987_v30 = vrot.slane %v7013_v48, 4 }
  0x4b   : > { %6122 = vrot.lane.b32.xlu0 %v6121_v54, %s6660_s26  ;;  %v7093_v31 = vsel %vm821_vm1, %v858_v19, %v860_v21  ;;  %v6156_v33 = vpack.i.bf16 %v7056_v11, %v7053_v10  ;;  %v6161_v34 = vpack.i.bf16 %v7070_v18, %v7062_v14  ;;  %v727_v35 = vsel %vm692_vm2, %v724_v46, %v726_v5 }
  0x4c   : > { %6127 = vrot.lane.b32.xlu1 %v6126_v58, %s6662_s17  ;;  %v7105_v36 = vsel %vm821_vm1, %v860_v21, %v862_v25  ;;  %v730_v38 = vsel %vm692_vm2, %v728_v8, %v729_v12  ;;  %v731_v39 = vrot.slane %v7024_v53, 2  ;;  %v733_v40 = vrot.slane %v7029_v57, 2  ;;  %v7159_v8 = vld [vmem:[%s6822_s25 + $0xf8] sm:$0xf] }
  0x4d   : > { %v6191_v41 = vpack.i.bf16 %v7105_v36, %v7093_v31  ;;  %v856_v44 = vsel %vm821_vm1, %v853_v55, %v855_v15  ;;  %v859_v45 = vsel %vm821_vm1, %v857_v16, %v858_v19  ;;  %v989_v46 = vrot.slane %v7024_v53, 4 }
  0x4e   : > { %v991_v47 = vrot.slane %v7029_v57, 4  ;;  %v985_v49 = vsel %vm950_vm3, %v982_v61, %v984_v23  ;;  %v988_v50 = vsel %vm950_vm3, %v986_v29, %v987_v30  ;;  %v606_v51 = vrot.slane %v7082_v26, 1  ;;  %v6372_v23 = vld [vmem:[%s9188_s1 + $0x80] ss:$8 sps:$4 sm:$0x3f]  }
  0x4f   : > { %6132 = vrot.lane.b32.xlu0 %v6131_v59, %s6661_s16  ;;  %v607_v52 = vrot.slane %v7085_v27, 1  ;;  %v609_v54 = vrot.slane %v7096_v32, 1  ;;  %v735_v55 = vrot.slane %v7082_v26, 2  ;;  %v736_v56 = vrot.slane %v7085_v27, 2 }
  0x50   : > { %6137 = vrot.lane.b32.xlu1 %v6136_v62, %s6663_s23  ;;  %v738_v58 = vrot.slane %v7096_v32, 2  ;;  %v7138_v59 = vsel %vm692_vm2, %v729_v12, %v731_v39  ;;  %v7141_v60 = vsel %vm692_vm2, %v731_v39, %v733_v40  ;;  %v864_v61 = vrot.slane %v7082_v26, 3 }
  0x51   : > { %v611_v62 = vrot.slane %v7108_v37, 1  ;;  %v6171_v0 = vpack.i.bf16 %v859_v45, %v856_v44  ;;  %v613_v1 = vrot.slane %v7116_v42, 1  ;;  %v614_v2 = vrot.slane %v7119_v43, 1 }
  0x52   : > { %v6176_v4 = vpack.i.bf16 %v988_v50, %v985_v49  ;;  %v867_v5 = vrot.slane %v7096_v32, 3  ;;  %v740_v7 = vrot.slane %v7108_v37, 2  ;;  %v6186_v9 = vpack.i.bf16 %v7141_v60, %v7138_v59 }
  0x53   : > { %6142 = vrot.lane.b32.xlu0 %v6141_v63, %s6660_s26  ;;  %v6166_v63 = vpack.i.bf16 %v730_v38, %v727_v35  ;;  %v7155_v6 = vsel %vm563_vm0, %v609_v54, %v611_v62  ;;  %v7165_v10 = vsel %vm563_vm0, %v613_v1, %v614_v2  ;;  %v742_v11 = vrot.slane %v7116_v42, 2 }
  0x54   : > { %6147 = vrot.lane.b32.xlu1 %v6146_v22, %s6662_s17  ;;  %v743_v12 = vrot.slane %v7119_v43, 2  ;;  %v6221_v13 = vpack.i.bf16 %v7165_v10, %v7155_v6  ;;  %v7174_v14 = vsel %vm692_vm2, %v738_v58, %v740_v7  ;;  %v869_v15 = vrot.slane %v7108_v37, 3 }
  0x55   : > { %v871_v16 = vrot.slane %v7116_v42, 3  ;;  %v865_v18 = vrot.slane %v7085_v27, 3  ;;  %v993_v19 = vrot.slane %v7082_v26, 4  ;;  %v872_v22 = vrot.slane %v7119_v43, 3 }
  0x56   : > { %v744_v21 = vsel %vm692_vm2, %v742_v11, %v743_v12  ;;  %v994_v25 = vrot.slane %v7085_v27, 4  ;;  %v870_v29 = vsel %vm821_vm1, %v867_v5, %v869_v15  ;;  %v990_v35 = vsel %vm950_vm3, %v987_v30, %v989_v46 }
  0x57   : > { %6152 = vrot.lane.b32.xlu0 %v6151_v28, %s6661_s16  ;;  %v6226_v28 = vpack.i.bf16 %v744_v21, %v7174_v14  ;;  %v618_v38 = vrot.slane %v7159_v8, 1  ;;  %v745_v39 = vrot.slane %v7148_v3, 2  ;;  %v996_v40 = vrot.slane %v7096_v32, 4 }
  0x58   : > { %6157 = vrot.lane.b32.xlu1 %v6156_v33, %s6663_s23  ;;  %v616_v33 = vrot.slane %v7148_v3, 1  ;;  %v747_v49 = vrot.slane %v7159_v8, 2  ;;  %v998_v50 = vrot.slane %v7108_v37, 4  ;;  %v874_v30 = vrot.slane %v7148_v3, 3 }
  0x59   : > { %v746_v48 = vsel %vm692_vm2, %v743_v12, %v745_v39  ;;  %v1000_v60 = vrot.slane %v7116_v42, 4  ;;  %v876_v1 = vrot.slane %v7159_v8, 3  ;;  %v1359_v11 = vsel %vm692_vm2, %v6372_v23, 0 }
  0x5a   : > { %v617_v45 = vsel %vm563_vm0, %v614_v2, %v616_v33  ;;  %v619_v59 = vsel %vm563_vm0, %v616_v33, %v618_v38  ;;  %v1001_v2 = vrot.slane %v7119_v43, 4  ;;  %v875_v7 = vsel %vm821_vm1, %v872_v22, %v874_v30  ;;  %1381 = vmatpush1.bf16.msra.mxu0 %v1359_v11  ;;  %v6578_v11 = vld [vmem:[%s6822_s25 + $0x20] sm:$0xff] }
  0x5b   : > { %6162 = vrot.lane.b32.xlu0 %v6161_v34, %s6660_s26  ;;  %v873_v34 = vsel %vm821_vm1, %v871_v16, %v872_v22  ;;  %v6241_v62 = vpack.i.bf16 %v619_v59, %v617_v45  ;;  %v877_v12 = vsel %vm821_vm1, %v874_v30, %v876_v1  ;;  %v1003_v14 = vrot.slane %v7148_v3, 4  ;;  %v6373_v1 = vld [vmem:[%s9191_s4] sm:$0xff]  }
  0x5c   : > { %6167 = vrot.lane.b32.xlu1 %v6166_v63, %s6662_s17  ;;  %v6231_v44 = vpack.i.bf16 %v873_v34, %v870_v29  ;;  %v748_v63 = vsel %vm692_vm2, %v745_v39, %v747_v49  ;;  %v1005_v15 = vrot.slane %v7159_v8, 4  ;;  %v608_v53 = vsel %vm563_vm0, %v606_v51, %v607_v52  ;;  %v6381_v8 = vld [vmem:[%s9190_s3 + $0x8] sm:$0xff]  }
  0x5d   : > { %v6246_v37 = vpack.i.bf16 %v748_v63, %v746_v48  ;;  %v610_v43 = vsel %vm563_vm0, %v607_v52, %v609_v54  ;;  %v737_v17 = vsel %vm692_vm2, %v735_v55, %v736_v56  ;;  %v739_v20 = vsel %vm692_vm2, %v736_v56, %v738_v58  ;;  %v6576_v29 = vld [vmem:[%s6822_s25 + $0x8] sm:$0xff] }
  0x5e   : > { %v868_v51 = vsel %vm821_vm1, %v865_v18, %v867_v5  ;;  %v995_v52 = vsel %vm950_vm3, %v993_v19, %v994_v25  ;;  %v997_v54 = vsel %vm950_vm3, %v994_v25, %v996_v40  ;;  %v1002_v32 = vsel %vm950_vm3, %v1000_v60, %v1001_v2  ;;  %v6379_v5 = vld [vmem:[%s9190_s3] sm:$0xff]  }
  0x5f   : > { %6172 = vrot.lane.b32.xlu0 %v6171_v0, %s6661_s16  ;;  %v992_v0 = vsel %vm950_vm3, %v989_v46, %v991_v47  ;;  %v6206_v46 = vpack.i.bf16 %v739_v20, %v737_v17  ;;  %v866_v47 = vsel %vm821_vm1, %v864_v61, %v865_v18  ;;  %v6216_v36 = vpack.i.bf16 %v997_v54, %v995_v52  ;;  %v6374_v20 = vld [vmem:[%s9191_s4 + $0x8] sm:$0xff]  }
  0x60   : > { %6177 = vrot.lane.b32.xlu1 %v6176_v4, %s6663_s23  ;;  %v6251_v4 = vpack.i.bf16 %v877_v12, %v875_v7  ;;  %v6196_v57 = vpack.i.bf16 %v992_v0, %v990_v35  ;;  %v6211_v31 = vpack.i.bf16 %v868_v51, %v866_v47  ;;  %v1004_v56 = vsel %vm950_vm3, %v1001_v2, %v1003_v14  ;;  %v6577_v35 = vld [vmem:[%s6822_s25] sm:$0xff]  ;;  %v6579_v12 = vld [vmem:[%s6822_s25 + $0x10] sm:$0xff] }
  0x61   : > { %v1006_v58 = vsel %vm950_vm3, %v1003_v14, %v1005_v15  ;;  %v6664_v61 = vmov 0   ;;  %vm3463_vm12 = vcmask 1042434   ;;  %vm3465_vm13 = vcmask 1043459  }
  0x62   : > { %2043 = vmatprep.subr.bf16.mxu0 %v6664_v61  ;;  %1842 = vmatprep.subr.bf16.mxu1 %v6664_v61  ;;  %v6256_v6 = vpack.i.bf16 %v1006_v58, %v1004_v56  ;;  %v6375_v58 = vld [vmem:[%s9191_s4 + $0x10] sm:$0xff]   ;;  %vm3467_vm14 = vcmask 1044484   ;;  %vm3469_vm15 = vcmask 1045509   ;;  %vm3471_vm0 = vcmask 1046534  }
  0x63   : > { %6182 = vrot.lane.b32.xlu0 %v6181_v24, %s6660_s26  ;;  %v6201_v24 = vpack.i.bf16 %v610_v43, %v608_v53  ;;  %1843 = vmatpush1.bf16.msra.mxu1 %v6379_v5  ;;  %vm3473_vm1 = vcmask 1047559   ;;  %vm3884_vm2 = vcmask 588800  }
  0x64   : > { %6187 = vrot.lane.b32.xlu1 %v6186_v9, %s6662_s17  ;;  %1844 = vmatprep.subr.bf16.mxu1 %v6664_v61  ;;  %v6382_v9 = vld [vmem:[%s9190_s3 + $0x10] sm:$0xff]  }
  0x67   : > { %6192 = vrot.lane.b32.xlu0 %v6191_v41, %s6661_s16  ;;  %v999_v41 = vsel %vm950_vm3, %v996_v40, %v998_v50  ;;  %1845 = vmatpush1.bf16.msra.mxu1 %v6381_v8  ;;  %v6580_v8 = vld [vmem:[%s6822_s25 + $0x30] sm:$0xff] }
  0x68   : > { %6197 = vrot.lane.b32.xlu1 %v6196_v57, %s6663_s23  ;;  %v6236_v55 = vpack.i.bf16 %v1002_v32, %v999_v41  ;;  %1846 = vmatprep.subr.bf16.mxu1 %v6664_v61 }
  0x6b   : > { %6202 = vrot.lane.b32.xlu0 %v6201_v24, %s6660_s26  ;;  %1847 = vmatpush1.bf16.msra.mxu1 %v6382_v9 }
  0x6c   : > { %6207 = vrot.lane.b32.xlu1 %v6206_v46, %s6662_s17  ;;  %1848 = vmatprep.subr.bf16.mxu1 %v6664_v61 }
  0x6f   : > { %6212 = vrot.lane.b32.xlu0 %v6211_v31, %s6661_s16 }
  0x70   : > { %6217 = vrot.lane.b32.xlu1 %v6216_v36, %s6663_s23 }
  0x73   : > { %6222 = vrot.lane.b32.xlu0 %v6221_v13, %s6660_s26 }
  0x74   : > { %6227 = vrot.lane.b32.xlu1 %v6226_v28, %s6662_s17 }
  0x77   : > { %6232 = vrot.lane.b32.xlu0 %v6231_v44, %s6661_s16 }
  0x78   : > { %6237 = vrot.lane.b32.xlu1 %v6236_v55, %s6663_s23 }
  0x7b   : > { %6242 = vrot.lane.b32.xlu0 %v6241_v62, %s6660_s26 }
  0x7c   : > { %6247 = vrot.lane.b32.xlu1 %v6246_v37, %s6662_s17  ;;  %s6667_s17 = smov 16  }
  0x7f   : > { %6252 = vrot.lane.b32.xlu0 %v6251_v4, %s6661_s16  ;;  %s6666_s16 = smov 72  }
  0x80   : > { %6257 = vrot.lane.b32.xlu1 %v6256_v6, %s6663_s23  ;;  %s6668_s23 = smov 88  }
  0x95   : > { %v6023_v10 = vpop.permute.xlu0 %6022 }
  0x96   : > { %v6033_v13 = vpop.permute.xlu1 %6032  ;;  %v6025_v16 = vunpack.i.h.bf16 %v6023_v10  ;;  %v6024_v18 = vunpack.i.l.bf16 %v6023_v10  ;;  %v6581_v10 = vld [vmem:[%s6822_s25 + $0x28] sm:$0xff] }
  0x97   : > { %v6035_v21 = vunpack.i.h.bf16 %v6033_v13  ;;  %v6034_v22 = vunpack.i.l.bf16 %v6033_v13 }
  0x98   : > { %v1081_v33 = vsel %vm1079_vm4, %v6576_v29, %v6025_v16  ;;  %v1080_v34 = vsel %vm1079_vm4, %v6577_v35, %v6024_v18 }
  0x99   : > { %v6028_v19 = vpop.permute.xlu0 %6027 }
  0x9a   : > { %v6030_v23 = vunpack.i.h.bf16 %v6028_v19  ;;  %v6029_v25 = vunpack.i.l.bf16 %v6028_v19  ;;  %v6038_v28 = vpop.permute.xlu1 %6037 }
  0x9b   : > { %v6040_v38 = vunpack.i.h.bf16 %v6038_v28  ;;  %v6039_v39 = vunpack.i.l.bf16 %v6038_v28 }
  0x9c   : > { %v1105_v40 = vsel %vm1104_vm5, %v1080_v34, %v6029_v25  ;;  %v1106_v44 = vsel %vm1104_vm5, %v1081_v33, %v6030_v23  ;;  %v6376_v25 = vld [vmem:[%s9191_s4 + $0x18] sm:$0xff]  }
  0x9d   : > { %v6043_v45 = vpop.permute.xlu0 %6042  ;;  %v1180_v49 = vpack.c.bf16 %v6040_v38, %v6039_v39  ;;  %v1130_v50 = vsel %vm1129_vm6, %v1105_v40, %v6034_v22  ;;  %v1131_v59 = vsel %vm1129_vm6, %v1106_v44, %v6035_v21 }
  0x9e   : > { %v6045_v48 = vunpack.i.h.bf16 %v6043_v45  ;;  %v6044_v30 = vunpack.i.l.bf16 %v6043_v45  ;;  %v6048_v60 = vpop.permute.xlu1 %6047  ;;  %v1155_v62 = vsel %vm1154_vm7, %v1130_v50, %v6039_v39  ;;  %v1156_v63 = vsel %vm1154_vm7, %v1131_v59, %v6040_v38  ;;  %v6377_v59 = vld [vmem:[%s9191_s4 + $0x20] sm:$0xff]  }
  0x9f   : > { %v6050_v2 = vunpack.i.h.bf16 %v6048_v60  ;;  %v6049_v37 = vunpack.i.l.bf16 %v6048_v60  ;;  %5610 = vmatprep.mubr.msk.bf16.mxu0 %vm1321_vm8, %v1180_v49  ;;  %v1179_v7 = vpack.c.bf16 %v1156_v63, %v1155_v62  ;;  %v6582_v60 = vld [vmem:[%s6822_s25 + $0x48] sm:$0xff]  ;;  %v6583_v63 = vld [vmem:[%s6822_s25 + $0x40] sm:$0xff] }
  0xa0   : > { %v1083_v0 = vsel %vm1079_vm4, %v6578_v11, %v6045_v48  ;;  %v1082_v14 = vsel %vm1079_vm4, %v6579_v12, %v6044_v30 }
  0xa1   : > { %v1107_v15 = vsel %vm1104_vm5, %v1082_v14, %v6049_v37  ;;  %v1108_v4 = vsel %vm1104_vm5, %v1083_v0, %v6050_v2  ;;  %v6053_v57 = vpop.permute.xlu0 %6052  ;;  %1397 = vmatmul.mubr.bf16.vlgmr.msra.gmra.mrb[0].mxu0 %v1179_v7  ;;  %v6378_v14 = vld [vmem:[%s9191_s4 + $0x28] sm:$0xff]  }
  0xa2   : > { %v6055_v53 = vunpack.i.h.bf16 %v6053_v57  ;;  %v6054_v43 = vunpack.i.l.bf16 %v6053_v57  ;;  %v6058_v17 = vpop.permute.xlu1 %6057  ;;  %2044 = vmatpush1.bf16.msra.mxu0 %v6373_v1 }
  0xa3   : > { %v6060_v24 = vunpack.i.h.bf16 %v6058_v17  ;;  %v6059_v46 = vunpack.i.l.bf16 %v6058_v17  ;;  %2045 = vmatprep.subr.bf16.mxu0 %v6664_v61 }
  0xa4   : > { %v1132_v47 = vsel %vm1129_vm6, %v1107_v15, %v6054_v43  ;;  %v1133_v51 = vsel %vm1129_vm6, %v1108_v4, %v6055_v53 }
  0xa5   : > { %v1182_v52 = vpack.c.bf16 %v6060_v24, %v6059_v46  ;;  %v6063_v54 = vpop.permute.xlu0 %6062  ;;  %v1157_v31 = vsel %vm1154_vm7, %v1132_v47, %v6059_v46  ;;  %v1158_v36 = vsel %vm1154_vm7, %v1133_v51, %v6060_v24 }
  0xa6   : > { %v6065_v41 = vunpack.i.h.bf16 %v6063_v54  ;;  %v6064_v32 = vunpack.i.l.bf16 %v6063_v54  ;;  %v6068_v55 = vpop.permute.xlu1 %6067  ;;  %v1181_v56 = vpack.c.bf16 %v1158_v36, %v1157_v31  ;;  %2046 = vmatpush1.bf16.msra.mxu0 %v6374_v20  ;;  %v6380_v54 = vld [vmem:[%s9191_s4 + $0x30] sm:$0xff]  }
  0xa7   : > { %v6070_v5 = vunpack.i.h.bf16 %v6068_v55  ;;  %v6069_v6 = vunpack.i.l.bf16 %v6068_v55  ;;  %5611 = vmatprep.mubr.msk.bf16.mxu0 %vm1321_vm8, %v1182_v52  ;;  %2047 = vmatprep.subr.bf16.mxu0 %v6664_v61  ;;  %v6585_v55 = vld [vmem:[%s6822_s25 + $0x50] sm:$0xff] }
  0xa8   : > { %v1085_v9 = vsel %vm1079_vm4, %v6580_v8, %v6065_v41  ;;  %v1084_v13 = vsel %vm1079_vm4, %v6581_v10, %v6064_v32  ;;  %v6584_v41 = vld [vmem:[%s6822_s25 + $0x60] sm:$0xff] }
  0xa9   : > { %v1109_v16 = vsel %vm1104_vm5, %v1084_v13, %v6069_v6  ;;  %v1110_v18 = vsel %vm1104_vm5, %v1085_v9, %v6070_v5  ;;  %v6073_v19 = vpop.permute.xlu0 %6072  ;;  %1407 = vmatmul.mubr.bf16.gmra.mrb[4].mxu0 %v1181_v56 }
  0xaa   : > { %v6075_v21 = vunpack.i.h.bf16 %v6073_v19  ;;  %v6074_v22 = vunpack.i.l.bf16 %v6073_v19  ;;  %v6078_v23 = vpop.permute.xlu1 %6077  ;;  %2048 = vmatpush1.bf16.msra.mxu0 %v6375_v58 }
  0xab   : > { %v6080_v28 = vunpack.i.h.bf16 %v6078_v23  ;;  %v6079_v29 = vunpack.i.l.bf16 %v6078_v23  ;;  %2049 = vmatprep.subr.bf16.mxu0 %v6664_v61 }
  0xac   : > { %v1134_v33 = vsel %vm1129_vm6, %v1109_v16, %v6074_v22  ;;  %v1135_v35 = vsel %vm1129_vm6, %v1110_v18, %v6075_v21 }
  0xad   : > { %v1184_v34 = vpack.c.bf16 %v6080_v28, %v6079_v29  ;;  %v6083_v38 = vpop.permute.xlu0 %6082  ;;  %v1159_v39 = vsel %vm1154_vm7, %v1134_v33, %v6079_v29  ;;  %v1160_v40 = vsel %vm1154_vm7, %v1135_v35, %v6080_v28 }
  0xae   : > { %v6085_v44 = vunpack.i.h.bf16 %v6083_v38  ;;  %v6084_v45 = vunpack.i.l.bf16 %v6083_v38  ;;  %v6088_v49 = vpop.permute.xlu1 %6087  ;;  %v1183_v50 = vpack.c.bf16 %v1160_v40, %v1159_v39  ;;  %2050 = vmatpush1.bf16.msra.mxu0 %v6376_v25  ;;  %v6586_v39 = vld [vmem:[%s6822_s25 + $0x70] sm:$0xff] }
  0xaf   : > { %v6090_v48 = vunpack.i.h.bf16 %v6088_v49  ;;  %v6089_v30 = vunpack.i.l.bf16 %v6088_v49  ;;  %5612 = vmatprep.mubr.msk.bf16.mxu0 %vm1321_vm8, %v1184_v34  ;;  %2051 = vmatprep.subr.bf16.mxu0 %v6664_v61 }
  0xb0   : > { %v1087_v62 = vsel %vm1079_vm4, %v6582_v60, %v6085_v44  ;;  %v1086_v1 = vsel %vm1079_vm4, %v6583_v63, %v6084_v45  ;;  %v6587_v44 = vld [vmem:[%s6822_s25 + $0x68] sm:$0xff] }
  0xb1   : > { %v1111_v2 = vsel %vm1104_vm5, %v1086_v1, %v6089_v30  ;;  %v1112_v37 = vsel %vm1104_vm5, %v1087_v62, %v6090_v48  ;;  %v6093_v7 = vpop.permute.xlu0 %6092  ;;  %1417 = vmatmul.mubr.bf16.gmra.mrb[8].mxu0 %v1183_v50 }
  0xb2   : > { %v6095_v11 = vunpack.i.h.bf16 %v6093_v7  ;;  %v6094_v0 = vunpack.i.l.bf16 %v6093_v7  ;;  %v6098_v12 = vpop.permute.xlu1 %6097  ;;  %2052 = vmatpush1.bf16.msra.mxu0 %v6377_v59 }
  0xb3   : > { %v6100_v15 = vunpack.i.h.bf16 %v6098_v12  ;;  %v6099_v4 = vunpack.i.l.bf16 %v6098_v12  ;;  %2053 = vmatprep.subr.bf16.mxu0 %v6664_v61 }
  0xb4   : > { %v1136_v57 = vsel %vm1129_vm6, %v1111_v2, %v6094_v0  ;;  %v1137_v53 = vsel %vm1129_vm6, %v1112_v37, %v6095_v11 }
  0xb5   : > { %v1186_v43 = vpack.c.bf16 %v6100_v15, %v6099_v4  ;;  %v6103_v17 = vpop.permute.xlu0 %6102  ;;  %v1161_v20 = vsel %vm1154_vm7, %v1136_v57, %v6099_v4  ;;  %v1162_v24 = vsel %vm1154_vm7, %v1137_v53, %v6100_v15 }
  0xb6   : > { %v6105_v46 = vunpack.i.h.bf16 %v6103_v17  ;;  %v6104_v47 = vunpack.i.l.bf16 %v6103_v17  ;;  %v6108_v51 = vpop.permute.xlu1 %6107  ;;  %v1185_v52 = vpack.c.bf16 %v1162_v24, %v1161_v20  ;;  %2054 = vmatpush1.bf16.msra.mxu0 %v6378_v14  ;;  %v6589_v20 = vld [vmem:[%s6822_s25 + $0x80] sm:$0xff] }
  0xb7   : > { %v6110_v31 = vunpack.i.h.bf16 %v6108_v51  ;;  %v6109_v36 = vunpack.i.l.bf16 %v6108_v51  ;;  %5613 = vmatprep.mubr.msk.bf16.mxu0 %vm1321_vm8, %v1186_v43  ;;  %2055 = vmatprep.subr.bf16.mxu0 %v6664_v61  ;;  %v6588_v43 = vld [vmem:[%s6822_s25 + $0x88] sm:$0xff] }
  0xb8   : > { %v1089_v32 = vsel %vm1079_vm4, %v6584_v41, %v6105_v46  ;;  %v1088_v56 = vsel %vm1079_vm4, %v6585_v55, %v6104_v47 }
  0xb9   : > { %v1113_v58 = vsel %vm1104_vm5, %v1088_v56, %v6109_v36  ;;  %v1114_v5 = vsel %vm1104_vm5, %v1089_v32, %v6110_v31  ;;  %v6113_v6 = vpop.permute.xlu0 %6112  ;;  %1427 = vmatmul.mubr.bf16.gmra.mrb[12].mxu0 %v1185_v52 }
  0xba   : > { %v6115_v8 = vunpack.i.h.bf16 %v6113_v6  ;;  %v6114_v9 = vunpack.i.l.bf16 %v6113_v6  ;;  %v6118_v10 = vpop.permute.xlu1 %6117  ;;  %2056 = vmatpush1.bf16.msra.mxu0 %v6380_v54 }
  0xbb   : > { %v6120_v13 = vunpack.i.h.bf16 %v6118_v10  ;;  %v6119_v16 = vunpack.i.l.bf16 %v6118_v10  ;;  %2057 = vmatprep.subr.bf16.mxu0 %v6664_v61 }
  0xbc   : > { %v1138_v18 = vsel %vm1129_vm6, %v1113_v58, %v6114_v9  ;;  %v1139_v19 = vsel %vm1129_vm6, %v1114_v5, %v6115_v8 }
  0xbd   : > { %v1188_v21 = vpack.c.bf16 %v6120_v13, %v6119_v16  ;;  %v6123_v22 = vpop.permute.xlu0 %6122  ;;  %v1163_v23 = vsel %vm1154_vm7, %v1138_v18, %v6119_v16  ;;  %v1164_v25 = vsel %vm1154_vm7, %v1139_v19, %v6120_v13  ;;  %v6590_v19 = vld [vmem:[%s6822_s25 + $0xa0] sm:$0xff] }
  0xbe   : > { %v6125_v28 = vunpack.i.h.bf16 %v6123_v22  ;;  %v6124_v29 = vunpack.i.l.bf16 %v6123_v22  ;;  %v6128_v33 = vpop.permute.xlu1 %6127  ;;  %v1187_v35 = vpack.c.bf16 %v1164_v25, %v1163_v23  ;;  %v6591_v22 = vld [vmem:[%s6822_s25 + $0x90] sm:$0xff] }
  0xbf   : > { %v6130_v34 = vunpack.i.h.bf16 %v6128_v33  ;;  %v6129_v38 = vunpack.i.l.bf16 %v6128_v33  ;;  %5614 = vmatprep.mubr.msk.bf16.mxu0 %vm1321_vm8, %v1188_v21 }
  0xc0   : > { %v1091_v40 = vsel %vm1079_vm4, %v6586_v39, %v6125_v28  ;;  %v1090_v45 = vsel %vm1079_vm4, %v6587_v44, %v6124_v29 }
  0xc1   : > { %v1115_v49 = vsel %vm1104_vm5, %v1090_v45, %v6129_v38  ;;  %v1116_v50 = vsel %vm1104_vm5, %v1091_v40, %v6130_v34  ;;  %v6133_v59 = vpop.permute.xlu0 %6132  ;;  %1437 = vmatmul.mubr.bf16.gmra.mrb[16].mxu0 %v1187_v35 }
  0xc2   : > { %v6135_v48 = vunpack.i.h.bf16 %v6133_v59  ;;  %v6134_v30 = vunpack.i.l.bf16 %v6133_v59  ;;  %v6138_v60 = vpop.permute.xlu1 %6137 }
  0xc3   : > { %v6140_v62 = vunpack.i.h.bf16 %v6138_v60  ;;  %v6139_v63 = vunpack.i.l.bf16 %v6138_v60 }
  0xc4   : > { %v1140_v1 = vsel %vm1129_vm6, %v1115_v49, %v6134_v30  ;;  %v1141_v2 = vsel %vm1129_vm6, %v1116_v50, %v6135_v48 }
  0xc5   : > { %v1190_v37 = vpack.c.bf16 %v6140_v62, %v6139_v63  ;;  %v6143_v7 = vpop.permute.xlu0 %6142  ;;  %v1165_v11 = vsel %vm1154_vm7, %v1140_v1, %v6139_v63  ;;  %v1166_v0 = vsel %vm1154_vm7, %v1141_v2, %v6140_v62  ;;  %v6592_v2 = vld [vmem:[%s6822_s25 + $0xb0] sm:$0xff] }
  0xc6   : > { %v6145_v12 = vunpack.i.h.bf16 %v6143_v7  ;;  %v6144_v14 = vunpack.i.l.bf16 %v6143_v7  ;;  %v6148_v15 = vpop.permute.xlu1 %6147  ;;  %v1189_v4 = vpack.c.bf16 %v1166_v0, %v1165_v11  ;;  %v6593_v7 = vld [vmem:[%s6822_s25 + $0xa8] sm:$0xff] }
  0xc7   : > { %v6150_v57 = vunpack.i.h.bf16 %v6148_v15  ;;  %v6149_v53 = vunpack.i.l.bf16 %v6148_v15  ;;  %5615 = vmatprep.mubr.msk.bf16.mxu0 %vm1321_vm8, %v1190_v37 }
  0xc8   : > { %v1093_v17 = vsel %vm1079_vm4, %v6588_v43, %v6145_v12  ;;  %v1092_v24 = vsel %vm1079_vm4, %v6589_v20, %v6144_v14 }
  0xc9   : > { %v1117_v46 = vsel %vm1104_vm5, %v1092_v24, %v6149_v53  ;;  %v1118_v47 = vsel %vm1104_vm5, %v1093_v17, %v6150_v57  ;;  %v6153_v51 = vpop.permute.xlu0 %6152  ;;  %1447 = vmatmul.mubr.bf16.gmra.mrb[20].mxu0 %v1189_v4 }
  0xca   : > { %v6155_v52 = vunpack.i.h.bf16 %v6153_v51  ;;  %v6154_v54 = vunpack.i.l.bf16 %v6153_v51  ;;  %v6158_v31 = vpop.permute.xlu1 %6157 }
  0xcb   : > { %v6160_v36 = vunpack.i.h.bf16 %v6158_v31  ;;  %v6159_v41 = vunpack.i.l.bf16 %v6158_v31 }
  0xcc   : > { %v1142_v32 = vsel %vm1129_vm6, %v1117_v46, %v6154_v54  ;;  %v1143_v55 = vsel %vm1129_vm6, %v1118_v47, %v6155_v52 }
  0xcd   : > { %v1192_v56 = vpack.c.bf16 %v6160_v36, %v6159_v41  ;;  %v6163_v58 = vpop.permute.xlu0 %6162  ;;  %v1167_v5 = vsel %vm1154_vm7, %v1142_v32, %v6159_v41  ;;  %v1168_v6 = vsel %vm1154_vm7, %v1143_v55, %v6160_v36 }
  0xce   : > { %v6165_v8 = vunpack.i.h.bf16 %v6163_v58  ;;  %v6164_v9 = vunpack.i.l.bf16 %v6163_v58  ;;  %v6168_v10 = vpop.permute.xlu1 %6167  ;;  %v1191_v13 = vpack.c.bf16 %v1168_v6, %v1167_v5 }
  0xcf   : > { %v6170_v16 = vunpack.i.h.bf16 %v6168_v10  ;;  %v6169_v18 = vunpack.i.l.bf16 %v6168_v10  ;;  %5616 = vmatprep.mubr.msk.bf16.mxu0 %vm1321_vm8, %v1192_v56 }
  0xd0   : > { %v1095_v21 = vsel %vm1079_vm4, %v6590_v19, %v6165_v8  ;;  %v1094_v23 = vsel %vm1079_vm4, %v6591_v22, %v6164_v9 }
  0xd1   : > { %v1119_v25 = vsel %vm1104_vm5, %v1094_v23, %v6169_v18  ;;  %v1120_v28 = vsel %vm1104_vm5, %v1095_v21, %v6170_v16  ;;  %v6173_v29 = vpop.permute.xlu0 %6172  ;;  %1457 = vmatmul.mubr.bf16.gmra.mrb[24].mxu0 %v1191_v13 }
  0xd2   : > { %v6175_v33 = vunpack.i.h.bf16 %v6173_v29  ;;  %v6174_v35 = vunpack.i.l.bf16 %v6173_v29  ;;  %v6178_v34 = vpop.permute.xlu1 %6177 }
  0xd3   : > { %v6180_v38 = vunpack.i.h.bf16 %v6178_v34  ;;  %v6179_v39 = vunpack.i.l.bf16 %v6178_v34 }
  0xd4   : > { %v1144_v40 = vsel %vm1129_vm6, %v1119_v25, %v6174_v35  ;;  %v1145_v44 = vsel %vm1129_vm6, %v1120_v28, %v6175_v33 }
  0xd5   : > { %v1194_v45 = vpack.c.bf16 %v6180_v38, %v6179_v39  ;;  %v6183_v49 = vpop.permute.xlu0 %6182  ;;  %v1169_v50 = vsel %vm1154_vm7, %v1144_v40, %v6179_v39  ;;  %v1170_v59 = vsel %vm1154_vm7, %v1145_v44, %v6180_v38  ;;  %v6594_v38 = vld [vmem:[%s6822_s25 + $0xd0] sm:$0xff] }
  0xd6   : > { %v6185_v48 = vunpack.i.h.bf16 %v6183_v49  ;;  %v6184_v30 = vunpack.i.l.bf16 %v6183_v49  ;;  %v6188_v60 = vpop.permute.xlu1 %6187  ;;  %v1193_v62 = vpack.c.bf16 %v1170_v59, %v1169_v50 }
  0xd7   : > { %v6190_v63 = vunpack.i.h.bf16 %v6188_v60  ;;  %v6189_v1 = vunpack.i.l.bf16 %v6188_v60  ;;  %5617 = vmatprep.mubr.msk.bf16.mxu0 %vm1321_vm8, %v1194_v45 }
  0xd8   : > { %v1097_v37 = vsel %vm1079_vm4, %v6592_v2, %v6185_v48  ;;  %v1096_v11 = vsel %vm1079_vm4, %v6593_v7, %v6184_v30 }
  0xd9   : > { %v1121_v0 = vsel %vm1104_vm5, %v1096_v11, %v6189_v1  ;;  %v1122_v12 = vsel %vm1104_vm5, %v1097_v37, %v6190_v63  ;;  %v6193_v14 = vpop.permute.xlu0 %6192  ;;  %1467 = vmatmul.mubr.bf16.gmra.mrb[28].mxu0 %v1193_v62 }
  0xda   : > { %v6195_v15 = vunpack.i.h.bf16 %v6193_v14  ;;  %v6194_v4 = vunpack.i.l.bf16 %v6193_v14  ;;  %v6198_v57 = vpop.permute.xlu1 %6197 }
  0xdb   : > { %v6200_v53 = vunpack.i.h.bf16 %v6198_v57  ;;  %v6199_v43 = vunpack.i.l.bf16 %v6198_v57 }
  0xdc   : > { %v1146_v17 = vsel %vm1129_vm6, %v1121_v0, %v6194_v4  ;;  %v1147_v20 = vsel %vm1129_vm6, %v1122_v12, %v6195_v15  ;;  %v6595_v4 = vld [vmem:[%s6822_s25 + $0xe8] sm:$0xff] }
  0xdd   : > { %v1196_v24 = vpack.c.bf16 %v6200_v53, %v6199_v43  ;;  %v6203_v46 = vpop.permute.xlu0 %6202  ;;  %v1171_v47 = vsel %vm1154_vm7, %v1146_v17, %v6199_v43  ;;  %v1172_v51 = vsel %vm1154_vm7, %v1147_v20, %v6200_v53 }
  0xde   : > { %v6205_v52 = vunpack.i.h.bf16 %v6203_v46  ;;  %v6204_v54 = vunpack.i.l.bf16 %v6203_v46  ;;  %v6208_v31 = vpop.permute.xlu1 %6207  ;;  %v1195_v36 = vpack.c.bf16 %v1172_v51, %v1171_v47 }
  0xdf   : > { %v6210_v41 = vunpack.i.h.bf16 %v6208_v31  ;;  %v6209_v32 = vunpack.i.l.bf16 %v6208_v31  ;;  %5618 = vmatprep.mubr.msk.bf16.mxu0 %vm1321_vm8, %v1196_v24 }
  0xe0   : > { %v1099_v55 = vsel %vm1079_vm4, %v7085_v27, %v6205_v52  ;;  %v1098_v56 = vsel %vm1079_vm4, %v7082_v26, %v6204_v54 }
  0xe1   : > { %v1123_v58 = vsel %vm1104_vm5, %v1098_v56, %v6209_v32  ;;  %v1124_v5 = vsel %vm1104_vm5, %v1099_v55, %v6210_v41  ;;  %v6213_v6 = vpop.permute.xlu0 %6212  ;;  %1477 = vmatmul.mubr.bf16.gmra.mrb[32].mxu0 %v1195_v36  ;;  %v6383_v41 = vld [vmem:[%s9190_s3 + $0x18] sm:$0xff]   ;;  %v6385_v55 = vld [vmem:[%s9190_s3 + $0x20] sm:$0xff]   ;;  %v6386_v56 = vld [vmem:[%s9190_s3 + $0x28] sm:$0xff]  }
  0xe2   : > { %v6215_v8 = vunpack.i.h.bf16 %v6213_v6  ;;  %v6214_v9 = vunpack.i.l.bf16 %v6213_v6  ;;  %v6218_v10 = vpop.permute.xlu1 %6217  ;;  %1849 = vmatpush1.bf16.msra.mxu1 %v6383_v41  ;;  %v6389_v6 = vld [vmem:[%s9190_s3 + $0x38] sm:$0xff]  }
  0xe3   : > { %v6220_v13 = vunpack.i.h.bf16 %v6218_v10  ;;  %v6219_v16 = vunpack.i.l.bf16 %v6218_v10  ;;  %1850 = vmatprep.subr.bf16.mxu1 %v6664_v61  ;;  %v1223_v10 = vlaneseq }
  0xe4   : > { %v1148_v18 = vsel %vm1129_vm6, %v1123_v58, %v6214_v9  ;;  %v1149_v19 = vsel %vm1129_vm6, %v1124_v5, %v6215_v8  ;;  %v6387_v58 = vld [vmem:[%s9190_s3 + $0x30] sm:$0xff]   ;;  %v6384_v5 = vld [vmem:[%s9191_s4 + $0x38] sm:$0xff]   ;;  %v6388_v8 = vld [vmem:[%s9191_s4 + $0x40] sm:$0xff]  }
  0xe5   : > { %v1198_v27 = vpack.c.bf16 %v6220_v13, %v6219_v16  ;;  %v6223_v21 = vpop.permute.xlu0 %6222  ;;  %v1173_v26 = vsel %vm1154_vm7, %v1148_v18, %v6219_v16  ;;  %v1174_v22 = vsel %vm1154_vm7, %v1149_v19, %v6220_v13  ;;  %2058 = vmatpush1.bf16.msra.mxu0 %v6384_v5  ;;  %v6390_v9 = vld [vmem:[%s9190_s3 + $0x40] sm:$0xff]   ;;  %v7485_v13 = vshrl.u32 %v1223_v10, 7 }
  0xe6   : > { %v6225_v23 = vunpack.i.h.bf16 %v6223_v21  ;;  %v6224_v25 = vunpack.i.l.bf16 %v6223_v21  ;;  %v6228_v28 = vpop.permute.xlu1 %6227  ;;  %v1197_v29 = vpack.c.bf16 %v1174_v22, %v1173_v26  ;;  %1851 = vmatpush1.bf16.msra.mxu1 %v6385_v55  ;;  %2059 = vmatprep.subr.bf16.mxu0 %v6664_v61  ;;  %v1221_v18 = vld [vmem:[%s9189_s2] sm:$0x3] }
  0xe7   : > { %v6230_v33 = vunpack.i.h.bf16 %v6228_v28  ;;  %v6229_v35 = vunpack.i.l.bf16 %v6228_v28  ;;  %5619 = vmatprep.mubr.msk.bf16.mxu0 %vm1321_vm8, %v1198_v27  ;;  %1852 = vmatprep.subr.bf16.mxu1 %v6664_v61  ;;  %9286 = vst [vmem:[#allocation10_spill] sm:$0xff] %v7485_v13  ;;  %v1225_v16 = vsub.s32 0, %v7485_v13 }
  0xe8   : > { %v1101_v34 = vsel %vm1079_vm4, %v7116_v42, %v6225_v23  ;;  %v1100_v39 = vsel %vm1079_vm4, %v6594_v38, %v6224_v25 }
  0xe9   : > { %v1125_v40 = vsel %vm1104_vm5, %v1100_v39, %v6229_v35  ;;  %v1126_v44 = vsel %vm1104_vm5, %v1101_v34, %v6230_v33  ;;  %v6233_v45 = vpop.permute.xlu0 %6232  ;;  %1487 = vmatmul.mubr.bf16.gmra.mrb[36].mxu0 %v1197_v29  ;;  %v7492_v19 = vrot.slane %v1221_v18, %v1225_v16 }
  0xea   : > { %v6235_v49 = vunpack.i.h.bf16 %v6233_v45  ;;  %v6234_v50 = vunpack.i.l.bf16 %v6233_v45  ;;  %v6238_v59 = vpop.permute.xlu1 %6237  ;;  %1853 = vmatpush1.bf16.msra.mxu1 %v6386_v56  ;;  %2060 = vmatpush1.bf16.msra.mxu0 %v6388_v8 }
  0xeb   : > { %v6240_v48 = vunpack.i.h.bf16 %v6238_v59  ;;  %v6239_v30 = vunpack.i.l.bf16 %v6238_v59  ;;  %1854 = vmatprep.subr.bf16.mxu1 %v6664_v61 }
  0xec   : > { %v1150_v60 = vsel %vm1129_vm6, %v1125_v40, %v6234_v50  ;;  %v1151_v62 = vsel %vm1129_vm6, %v1126_v44, %v6235_v49 }
  0xed   : > { %v1200_v42 = vpack.c.bf16 %v6240_v48, %v6239_v30  ;;  %v6243_v63 = vpop.permute.xlu0 %6242  ;;  %v1175_v1 = vsel %vm1154_vm7, %v1150_v60, %v6239_v30  ;;  %v1176_v2 = vsel %vm1154_vm7, %v1151_v62, %v6240_v48 }
  0xee   : > { %v6245_v37 = vunpack.i.h.bf16 %v6243_v63  ;;  %v6244_v7 = vunpack.i.l.bf16 %v6243_v63  ;;  %v6248_v11 = vpop.permute.xlu1 %6247  ;;  %v1199_v0 = vpack.c.bf16 %v1176_v2, %v1175_v1  ;;  %1855 = vmatpush1.bf16.msra.mxu1 %v6387_v58 }
  0xef   : > { %v6250_v12 = vunpack.i.h.bf16 %v6248_v11  ;;  %v6249_v14 = vunpack.i.l.bf16 %v6248_v11  ;;  %5620 = vmatprep.mubr.msk.bf16.mxu0 %vm1321_vm8, %v1200_v42  ;;  %1856 = vmatprep.subr.bf16.mxu1 %v6664_v61 }
  0xf0   : > { %v1103_v15 = vsel %vm1079_vm4, %v7148_v3, %v6245_v37  ;;  %v1102_v57 = vsel %vm1079_vm4, %v6595_v4, %v6244_v7  ;;  %vm3901_vm4 = vcmask 719872  }
  0xf1   : > { %v1127_v53 = vsel %vm1104_vm5, %v1102_v57, %v6249_v14  ;;  %v1128_v43 = vsel %vm1104_vm5, %v1103_v15, %v6250_v12  ;;  %v6253_v17 = vpop.permute.xlu0 %6252  ;;  %1497 = vmatmul.mubr.bf16.gmra.mrb[40].mxu0 %v1199_v0  ;;  %vm3910_vm5 = vcmask 261120  }
  0xf2   : > { %v6255_v20 = vunpack.i.h.bf16 %v6253_v17  ;;  %v6254_v24 = vunpack.i.l.bf16 %v6253_v17  ;;  %v6258_v46 = vpop.permute.xlu1 %6257  ;;  %1857 = vmatpush1.bf16.msra.mxu1 %v6389_v6 }
  0xf3   : > { %v6260_v47 = vunpack.i.h.bf16 %v6258_v46  ;;  %v6259_v51 = vunpack.i.l.bf16 %v6258_v46  ;;  %1858 = vmatprep.subr.bf16.mxu1 %v6664_v61  ;;  %v1229_v61 = vsub.s32 1, %v7485_v13 }
  0xf4   : > { %v1152_v52 = vsel %vm1129_vm6, %v1127_v53, %v6254_v24  ;;  %v1153_v54 = vsel %vm1129_vm6, %v1128_v43, %v6255_v20 }
  0xf5   : > { %v1202_v31 = vpack.c.bf16 %v6260_v47, %v6259_v51  ;;  %v1177_v3 = vsel %vm1154_vm7, %v1152_v52, %v6259_v51  ;;  %v1178_v36 = vsel %vm1154_vm7, %v1153_v54, %v6260_v47  ;;  %v7494_v27 = vrot.slane %v1221_v18, %v1229_v61 }
  0xf6   : > { %v1201_v32 = vpack.c.bf16 %v1178_v36, %v1177_v3  ;;  %1859 = vmatpush1.bf16.msra.mxu1 %v6390_v9  ;;  %vm4118_vm7 = vcmask 850944  }
  0xf7   : > { %5621 = vmatprep.mubr.msk.bf16.mxu0 %vm1321_vm8, %v1202_v31  ;;  %vm4742_vm8 = vcmask 517120  }
  0xf9   : > { %1507 = vmatmul.mubr.bf16.gmra.mrb[44].mxu0 %v1201_v32 }
 0x174   : > { %v1398_v21 = vpop.f32.mrb[0].mxu0 }
 0x175   : > { %v1399_v26 = vadd.f32 %v1398_v21, %v7492_v19  ;;  %v1400_v22 = vpop.f32.mrb[1].mxu0 }
 0x176   : > { %v1401_v23 = vadd.f32 %v1400_v22, %v7494_v27  ;;  %v1402_v25 = vpop.f32.mrb[2].mxu0 }
 0x177   : > { %v1517_v28 = vmul.f32 0.5, %v1399_v26  ;;  %v1403_v29 = vadd.f32 %v1402_v25, %v7492_v19  ;;  %v1404_v33 = vpop.f32.mrb[3].mxu0 }
 0x178   : > { %v1518_v35 = vmul.f32 0.5, %v1401_v23  ;;  %v1405_v34 = vadd.f32 %v1404_v33, %v7494_v27 }
 0x179   : > { %6460 = vtanh.f32 %v1517_v28  ;;  %v1519_v38 = vmul.f32 0.5, %v1403_v29 }
 0x17a   : > { %6462 = vtanh.f32 %v1518_v35  ;;  %v1520_v39 = vmul.f32 0.5, %v1405_v34 }
 0x17b   : > { %6464 = vtanh.f32 %v1519_v38 }
 0x17c   : > { %6466 = vtanh.f32 %v1520_v39  ;;  %v1408_v40 = vpop.f32.mrb[4].mxu0 }
 0x17d   : > { %v1409_v44 = vadd.f32 %v1408_v40, %v7492_v19  ;;  %v1410_v45 = vpop.f32.mrb[5].mxu0 }
 0x17e   : > { %v1411_v49 = vadd.f32 %v1410_v45, %v7494_v27  ;;  %v1412_v50 = vpop.f32.mrb[6].mxu0 }
 0x17f   : > { %v1521_v59 = vmul.f32 0.5, %v1409_v44  ;;  %v1413_v48 = vadd.f32 %v1412_v50, %v7492_v19  ;;  %v1414_v30 = vpop.f32.mrb[7].mxu0 }
 0x180   : > { %v1522_v60 = vmul.f32 0.5, %v1411_v49  ;;  %v1415_v62 = vadd.f32 %v1414_v30, %v7494_v27 }
 0x181   : > { %6468 = vtanh.f32 %v1521_v59  ;;  %v1523_v42 = vmul.f32 0.5, %v1413_v48 }
 0x182   : > { %6470 = vtanh.f32 %v1522_v60  ;;  %v1524_v63 = vmul.f32 0.5, %v1415_v62 }
 0x183   : > { %v6461_v1 = vpop.eup %6460  ;;  %6472 = vtanh.f32 %v1523_v42 }
 0x184   : > { %v6463_v2 = vpop.eup %6462  ;;  %v1613_v37 = vmul.f32 0.5, %v6461_v1  ;;  %6474 = vtanh.f32 %v1524_v63  ;;  %v1418_v7 = vpop.f32.mrb[8].mxu0 }
 0x185   : > { %v6465_v11 = vpop.eup %6464  ;;  %v1419_v0 = vadd.f32 %v1418_v7, %v7492_v19  ;;  %v1420_v12 = vpop.f32.mrb[9].mxu0  ;;  %v1614_v14 = vmul.f32 0.5, %v6463_v2 }
 0x186   : > { %v6467_v15 = vpop.eup %6466  ;;  %v1615_v4 = vmul.f32 0.5, %v6465_v11  ;;  %v1421_v57 = vadd.f32 %v1420_v12, %v7494_v27  ;;  %v1422_v53 = vpop.f32.mrb[10].mxu0  ;;  %v1661_v46 = vadd.f32 0.5, %v1613_v37 }
 0x187   : > { %v1525_v43 = vmul.f32 0.5, %v1419_v0  ;;  %v1423_v17 = vadd.f32 %v1422_v53, %v7492_v19  ;;  %v1424_v20 = vpop.f32.mrb[11].mxu0  ;;  %v1616_v24 = vmul.f32 0.5, %v6467_v15  ;;  %v1662_v31 = vadd.f32 0.5, %v1614_v14 }
 0x188   : > { %v1663_v47 = vadd.f32 0.5, %v1615_v4  ;;  %v1526_v51 = vmul.f32 0.5, %v1421_v57  ;;  %v1425_v52 = vadd.f32 %v1424_v20, %v7494_v27 }
 0x189   : > { %6476 = vtanh.f32 %v1525_v43  ;;  %v1527_v54 = vmul.f32 0.5, %v1423_v17  ;;  %v1664_v3 = vadd.f32 0.5, %v1616_v24 }
 0x18a   : > { %6478 = vtanh.f32 %v1526_v51  ;;  %v1528_v36 = vmul.f32 0.5, %v1425_v52  ;;  %v1709_v41 = vpack.c.bf16 %v1663_v47, %v1661_v46 }
 0x18b   : > { %v6469_v32 = vpop.eup %6468  ;;  %6480 = vtanh.f32 %v1527_v54  ;;  %v1710_v55 = vpack.c.bf16 %v1664_v3, %v1662_v31 }
 0x18c   : > { %v6471_v56 = vpop.eup %6470  ;;  %v1617_v58 = vmul.f32 0.5, %v6469_v32  ;;  %6482 = vtanh.f32 %v1528_v36  ;;  %v1428_v5 = vpop.f32.mrb[12].mxu0 }
 0x18d   : > { %v6473_v6 = vpop.eup %6472  ;;  %v1618_v8 = vmul.f32 0.5, %v6471_v56  ;;  %v1429_v9 = vadd.f32 %v1428_v5, %v7492_v19  ;;  %v1430_v10 = vpop.f32.mrb[13].mxu0  ;;  %5631 = vmatprep.mubr.msk.bf16.mxu1 %vm1805_vm9, %v1710_v55  ;;  %5652 = vmatprep.mubr.msk.bf16.mxu0 %vm1805_vm9, %v1710_v55 }
 0x18e   : > { %v6475_v16 = vpop.eup %6474  ;;  %v1619_v18 = vmul.f32 0.5, %v6473_v6  ;;  %v1431_v61 = vadd.f32 %v1430_v10, %v7494_v27  ;;  %v1432_v21 = vpop.f32.mrb[14].mxu0  ;;  %1875 = vmatmul.mubr.bf16.vlgmr.msra.gmra.mrb[0].mxu1 %v1709_v41  ;;  %2076 = vmatmul.mubr.bf16.vlgmr.msra.gmra.mrb[48].mxu0 %v1709_v41  ;;  %v1665_v28 = vadd.f32 0.5, %v1617_v58 }
 0x18f   : > { %v1620_v26 = vmul.f32 0.5, %v6475_v16  ;;  %v1529_v22 = vmul.f32 0.5, %v1429_v9  ;;  %v1433_v23 = vadd.f32 %v1432_v21, %v7492_v19  ;;  %v1434_v25 = vpop.f32.mrb[15].mxu0  ;;  %v1666_v34 = vadd.f32 0.5, %v1618_v8 }
 0x190   : > { %v1667_v29 = vadd.f32 0.5, %v1619_v18  ;;  %v1530_v33 = vmul.f32 0.5, %v1431_v61  ;;  %v1435_v35 = vadd.f32 %v1434_v25, %v7494_v27 }
 0x191   : > { %v1668_v38 = vadd.f32 0.5, %v1620_v26  ;;  %6484 = vtanh.f32 %v1529_v22  ;;  %v1531_v39 = vmul.f32 0.5, %v1433_v23 }
 0x192   : > { %6486 = vtanh.f32 %v1530_v33  ;;  %v1532_v40 = vmul.f32 0.5, %v1435_v35  ;;  %v1711_v44 = vpack.c.bf16 %v1667_v29, %v1665_v28 }
 0x193   : > { %v6477_v45 = vpop.eup %6476  ;;  %v1712_v49 = vpack.c.bf16 %v1668_v38, %v1666_v34  ;;  %6488 = vtanh.f32 %v1531_v39 }
 0x194   : > { %v6479_v50 = vpop.eup %6478  ;;  %v1621_v59 = vmul.f32 0.5, %v6477_v45  ;;  %6490 = vtanh.f32 %v1532_v40  ;;  %v1438_v48 = vpop.f32.mrb[16].mxu0 }
 0x195   : > { %v6481_v30 = vpop.eup %6480  ;;  %v1622_v60 = vmul.f32 0.5, %v6479_v50  ;;  %v1439_v62 = vadd.f32 %v1438_v48, %v7492_v19  ;;  %v1440_v42 = vpop.f32.mrb[17].mxu0  ;;  %5632 = vmatprep.mubr.msk.bf16.mxu1 %vm1805_vm9, %v1712_v49  ;;  %5653 = vmatprep.mubr.msk.bf16.mxu0 %vm1805_vm9, %v1712_v49 }
 0x196   : > { %v6483_v63 = vpop.eup %6482  ;;  %v1623_v1 = vmul.f32 0.5, %v6481_v30  ;;  %v1441_v2 = vadd.f32 %v1440_v42, %v7494_v27  ;;  %v1442_v37 = vpop.f32.mrb[18].mxu0  ;;  %1883 = vmatmul.mubr.bf16.gmra.mrb[4].mxu1 %v1711_v44  ;;  %2084 = vmatmul.mubr.bf16.gmra.mrb[52].mxu0 %v1711_v44  ;;  %v1669_v14 = vadd.f32 0.5, %v1621_v59 }
 0x197   : > { %v1624_v7 = vmul.f32 0.5, %v6483_v63  ;;  %v1533_v11 = vmul.f32 0.5, %v1439_v62  ;;  %v1443_v0 = vadd.f32 %v1442_v37, %v7492_v19  ;;  %v1444_v12 = vpop.f32.mrb[19].mxu0  ;;  %v1670_v53 = vadd.f32 0.5, %v1622_v60 }
 0x198   : > { %v1671_v15 = vadd.f32 0.5, %v1623_v1  ;;  %v1534_v4 = vmul.f32 0.5, %v1441_v2  ;;  %v1445_v57 = vadd.f32 %v1444_v12, %v7494_v27 }
 0x199   : > { %v1672_v43 = vadd.f32 0.5, %v1624_v7  ;;  %6492 = vtanh.f32 %v1533_v11  ;;  %v1535_v17 = vmul.f32 0.5, %v1443_v0 }
 0x19a   : > { %6494 = vtanh.f32 %v1534_v4  ;;  %v1536_v20 = vmul.f32 0.5, %v1445_v57  ;;  %v1713_v24 = vpack.c.bf16 %v1671_v15, %v1669_v14 }
 0x19b   : > { %v6485_v46 = vpop.eup %6484  ;;  %v1714_v47 = vpack.c.bf16 %v1672_v43, %v1670_v53  ;;  %6496 = vtanh.f32 %v1535_v17 }
 0x19c   : > { %v6487_v51 = vpop.eup %6486  ;;  %v1625_v52 = vmul.f32 0.5, %v6485_v46  ;;  %6498 = vtanh.f32 %v1536_v20  ;;  %v1448_v54 = vpop.f32.mrb[20].mxu0 }
 0x19d   : > { %v6489_v31 = vpop.eup %6488  ;;  %v1626_v3 = vmul.f32 0.5, %v6487_v51  ;;  %v1449_v36 = vadd.f32 %v1448_v54, %v7492_v19  ;;  %v1450_v41 = vpop.f32.mrb[21].mxu0  ;;  %5633 = vmatprep.mubr.msk.bf16.mxu1 %vm1805_vm9, %v1714_v47  ;;  %5654 = vmatprep.mubr.msk.bf16.mxu0 %vm1805_vm9, %v1714_v47 }
 0x19e   : > { %v6491_v32 = vpop.eup %6490  ;;  %v1627_v55 = vmul.f32 0.5, %v6489_v31  ;;  %v1451_v56 = vadd.f32 %v1450_v41, %v7494_v27  ;;  %v1452_v58 = vpop.f32.mrb[22].mxu0  ;;  %1891 = vmatmul.mubr.bf16.gmra.mrb[8].mxu1 %v1713_v24  ;;  %2092 = vmatmul.mubr.bf16.gmra.mrb[56].mxu0 %v1713_v24  ;;  %v1673_v10 = vadd.f32 0.5, %v1625_v52 }
 0x19f   : > { %v1628_v5 = vmul.f32 0.5, %v6491_v32  ;;  %v1537_v6 = vmul.f32 0.5, %v1449_v36  ;;  %v1453_v8 = vadd.f32 %v1452_v58, %v7492_v19  ;;  %v1454_v9 = vpop.f32.mrb[23].mxu0  ;;  %v1674_v21 = vadd.f32 0.5, %v1626_v3 }
 0x1a0   : > { %v1675_v16 = vadd.f32 0.5, %v1627_v55  ;;  %v1538_v18 = vmul.f32 0.5, %v1451_v56  ;;  %v1455_v61 = vadd.f32 %v1454_v9, %v7494_v27 }
 0x1a1   : > { %v1676_v26 = vadd.f32 0.5, %v1628_v5  ;;  %6500 = vtanh.f32 %v1537_v6  ;;  %v1539_v22 = vmul.f32 0.5, %v1453_v8 }
 0x1a2   : > { %6502 = vtanh.f32 %v1538_v18  ;;  %v1540_v23 = vmul.f32 0.5, %v1455_v61  ;;  %v1715_v25 = vpack.c.bf16 %v1675_v16, %v1673_v10 }
 0x1a3   : > { %v6493_v28 = vpop.eup %6492  ;;  %v1716_v29 = vpack.c.bf16 %v1676_v26, %v1674_v21  ;;  %6504 = vtanh.f32 %v1539_v22 }
 0x1a4   : > { %v6495_v33 = vpop.eup %6494  ;;  %v1629_v35 = vmul.f32 0.5, %v6493_v28  ;;  %6506 = vtanh.f32 %v1540_v23  ;;  %v1458_v34 = vpop.f32.mrb[24].mxu0 }
 0x1a5   : > { %v6497_v38 = vpop.eup %6496  ;;  %v1630_v39 = vmul.f32 0.5, %v6495_v33  ;;  %v1459_v40 = vadd.f32 %v1458_v34, %v7492_v19  ;;  %v1460_v44 = vpop.f32.mrb[25].mxu0  ;;  %5634 = vmatprep.mubr.msk.bf16.mxu1 %vm1805_vm9, %v1716_v29  ;;  %5655 = vmatprep.mubr.msk.bf16.mxu0 %vm1805_vm9, %v1716_v29 }
 0x1a6   : > { %v6499_v45 = vpop.eup %6498  ;;  %v1631_v49 = vmul.f32 0.5, %v6497_v38  ;;  %v1461_v50 = vadd.f32 %v1460_v44, %v7494_v27  ;;  %v1462_v59 = vpop.f32.mrb[26].mxu0  ;;  %1899 = vmatmul.mubr.bf16.gmra.mrb[12].mxu1 %v1715_v25  ;;  %2100 = vmatmul.mubr.bf16.gmra.mrb[60].mxu0 %v1715_v25  ;;  %v1677_v42 = vadd.f32 0.5, %v1629_v35 }
 0x1a7   : > { %v1632_v48 = vmul.f32 0.5, %v6499_v45  ;;  %v1541_v30 = vmul.f32 0.5, %v1459_v40  ;;  %v1463_v60 = vadd.f32 %v1462_v59, %v7492_v19  ;;  %v1464_v62 = vpop.f32.mrb[27].mxu0  ;;  %v1678_v37 = vadd.f32 0.5, %v1630_v39 }
 0x1a8   : > { %v1679_v63 = vadd.f32 0.5, %v1631_v49  ;;  %v1542_v1 = vmul.f32 0.5, %v1461_v50  ;;  %v1465_v2 = vadd.f32 %v1464_v62, %v7494_v27 }
 0x1a9   : > { %v1680_v7 = vadd.f32 0.5, %v1632_v48  ;;  %6508 = vtanh.f32 %v1541_v30  ;;  %v1543_v11 = vmul.f32 0.5, %v1463_v60 }
 0x1aa   : > { %6510 = vtanh.f32 %v1542_v1  ;;  %v1544_v0 = vmul.f32 0.5, %v1465_v2  ;;  %v1717_v12 = vpack.c.bf16 %v1679_v63, %v1677_v42 }
 0x1ab   : > { %v6501_v14 = vpop.eup %6500  ;;  %v1718_v15 = vpack.c.bf16 %v1680_v7, %v1678_v37  ;;  %6512 = vtanh.f32 %v1543_v11 }
 0x1ac   : > { %v6503_v4 = vpop.eup %6502  ;;  %v1633_v57 = vmul.f32 0.5, %v6501_v14  ;;  %6514 = vtanh.f32 %v1544_v0  ;;  %v1468_v53 = vpop.f32.mrb[28].mxu0 }
 0x1ad   : > { %v6505_v43 = vpop.eup %6504  ;;  %v1634_v17 = vmul.f32 0.5, %v6503_v4  ;;  %v1469_v20 = vadd.f32 %v1468_v53, %v7492_v19  ;;  %v1470_v24 = vpop.f32.mrb[29].mxu0  ;;  %5635 = vmatprep.mubr.msk.bf16.mxu1 %vm1805_vm9, %v1718_v15  ;;  %5656 = vmatprep.mubr.msk.bf16.mxu0 %vm1805_vm9, %v1718_v15 }
 0x1ae   : > { %v6507_v46 = vpop.eup %6506  ;;  %v1635_v47 = vmul.f32 0.5, %v6505_v43  ;;  %v1471_v51 = vadd.f32 %v1470_v24, %v7494_v27  ;;  %v1472_v52 = vpop.f32.mrb[30].mxu0  ;;  %1907 = vmatmul.mubr.bf16.gmra.mrb[16].mxu1 %v1717_v12  ;;  %2108 = vmatmul.mubr.bf16.gmra.mrb[64].mxu0 %v1717_v12  ;;  %v1681_v41 = vadd.f32 0.5, %v1633_v57 }
 0x1af   : > { %v1636_v54 = vmul.f32 0.5, %v6507_v46  ;;  %v1545_v31 = vmul.f32 0.5, %v1469_v20  ;;  %v1473_v3 = vadd.f32 %v1472_v52, %v7492_v19  ;;  %v1474_v36 = vpop.f32.mrb[31].mxu0  ;;  %v1682_v58 = vadd.f32 0.5, %v1634_v17 }
 0x1b0   : > { %v1683_v32 = vadd.f32 0.5, %v1635_v47  ;;  %v1546_v55 = vmul.f32 0.5, %v1471_v51  ;;  %v1475_v56 = vadd.f32 %v1474_v36, %v7494_v27 }
 0x1b1   : > { %v1684_v5 = vadd.f32 0.5, %v1636_v54  ;;  %6516 = vtanh.f32 %v1545_v31  ;;  %v1547_v6 = vmul.f32 0.5, %v1473_v3 }
 0x1b2   : > { %6518 = vtanh.f32 %v1546_v55  ;;  %v1548_v8 = vmul.f32 0.5, %v1475_v56  ;;  %v1719_v9 = vpack.c.bf16 %v1683_v32, %v1681_v41 }
 0x1b3   : > { %v6509_v10 = vpop.eup %6508  ;;  %v1720_v16 = vpack.c.bf16 %v1684_v5, %v1682_v58  ;;  %6520 = vtanh.f32 %v1547_v6 }
 0x1b4   : > { %v6511_v18 = vpop.eup %6510  ;;  %v1637_v61 = vmul.f32 0.5, %v6509_v10  ;;  %6522 = vtanh.f32 %v1548_v8  ;;  %v1478_v21 = vpop.f32.mrb[32].mxu0 }
 0x1b5   : > { %v6513_v26 = vpop.eup %6512  ;;  %v1638_v22 = vmul.f32 0.5, %v6511_v18  ;;  %v1479_v23 = vadd.f32 %v1478_v21, %v7492_v19  ;;  %v1480_v25 = vpop.f32.mrb[33].mxu0  ;;  %5636 = vmatprep.mubr.msk.bf16.mxu1 %vm1805_vm9, %v1720_v16  ;;  %5657 = vmatprep.mubr.msk.bf16.mxu0 %vm1805_vm9, %v1720_v16 }
 0x1b6   : > { %v6515_v28 = vpop.eup %6514  ;;  %v1639_v29 = vmul.f32 0.5, %v6513_v26  ;;  %v1481_v33 = vadd.f32 %v1480_v25, %v7494_v27  ;;  %v1482_v35 = vpop.f32.mrb[34].mxu0  ;;  %1915 = vmatmul.mubr.bf16.gmra.mrb[20].mxu1 %v1719_v9  ;;  %2116 = vmatmul.mubr.bf16.gmra.mrb[68].mxu0 %v1719_v9  ;;  %v1685_v44 = vadd.f32 0.5, %v1637_v61 }
 0x1b7   : > { %v1640_v34 = vmul.f32 0.5, %v6515_v28  ;;  %v1549_v38 = vmul.f32 0.5, %v1479_v23  ;;  %v1483_v39 = vadd.f32 %v1482_v35, %v7492_v19  ;;  %v1484_v40 = vpop.f32.mrb[35].mxu0  ;;  %v1686_v59 = vadd.f32 0.5, %v1638_v22 }
 0x1b8   : > { %v1687_v45 = vadd.f32 0.5, %v1639_v29  ;;  %v1550_v49 = vmul.f32 0.5, %v1481_v33  ;;  %v1485_v50 = vadd.f32 %v1484_v40, %v7494_v27 }
 0x1b9   : > { %v1688_v48 = vadd.f32 0.5, %v1640_v34  ;;  %6524 = vtanh.f32 %v1549_v38  ;;  %v1551_v30 = vmul.f32 0.5, %v1483_v39 }
 0x1ba   : > { %6526 = vtanh.f32 %v1550_v49  ;;  %v1552_v60 = vmul.f32 0.5, %v1485_v50  ;;  %v1721_v62 = vpack.c.bf16 %v1687_v45, %v1685_v44 }
 0x1bb   : > { %v6517_v42 = vpop.eup %6516  ;;  %v1722_v63 = vpack.c.bf16 %v1688_v48, %v1686_v59  ;;  %6528 = vtanh.f32 %v1551_v30 }
 0x1bc   : > { %v6519_v1 = vpop.eup %6518  ;;  %v1641_v2 = vmul.f32 0.5, %v6517_v42  ;;  %6530 = vtanh.f32 %v1552_v60  ;;  %v1488_v37 = vpop.f32.mrb[36].mxu0 }
 0x1bd   : > { %v6521_v7 = vpop.eup %6520  ;;  %v1642_v11 = vmul.f32 0.5, %v6519_v1  ;;  %v1489_v0 = vadd.f32 %v1488_v37, %v7492_v19  ;;  %v1490_v12 = vpop.f32.mrb[37].mxu0  ;;  %5637 = vmatprep.mubr.msk.bf16.mxu1 %vm1805_vm9, %v1722_v63  ;;  %5658 = vmatprep.mubr.msk.bf16.mxu0 %vm1805_vm9, %v1722_v63 }
 0x1be   : > { %v6523_v14 = vpop.eup %6522  ;;  %v1643_v15 = vmul.f32 0.5, %v6521_v7  ;;  %v1491_v4 = vadd.f32 %v1490_v12, %v7494_v27  ;;  %v1492_v57 = vpop.f32.mrb[38].mxu0  ;;  %1923 = vmatmul.mubr.bf16.gmra.mrb[24].mxu1 %v1721_v62  ;;  %2124 = vmatmul.mubr.bf16.gmra.mrb[72].mxu0 %v1721_v62  ;;  %v1689_v24 = vadd.f32 0.5, %v1641_v2 }
 0x1bf   : > { %v1644_v53 = vmul.f32 0.5, %v6523_v14  ;;  %v1553_v43 = vmul.f32 0.5, %v1489_v0  ;;  %v1493_v17 = vadd.f32 %v1492_v57, %v7492_v19  ;;  %v1494_v20 = vpop.f32.mrb[39].mxu0  ;;  %v1690_v52 = vadd.f32 0.5, %v1642_v11 }
 0x1c0   : > { %v1691_v46 = vadd.f32 0.5, %v1643_v15  ;;  %v1554_v47 = vmul.f32 0.5, %v1491_v4  ;;  %v1495_v51 = vadd.f32 %v1494_v20, %v7494_v27 }
 0x1c1   : > { %v1692_v54 = vadd.f32 0.5, %v1644_v53  ;;  %6532 = vtanh.f32 %v1553_v43  ;;  %v1555_v31 = vmul.f32 0.5, %v1493_v17 }
 0x1c2   : > { %6534 = vtanh.f32 %v1554_v47  ;;  %v1556_v3 = vmul.f32 0.5, %v1495_v51  ;;  %v1723_v36 = vpack.c.bf16 %v1691_v46, %v1689_v24 }
 0x1c3   : > { %v6525_v41 = vpop.eup %6524  ;;  %v1724_v32 = vpack.c.bf16 %v1692_v54, %v1690_v52  ;;  %6536 = vtanh.f32 %v1555_v31 }
 0x1c4   : > { %v6527_v55 = vpop.eup %6526  ;;  %v1645_v56 = vmul.f32 0.5, %v6525_v41  ;;  %6538 = vtanh.f32 %v1556_v3  ;;  %v1498_v58 = vpop.f32.mrb[40].mxu0 }
 0x1c5   : > { %v6529_v5 = vpop.eup %6528  ;;  %v1646_v6 = vmul.f32 0.5, %v6527_v55  ;;  %v1499_v8 = vadd.f32 %v1498_v58, %v7492_v19  ;;  %v1500_v9 = vpop.f32.mrb[41].mxu0  ;;  %5638 = vmatprep.mubr.msk.bf16.mxu1 %vm1805_vm9, %v1724_v32  ;;  %5659 = vmatprep.mubr.msk.bf16.mxu0 %vm1805_vm9, %v1724_v32 }
 0x1c6   : > { %v6531_v10 = vpop.eup %6530  ;;  %v1647_v16 = vmul.f32 0.5, %v6529_v5  ;;  %v1501_v18 = vadd.f32 %v1500_v9, %v7494_v27  ;;  %v1502_v61 = vpop.f32.mrb[42].mxu0  ;;  %1931 = vmatmul.mubr.bf16.gmra.mrb[28].mxu1 %v1723_v36  ;;  %2132 = vmatmul.mubr.bf16.gmra.mrb[76].mxu0 %v1723_v36  ;;  %v1693_v25 = vadd.f32 0.5, %v1645_v56 }
 0x1c7   : > { %v1648_v21 = vmul.f32 0.5, %v6531_v10  ;;  %v1557_v26 = vmul.f32 0.5, %v1499_v8  ;;  %v1503_v22 = vadd.f32 %v1502_v61, %v7492_v19  ;;  %v1504_v23 = vpop.f32.mrb[43].mxu0  ;;  %v1694_v35 = vadd.f32 0.5, %v1646_v6 }
 0x1c8   : > { %v1695_v28 = vadd.f32 0.5, %v1647_v16  ;;  %v1558_v29 = vmul.f32 0.5, %v1501_v18  ;;  %v1505_v33 = vadd.f32 %v1504_v23, %v7494_v27 }
 0x1c9   : > { %v1696_v34 = vadd.f32 0.5, %v1648_v21  ;;  %6540 = vtanh.f32 %v1557_v26  ;;  %v1559_v38 = vmul.f32 0.5, %v1503_v22 }
 0x1ca   : > { %6542 = vtanh.f32 %v1558_v29  ;;  %v1560_v39 = vmul.f32 0.5, %v1505_v33  ;;  %v1725_v40 = vpack.c.bf16 %v1695_v28, %v1693_v25  ;;  %v6665_v28 = vmov 1983009808  }
 0x1cb   : > { %v6533_v44 = vpop.eup %6532  ;;  %v1726_v45 = vpack.c.bf16 %v1696_v34, %v1694_v35  ;;  %6544 = vtanh.f32 %v1559_v38  ;;  %v2222_v29 = vunpack.c.l.s4 %v6665_v28 }
 0x1cc   : > { %v6535_v49 = vpop.eup %6534  ;;  %v1649_v50 = vmul.f32 0.5, %v6533_v44  ;;  %6546 = vtanh.f32 %v1560_v39  ;;  %v1508_v59 = vpop.f32.mrb[44].mxu0 }
 0x1cd   : > { %v6537_v48 = vpop.eup %6536  ;;  %v1650_v30 = vmul.f32 0.5, %v6535_v49  ;;  %v1509_v60 = vadd.f32 %v1508_v59, %v7492_v19  ;;  %v1510_v62 = vpop.f32.mrb[45].mxu0  ;;  %5639 = vmatprep.mubr.msk.bf16.mxu1 %vm1805_vm9, %v1726_v45  ;;  %5660 = vmatprep.mubr.msk.bf16.mxu0 %vm1805_vm9, %v1726_v45  ;;  %v2223_v33 = vunpack.c.0.s8 %v2222_v29 }
 0x1ce   : > { %v6539_v42 = vpop.eup %6538  ;;  %v1651_v63 = vmul.f32 0.5, %v6537_v48  ;;  %v1511_v1 = vadd.f32 %v1510_v62, %v7494_v27  ;;  %v1512_v2 = vpop.f32.mrb[46].mxu0  ;;  %1939 = vmatmul.mubr.bf16.gmra.mrb[32].mxu1 %v1725_v40  ;;  %2140 = vmatmul.mubr.bf16.gmra.mrb[80].mxu0 %v1725_v40  ;;  %v1697_v12 = vadd.f32 0.5, %v1649_v50 }
 0x1cf   : > { %v1652_v37 = vmul.f32 0.5, %v6539_v42  ;;  %v1561_v7 = vmul.f32 0.5, %v1509_v60  ;;  %v1513_v11 = vadd.f32 %v1512_v2, %v7492_v19  ;;  %v1514_v0 = vpop.f32.mrb[47].mxu0  ;;  %v1698_v57 = vadd.f32 0.5, %v1650_v30 }
 0x1d0   : > { %v1699_v14 = vadd.f32 0.5, %v1651_v63  ;;  %v1562_v15 = vmul.f32 0.5, %v1511_v1  ;;  %v1515_v4 = vadd.f32 %v1514_v0, %v7494_v27  ;;  %v7569_v35 = vsub.s32 %v2223_v33, %v7485_v13 }
 0x1d1   : > { %v1700_v53 = vadd.f32 0.5, %v1652_v37  ;;  %6548 = vtanh.f32 %v1561_v7  ;;  %v1563_v43 = vmul.f32 0.5, %v1513_v11 }
 0x1d2   : > { %6550 = vtanh.f32 %v1562_v15  ;;  %v1564_v17 = vmul.f32 0.5, %v1515_v4  ;;  %v1727_v20 = vpack.c.bf16 %v1699_v14, %v1697_v12  ;;  %9287 = vst [vmem:[#allocation11_spill] sm:$0xff] %v7569_v35 }
 0x1d3   : > { %v6541_v24 = vpop.eup %6540  ;;  %v1728_v46 = vpack.c.bf16 %v1700_v53, %v1698_v57  ;;  %6552 = vtanh.f32 %v1563_v43 }
 0x1d4   : > { %v6543_v47 = vpop.eup %6542  ;;  %v1653_v51 = vmul.f32 0.5, %v6541_v24  ;;  %6554 = vtanh.f32 %v1564_v17 }
 0x1d5   : > { %v6545_v19 = vpop.eup %6544  ;;  %v1654_v52 = vmul.f32 0.5, %v6543_v47  ;;  %5640 = vmatprep.mubr.msk.bf16.mxu1 %vm1805_vm9, %v1728_v46  ;;  %5661 = vmatprep.mubr.msk.bf16.mxu0 %vm1805_vm9, %v1728_v46 }
 0x1d6   : > { %v6547_v27 = vpop.eup %6546  ;;  %v1655_v54 = vmul.f32 0.5, %v6545_v19  ;;  %1947 = vmatmul.mubr.bf16.gmra.mrb[36].mxu1 %v1727_v20  ;;  %2148 = vmatmul.mubr.bf16.gmra.mrb[84].mxu0 %v1727_v20  ;;  %v1701_v3 = vadd.f32 0.5, %v1653_v51 }
 0x1d7   : > { %v1656_v31 = vmul.f32 0.5, %v6547_v27  ;;  %v1702_v41 = vadd.f32 0.5, %v1654_v52 }
 0x1d8   : > { %v1703_v36 = vadd.f32 0.5, %v1655_v54 }
 0x1d9   : > { %v1704_v32 = vadd.f32 0.5, %v1656_v31 }
 0x1da   : > { %v1729_v55 = vpack.c.bf16 %v1703_v36, %v1701_v3 }
 0x1db   : > { %v6549_v56 = vpop.eup %6548  ;;  %v1730_v58 = vpack.c.bf16 %v1704_v32, %v1702_v41 }
 0x1dc   : > { %v6551_v5 = vpop.eup %6550  ;;  %v1657_v6 = vmul.f32 0.5, %v6549_v56 }
 0x1dd   : > { %v6553_v8 = vpop.eup %6552  ;;  %v1658_v9 = vmul.f32 0.5, %v6551_v5  ;;  %5641 = vmatprep.mubr.msk.bf16.mxu1 %vm1805_vm9, %v1730_v58  ;;  %5662 = vmatprep.mubr.msk.bf16.mxu0 %vm1805_vm9, %v1730_v58 }
 0x1de   : > { %v6555_v10 = vpop.eup %6554  ;;  %v1659_v16 = vmul.f32 0.5, %v6553_v8  ;;  %1955 = vmatmul.mubr.bf16.gmra.mrb[40].mxu1 %v1729_v55  ;;  %2156 = vmatmul.mubr.bf16.gmra.mrb[88].mxu0 %v1729_v55  ;;  %v1705_v61 = vadd.f32 0.5, %v1657_v6 }
 0x1df   : > { %v1660_v18 = vmul.f32 0.5, %v6555_v10  ;;  %v1706_v26 = vadd.f32 0.5, %v1658_v9 }
 0x1e0   : > { %v1707_v21 = vadd.f32 0.5, %v1659_v16 }
 0x1e1   : > { %v1708_v22 = vadd.f32 0.5, %v1660_v18 }
 0x1e2   : > { %v1731_v23 = vpack.c.bf16 %v1707_v21, %v1705_v61 }
 0x1e3   : > { %v1732_v25 = vpack.c.bf16 %v1708_v22, %v1706_v26 }
 0x1e5   : > { %5642 = vmatprep.mubr.msk.bf16.mxu1 %vm1805_vm9, %v1732_v25  ;;  %5663 = vmatprep.mubr.msk.bf16.mxu0 %vm1805_vm9, %v1732_v25 }
 0x1e6   : > { %1963 = vmatmul.mubr.bf16.gmra.mrb[44].mxu1 %v1731_v23  ;;  %2164 = vmatmul.mubr.bf16.gmra.mrb[92].mxu0 %v1731_v23 }
 0x261   : > { %v1876_v34 = vpop.f32.mrb[0].mxu1  ;;  %v2077_v38 = vpop.f32.mrb[48].mxu0 }
 0x262   : > { %v2172_v39 = vmax.f32 %v1876_v34, %v2077_v38  ;;  %v1878_v40 = vpop.f32.mrb[1].mxu1  ;;  %v2079_v44 = vpop.f32.mrb[49].mxu0 }
 0x263   : > { %v1879_v45 = vpop.f32.mrb[2].mxu1  ;;  %v2080_v49 = vpop.f32.mrb[50].mxu0 }
 0x264   : > { %v2220_v50 = vcombine.high %v2172_v39, %v2172_v39  ;;  %v2227_v59 = vrot.slane %v2172_v39, %v7569_v35  ;;  %v2173_v48 = vmax.f32 %v1879_v45, %v2080_v49  ;;  %v1881_v30 = vpop.f32.mrb[3].mxu1  ;;  %v2082_v60 = vpop.f32.mrb[51].mxu0 }
 0x266   : > { %v2234_v62 = vrot.slane %v2220_v50, %v7569_v35  ;;  %v2235_v42 = vcombine.high %v2227_v59, %v2227_v59  ;;  %v2725_v63 = vsel %vm2724_vm10, %v2227_v59, -inf  ;;  %v2237_v1 = vcombine.high %v2173_v48, %v2173_v48 }
 0x267   : > { %v2726_v2 = vrot.slane %v2725_v63, 4  ;;  %v2244_v37 = vrot.slane %v2173_v48, %v7569_v35 }
 0x268   : > { %v2236_v7 = vcombine.high %v2234_v62, %v2234_v62  ;;  %v2732_v11 = vsel %vm2724_vm10, %v2235_v42, -inf  ;;  %v2739_v0 = vsel %vm2724_vm10, %v2234_v62, -inf  ;;  %v2251_v12 = vrot.slane %v2237_v1, %v7569_v35 }
 0x269   : > { %v2727_v14 = vmax.f32 %v2725_v63, %v2726_v2  ;;  %v2733_v15 = vrot.slane %v2732_v11, 4  ;;  %v2740_v4 = vrot.slane %v2739_v0, 4  ;;  %v2252_v57 = vcombine.high %v2244_v37, %v2244_v37  ;;  %v1884_v53 = vpop.f32.mrb[4].mxu1  ;;  %v2085_v43 = vpop.f32.mrb[52].mxu0 }
 0x26a   : > { %v2746_v17 = vsel %vm2724_vm10, %v2236_v7, -inf  ;;  %v2253_v20 = vcombine.high %v2251_v12, %v2251_v12  ;;  %v2753_v24 = vsel %vm2724_vm10, %v2244_v37, -inf  ;;  %v2767_v46 = vsel %vm2724_vm10, %v2251_v12, -inf  ;;  %v1886_v47 = vpop.f32.mrb[5].mxu1  ;;  %v2087_v51 = vpop.f32.mrb[53].mxu0 }
 0x26b   : > { %v2728_v19 = vrot.slane %v2727_v14, 2  ;;  %v2734_v52 = vmax.f32 %v2732_v11, %v2733_v15  ;;  %v2741_v27 = vmax.f32 %v2739_v0, %v2740_v4  ;;  %v2747_v54 = vrot.slane %v2746_v17, 4  ;;  %v1887_v31 = vpop.f32.mrb[6].mxu1  ;;  %v2088_v3 = vpop.f32.mrb[54].mxu0 }
 0x26c   : > { %v2754_v36 = vrot.slane %v2753_v24, 4  ;;  %v2760_v41 = vsel %vm2724_vm10, %v2252_v57, -inf  ;;  %v2768_v32 = vrot.slane %v2767_v46, 4  ;;  %v2774_v55 = vsel %vm2724_vm10, %v2253_v20, -inf  ;;  %v1889_v56 = vpop.f32.mrb[7].mxu1  ;;  %v2090_v58 = vpop.f32.mrb[55].mxu0 }
 0x26d   : > { %v2729_v5 = vmax.f32 %v2727_v14, %v2728_v19  ;;  %v2735_v6 = vrot.slane %v2734_v52, 2  ;;  %v2742_v8 = vrot.slane %v2741_v27, 2  ;;  %v2748_v9 = vmax.f32 %v2746_v17, %v2747_v54 }
 0x26e   : > { %v2755_v10 = vmax.f32 %v2753_v24, %v2754_v36  ;;  %v2761_v16 = vrot.slane %v2760_v41, 4  ;;  %v2769_v18 = vmax.f32 %v2767_v46, %v2768_v32  ;;  %v2775_v61 = vrot.slane %v2774_v55, 4 }
 0x26f   : > { %v2730_v21 = vrot.slane %v2729_v5, 1  ;;  %v2736_v26 = vmax.f32 %v2734_v52, %v2735_v6  ;;  %v2743_v22 = vmax.f32 %v2741_v27, %v2742_v8  ;;  %v2749_v23 = vrot.slane %v2748_v9, 2 }
 0x270   : > { %v2756_v25 = vrot.slane %v2755_v10, 2  ;;  %v2762_v28 = vmax.f32 %v2760_v41, %v2761_v16  ;;  %v2770_v29 = vrot.slane %v2769_v18, 2  ;;  %v2776_v33 = vmax.f32 %v2774_v55, %v2775_v61 }
 0x271   : > { %v2731_v34 = vmax.f32 %v2729_v5, %v2730_v21  ;;  %v2737_v38 = vrot.slane %v2736_v26, 1  ;;  %v2744_v39 = vrot.slane %v2743_v22, 1  ;;  %v2750_v40 = vmax.f32 %v2748_v9, %v2749_v23  ;;  %v1892_v44 = vpop.f32.mrb[8].mxu1  ;;  %v2093_v45 = vpop.f32.mrb[56].mxu0 }
 0x272   : > { %v2757_v49 = vmax.f32 %v2755_v10, %v2756_v25  ;;  %v2763_v50 = vrot.slane %v2762_v28, 2  ;;  %v2771_v59 = vmax.f32 %v2769_v18, %v2770_v29  ;;  %v2777_v48 = vrot.slane %v2776_v33, 2  ;;  %v1894_v30 = vpop.f32.mrb[9].mxu1  ;;  %v2095_v60 = vpop.f32.mrb[57].mxu0 }
 0x273   : > { %v2738_v62 = vmax.f32 %v2736_v26, %v2737_v38  ;;  %v2745_v42 = vmax.f32 %v2743_v22, %v2744_v39  ;;  %v2751_v63 = vrot.slane %v2750_v40, 1  ;;  %v2174_v1 = vmax.f32 %v1884_v53, %v2085_v43  ;;  %v1895_v2 = vpop.f32.mrb[10].mxu1  ;;  %v2096_v37 = vpop.f32.mrb[58].mxu0 }
 0x274   : > { %v2758_v7 = vrot.slane %v2757_v49, 1  ;;  %v2764_v11 = vmax.f32 %v2762_v28, %v2763_v50  ;;  %v2772_v0 = vrot.slane %v2771_v59, 1  ;;  %v2778_v12 = vmax.f32 %v2776_v33, %v2777_v48  ;;  %v1897_v14 = vpop.f32.mrb[11].mxu1  ;;  %v2098_v15 = vpop.f32.mrb[59].mxu0 }
 0x275   : > { %v7583_v4 = vmax.f32 %v2750_v40, %v2751_v63  ;;  %v3462_v57 = vsel %vm3461_vm11, %v2738_v62, %v2731_v34  ;;  %v7587_v17 = vsel %vm3461_vm11, %v2745_v42, %v2738_v62  ;;  %v2254_v20 = vcombine.high %v2174_v1, %v2174_v1 }
 0x276   : > { %v7590_v24 = vsel %vm3463_vm12, %v2745_v42, %v3462_v57  ;;  %v7592_v53 = vmax.f32 %v2757_v49, %v2758_v7  ;;  %v2765_v43 = vrot.slane %v2764_v11, 1  ;;  %v7594_v46 = vmax.f32 %v2771_v59, %v2772_v0 }
 0x277   : > { %9288 = vst [vmem:[#allocation12_spill] sm:$0xff] %v7583_v4  ;;  %9289 = vst [vmem:[#allocation13_spill] sm:$0xff] %v7590_v24  ;;  %v7598_v47 = vsel %vm3461_vm11, %v7583_v4, %v2745_v42  ;;  %v2779_v51 = vrot.slane %v2778_v12, 1  ;;  %v2261_v19 = vrot.slane %v2174_v1, %v7569_v35  ;;  %v2268_v52 = vrot.slane %v2254_v20, %v7569_v35 }
 0x278   : > { %9290 = vst [vmem:[#allocation14_spill] sm:$0xff] %v7594_v46  ;;  %v7602_v27 = vmax.f32 %v2764_v11, %v2765_v43  ;;  %v2175_v54 = vmax.f32 %v1887_v31, %v2088_v3  ;;  %v2176_v36 = vmax.f32 %v1892_v44, %v2093_v45  ;;  %v7604_v41 = vmax.f32 %v1895_v2, %v2096_v37 }
 0x279   : > { %v7606_v32 = vmax.f32 %v2778_v12, %v2779_v51  ;;  %v2269_v55 = vcombine.high %v2261_v19, %v2261_v19  ;;  %v2270_v56 = vcombine.high %v2268_v52, %v2268_v52  ;;  %v2781_v58 = vsel %vm2724_vm10, %v2261_v19, -inf  ;;  %v7609_v5 = vpop.f32.mrb[12].mxu1  ;;  %v7611_v6 = vpop.f32.mrb[60].mxu0 }
 0x27a   : > { %9291 = vst [vmem:[#allocation15_spill] sm:$0xff] %v7602_v27  ;;  %v2782_v8 = vrot.slane %v2781_v58, 4  ;;  %v2795_v9 = vsel %vm2724_vm10, %v2268_v52, -inf  ;;  %v2271_v10 = vcombine.high %v2175_v54, %v2175_v54  ;;  %v2278_v16 = vrot.slane %v2175_v54, %v7569_v35  ;;  %v1902_v31 = vpop.f32.mrb[13].mxu1  ;;  %v2103_v3 = vpop.f32.mrb[61].mxu0 }
 0x27b   : > { %9292 = vst [vmem:[#allocation16_spill] sm:$0xff] %v7606_v32  ;;  %v2788_v18 = vsel %vm2724_vm10, %v2269_v55, -inf  ;;  %v2796_v61 = vrot.slane %v2795_v9, 4  ;;  %v2802_v21 = vsel %vm2724_vm10, %v2270_v56, -inf  ;;  %v2288_v26 = vcombine.high %v2176_v36, %v2176_v36  ;;  %v7617_v22 = vpop.f32.mrb[14].mxu1  ;;  %v7619_v23 = vpop.f32.mrb[62].mxu0 }
 0x27c   : > { %v2783_v25 = vmax.f32 %v2781_v58, %v2782_v8  ;;  %v2789_v28 = vrot.slane %v2788_v18, 4  ;;  %v2803_v29 = vrot.slane %v2802_v21, 4  ;;  %v2285_v33 = vrot.slane %v2271_v10, %v7569_v35  ;;  %v1905_v34 = vpop.f32.mrb[15].mxu1  ;;  %v2106_v38 = vpop.f32.mrb[63].mxu0 }
 0x27d   : > { %v2797_v39 = vmax.f32 %v2795_v9, %v2796_v61  ;;  %v2286_v40 = vcombine.high %v2278_v16, %v2278_v16  ;;  %v2809_v44 = vsel %vm2724_vm10, %v2278_v16, -inf  ;;  %v2295_v45 = vrot.slane %v2176_v36, %v7569_v35 }
 0x27e   : > { %v2784_v49 = vrot.slane %v2783_v25, 2  ;;  %v2790_v50 = vmax.f32 %v2788_v18, %v2789_v28  ;;  %v7624_v59 = vmax.f32 %v2802_v21, %v2803_v29  ;;  %v2287_v48 = vcombine.high %v2285_v33, %v2285_v33 }
 0x27f   : > { %v2798_v30 = vrot.slane %v2797_v39, 2  ;;  %v2810_v60 = vrot.slane %v2809_v44, 4  ;;  %v2816_v62 = vsel %vm2724_vm10, %v2286_v40, -inf  ;;  %v2823_v42 = vsel %vm2724_vm10, %v2285_v33, -inf }
 0x280   : > { %9293 = vst [vmem:[#allocation17_spill] sm:$0xff] %v7624_v59  ;;  %v2785_v63 = vmax.f32 %v2783_v25, %v2784_v49  ;;  %v2791_v1 = vrot.slane %v2790_v50, 2  ;;  %v2817_v37 = vrot.slane %v2816_v62, 4  ;;  %v2824_v0 = vrot.slane %v2823_v42, 4 }
 0x281   : > { %v7629_v7 = vmax.f32 %v2797_v39, %v2798_v30  ;;  %v2811_v11 = vmax.f32 %v2809_v44, %v2810_v60  ;;  %v2830_v12 = vsel %vm2724_vm10, %v2287_v48, -inf  ;;  %v7632_v14 = vpop.f32.mrb[16].mxu1  ;;  %v7634_v15 = vpop.f32.mrb[64].mxu0  ;;  %v2302_v55 = vrot.slane %v2288_v26, %v7569_v35 }
 0x282   : > { %v2786_v57 = vrot.slane %v2785_v63, 1  ;;  %v7636_v20 = vmax.f32 %v2790_v50, %v2791_v1  ;;  %v2818_v43 = vmax.f32 %v2816_v62, %v2817_v37  ;;  %v2831_v51 = vrot.slane %v2830_v12, 4  ;;  %v1910_v19 = vpop.f32.mrb[17].mxu1  ;;  %v2111_v52 = vpop.f32.mrb[65].mxu0 }
 0x283   : > { %v2812_v54 = vrot.slane %v2811_v11, 2  ;;  %v2825_v36 = vmax.f32 %v2823_v42, %v2824_v0  ;;  %v2303_v56 = vcombine.high %v2295_v45, %v2295_v45  ;;  %v7639_v58 = vpop.f32.mrb[18].mxu1  ;;  %v7641_v8 = vpop.f32.mrb[66].mxu0  ;;  %v2837_v31 = vsel %vm2724_vm10, %v2295_v45, -inf }
 0x284   : > { %v7643_v9 = vmax.f32 %v2785_v63, %v2786_v57  ;;  %v2819_v10 = vrot.slane %v2818_v43, 2  ;;  %v2832_v16 = vmax.f32 %v2830_v12, %v2831_v51  ;;  %v1913_v3 = vpop.f32.mrb[19].mxu1  ;;  %v2114_v18 = vpop.f32.mrb[67].mxu0  ;;  %v2304_v25 = vcombine.high %v2302_v55, %v2302_v55 }
 0x285   : > { %v2813_v61 = vmax.f32 %v2811_v11, %v2812_v54  ;;  %v2826_v21 = vrot.slane %v2825_v36, 2  ;;  %v2838_v28 = vrot.slane %v2837_v31, 4  ;;  %v2844_v26 = vsel %vm2724_vm10, %v2303_v56, -inf }
 0x286   : > { %9294 = vst [vmem:[#allocation18_spill] sm:$0xff] %v7643_v9  ;;  %v2820_v29 = vmax.f32 %v2818_v43, %v2819_v10  ;;  %v2833_v33 = vrot.slane %v2832_v16, 2  ;;  %v2851_v34 = vsel %vm2724_vm10, %v2302_v55, -inf  ;;  %v2845_v44 = vrot.slane %v2844_v26, 4 }
 0x287   : > { %v2814_v38 = vrot.slane %v2813_v61, 1  ;;  %v2827_v39 = vmax.f32 %v2825_v36, %v2826_v21  ;;  %v2839_v40 = vmax.f32 %v2837_v31, %v2838_v28  ;;  %v2852_v48 = vrot.slane %v2851_v34, 4 }
 0x288   : > { %v2821_v49 = vrot.slane %v2820_v29, 1  ;;  %v2834_v50 = vmax.f32 %v2832_v16, %v2833_v33  ;;  %v2858_v45 = vsel %vm2724_vm10, %v2304_v25, -inf  ;;  %v2846_v42 = vmax.f32 %v2844_v26, %v2845_v44 }
 0x289   : > { %v2815_v30 = vmax.f32 %v2813_v61, %v2814_v38  ;;  %v2828_v60 = vrot.slane %v2827_v39, 1  ;;  %v2840_v62 = vrot.slane %v2839_v40, 2  ;;  %v7649_v63 = vpop.f32.mrb[20].mxu1  ;;  %v7651_v1 = vpop.f32.mrb[68].mxu0  ;;  %v2853_v0 = vmax.f32 %v2851_v34, %v2852_v48 }
 0x28a   : > { %v2822_v37 = vmax.f32 %v2820_v29, %v2821_v49  ;;  %v2835_v11 = vrot.slane %v2834_v50, 1  ;;  %v2859_v12 = vrot.slane %v2858_v45, 4  ;;  %v1918_v57 = vpop.f32.mrb[21].mxu1  ;;  %v2119_v43 = vpop.f32.mrb[69].mxu0  ;;  %v2847_v52 = vrot.slane %v2846_v42, 2 }
 0x28b   : > { %v2829_v51 = vmax.f32 %v2827_v39, %v2828_v60  ;;  %v2841_v19 = vmax.f32 %v2839_v40, %v2840_v62  ;;  %v2305_v54 = vcombine.high %v7604_v41, %v7604_v41  ;;  %v7655_v36 = vpop.f32.mrb[70].mxu0  ;;  %v7657_v55 = vpop.f32.mrb[22].mxu1  ;;  %v2854_v16 = vrot.slane %v2853_v0, 2 }
 0x28c   : > { %v7659_v56 = vmax.f32 %v2834_v50, %v2835_v11  ;;  %v3475_v10 = vsel %vm3461_vm11, %v2822_v37, %v2815_v30  ;;  %v2860_v31 = vmax.f32 %v2858_v45, %v2859_v12  ;;  %v2122_v3 = vpop.f32.mrb[71].mxu0  ;;  %v1921_v18 = vpop.f32.mrb[23].mxu1  ;;  %v2848_v28 = vmax.f32 %v2846_v42, %v2847_v52 }
 0x28d   : > { %v7663_v61 = vsel %vm3463_vm12, %v2829_v51, %v3475_v10  ;;  %v7666_v21 = vsel %vm3461_vm11, %v2829_v51, %v2822_v37  ;;  %v2842_v25 = vrot.slane %v2841_v19, 1  ;;  %v2855_v33 = vmax.f32 %v2853_v0, %v2854_v16 }
 0x28e   : > { %9295 = vst [vmem:[#allocation19_spill] sm:$0xff] %v7659_v56  ;;  %9296 = vst [vmem:[#allocation20_spill] sm:$0xff] %v7663_v61  ;;  %v7670_v29 = vsel %vm3461_vm11, %v7659_v56, %v2829_v51  ;;  %v2861_v26 = vrot.slane %v2860_v31, 2  ;;  %v2312_v34 = vrot.slane %v7604_v41, %v7569_v35  ;;  %v2849_v39 = vrot.slane %v2848_v28, 1 }
 0x28f   : > { %v7674_v38 = vmax.f32 %v2841_v19, %v2842_v25  ;;  %v2319_v40 = vrot.slane %v2305_v54, %v7569_v35  ;;  %v2178_v44 = vmax.f32 %v7609_v5, %v7611_v6  ;;  %v2856_v49 = vrot.slane %v2855_v33, 1 }
 0x290   : > { %v2862_v50 = vmax.f32 %v2860_v31, %v2861_v26  ;;  %v2320_v48 = vcombine.high %v2312_v34, %v2312_v34  ;;  %v2865_v45 = vsel %vm2724_vm10, %v2312_v34, -inf  ;;  %v7680_v30 = vmax.f32 %v2848_v28, %v2849_v39 }
 0x291   : > { %9297 = vst [vmem:[#allocation21_spill] sm:$0xff] %v7674_v38  ;;  %v2321_v60 = vcombine.high %v2319_v40, %v2319_v40  ;;  %v2866_v62 = vrot.slane %v2865_v45, 4  ;;  %v2879_v42 = vsel %vm2724_vm10, %v2319_v40, -inf  ;;  %v7683_v41 = vpop.f32.mrb[24].mxu1  ;;  %v7685_v37 = vpop.f32.mrb[72].mxu0  ;;  %v7687_v11 = vmax.f32 %v2855_v33, %v2856_v49 }
 0x292   : > { %9298 = vst [vmem:[#allocation22_spill] sm:$0xff] %v7680_v30  ;;  %v2863_v0 = vrot.slane %v2862_v50, 1  ;;  %v2872_v5 = vsel %vm2724_vm10, %v2320_v48, -inf  ;;  %v2880_v6 = vrot.slane %v2879_v42, 4  ;;  %v1926_v12 = vpop.f32.mrb[25].mxu1  ;;  %v2127_v57 = vpop.f32.mrb[73].mxu0  ;;  %v2322_v52 = vcombine.high %v2178_v44, %v2178_v44 }
 0x293   : > { %9299 = vst [vmem:[#allocation23_spill] sm:$0xff] %v7687_v11  ;;  %v2867_v43 = vmax.f32 %v2865_v45, %v2866_v62  ;;  %v2873_v51 = vrot.slane %v2872_v5, 4  ;;  %v2886_v19 = vsel %vm2724_vm10, %v2321_v60, -inf  ;;  %v7691_v54 = vpop.f32.mrb[26].mxu1  ;;  %v7693_v10 = vpop.f32.mrb[74].mxu0  ;;  %v2329_v18 = vrot.slane %v2178_v44, %v7569_v35 }
 0x294   : > { %v7695_v16 = vmax.f32 %v2862_v50, %v2863_v0  ;;  %v2881_v31 = vmax.f32 %v2879_v42, %v2880_v6  ;;  %v2887_v3 = vrot.slane %v2886_v19, 4  ;;  %v1929_v25 = vpop.f32.mrb[27].mxu1  ;;  %v2130_v28 = vpop.f32.mrb[75].mxu0  ;;  %v2336_v34 = vrot.slane %v2322_v52, %v7569_v35 }
 0x295   : > { %v2868_v33 = vrot.slane %v2867_v43, 2  ;;  %v2874_v26 = vmax.f32 %v2872_v5, %v2873_v51  ;;  %v2179_v39 = vmax.f32 %v7617_v22, %v7619_v23  ;;  %v2337_v48 = vcombine.high %v2329_v18, %v2329_v18 }
 0x296   : > { %9300 = vst [vmem:[#allocation24_spill] sm:$0xff] %v7695_v16  ;;  %v2882_v40 = vrot.slane %v2881_v31, 2  ;;  %v7701_v49 = vmax.f32 %v2886_v19, %v2887_v3  ;;  %v2893_v50 = vsel %vm2724_vm10, %v2329_v18, -inf  ;;  %v2338_v62 = vcombine.high %v2336_v34, %v2336_v34 }
 0x297   : > { %v2869_v45 = vmax.f32 %v2867_v43, %v2868_v33  ;;  %v2875_v60 = vrot.slane %v2874_v26, 2  ;;  %v2894_v42 = vrot.slane %v2893_v50, 4  ;;  %v2900_v5 = vsel %vm2724_vm10, %v2337_v48, -inf }
 0x298   : > { %9301 = vst [vmem:[#allocation25_spill] sm:$0xff] %v7701_v49  ;;  %v7704_v44 = vmax.f32 %v2881_v31, %v2882_v40  ;;  %v2907_v6 = vsel %vm2724_vm10, %v2336_v34, -inf  ;;  %v2901_v57 = vrot.slane %v2900_v5, 4  ;;  %v2914_v52 = vsel %vm2724_vm10, %v2338_v62, -inf }
 0x299   : > { %v2870_v12 = vrot.slane %v2869_v45, 1  ;;  %v7709_v22 = vmax.f32 %v2874_v26, %v2875_v60  ;;  %v2895_v23 = vmax.f32 %v2893_v50, %v2894_v42  ;;  %v7711_v51 = vpop.f32.mrb[28].mxu1  ;;  %v7713_v19 = vpop.f32.mrb[76].mxu0  ;;  %v2908_v43 = vrot.slane %v2907_v6, 4 }
 0x29a   : > { %v2339_v31 = vcombine.high %v2179_v39, %v2179_v39  ;;  %v2346_v3 = vrot.slane %v2179_v39, %v7569_v35  ;;  %v1934_v18 = vpop.f32.mrb[29].mxu1  ;;  %v2135_v25 = vpop.f32.mrb[77].mxu0  ;;  %v2902_v34 = vmax.f32 %v2900_v5, %v2901_v57  ;;  %v2915_v26 = vrot.slane %v2914_v52, 4 }
 0x29b   : > { %v7717_v28 = vmax.f32 %v2869_v45, %v2870_v12  ;;  %v2896_v33 = vrot.slane %v2895_v23, 2  ;;  %v7719_v40 = vpop.f32.mrb[30].mxu1  ;;  %v7721_v48 = vpop.f32.mrb[78].mxu0  ;;  %v2909_v50 = vmax.f32 %v2907_v6, %v2908_v43 }
 0x29c   : > { %9303 = vst [vmem:[#allocation27_spill] sm:$0xff] %v7719_v40  ;;  %9304 = vst [vmem:[#allocation28_spill] sm:$0xff] %v7721_v48  ;;  %v2353_v60 = vrot.slane %v2339_v31, %v7569_v35  ;;  %v2354_v42 = vcombine.high %v2346_v3, %v2346_v3  ;;  %v2921_v62 = vsel %vm2724_vm10, %v2346_v3, -inf  ;;  %v1937_v0 = vpop.f32.mrb[31].mxu1  ;;  %v2138_v2 = vpop.f32.mrb[79].mxu0  ;;  %v2903_v18 = vrot.slane %v2902_v34, 2 }
 0x29d   : > { %9302 = vst [vmem:[#allocation26_spill] sm:$0xff] %v7717_v28  ;;  %v2897_v39 = vmax.f32 %v2895_v23, %v2896_v33  ;;  %v2916_v25 = vmax.f32 %v2914_v52, %v2915_v26  ;;  %v2922_v45 = vrot.slane %v2921_v62, 4  ;;  %v2910_v12 = vrot.slane %v2909_v50, 2 }
 0x29e   : > { %v2355_v13 = vcombine.high %v2353_v60, %v2353_v60  ;;  %v2928_v5 = vsel %vm2724_vm10, %v2354_v42, -inf  ;;  %v2935_v57 = vsel %vm2724_vm10, %v2353_v60, -inf  ;;  %v2904_v24 = vmax.f32 %v2902_v34, %v2903_v18 }
 0x29f   : > { %v2898_v61 = vrot.slane %v2897_v39, 1  ;;  %v2917_v6 = vrot.slane %v2916_v25, 2  ;;  %v2923_v43 = vmax.f32 %v2921_v62, %v2922_v45  ;;  %v2911_v31 = vmax.f32 %v2909_v50, %v2910_v12 }
 0x2a0   : > { %v2929_v49 = vrot.slane %v2928_v5, 4  ;;  %v2936_v59 = vrot.slane %v2935_v57, 4  ;;  %v2942_v0 = vsel %vm2724_vm10, %v2355_v13, -inf  ;;  %v2905_v23 = vrot.slane %v2904_v24, 1 }
 0x2a1   : > { %v2899_v2 = vmax.f32 %v2897_v39, %v2898_v61  ;;  %v2918_v3 = vmax.f32 %v2916_v25, %v2917_v6  ;;  %v2924_v52 = vrot.slane %v2923_v43, 2  ;;  %v7728_v33 = vpop.f32.mrb[32].mxu1  ;;  %v7730_v26 = vpop.f32.mrb[80].mxu0  ;;  %v2912_v42 = vrot.slane %v2911_v31, 1 }
 0x2a2   : > { %9305 = vst [vmem:[#allocation29_spill] sm:$0xff] %v7728_v33  ;;  %9306 = vst [vmem:[#allocation30_spill] sm:$0xff] %v7730_v26  ;;  %v2930_v40 = vmax.f32 %v2928_v5, %v2929_v49  ;;  %v2937_v60 = vmax.f32 %v2935_v57, %v2936_v59  ;;  %v2943_v48 = vrot.slane %v2942_v0, 4  ;;  %v1942_v34 = vpop.f32.mrb[33].mxu1  ;;  %v2143_v18 = vpop.f32.mrb[81].mxu0  ;;  %v2906_v62 = vmax.f32 %v2904_v24, %v2905_v23 }
 0x2a3   : > { %v2919_v50 = vrot.slane %v2918_v3, 1  ;;  %v2925_v45 = vmax.f32 %v2923_v43, %v2924_v52  ;;  %v2180_v13 = vmax.f32 %v7632_v14, %v7634_v15  ;;  %v7734_v61 = vpop.f32.mrb[82].mxu0  ;;  %v7736_v39 = vpop.f32.mrb[34].mxu1  ;;  %v2913_v25 = vmax.f32 %v2911_v31, %v2912_v42 }
 0x2a4   : > { %9307 = vst [vmem:[#allocation31_spill] sm:$0xff] %v7734_v61  ;;  %9308 = vst [vmem:[#allocation32_spill] sm:$0xff] %v7736_v39  ;;  %v2931_v12 = vrot.slane %v2930_v40, 2  ;;  %v2938_v6 = vrot.slane %v2937_v60, 2  ;;  %v2944_v33 = vmax.f32 %v2942_v0, %v2943_v48  ;;  %v2146_v26 = vpop.f32.mrb[83].mxu0  ;;  %v1945_v49 = vpop.f32.mrb[35].mxu1  ;;  %v3482_v5 = vsel %vm3461_vm11, %v2906_v62, %v2899_v2 }
 0x2a5   : > { %v7738_v59 = vmax.f32 %v2918_v3, %v2919_v50  ;;  %v2926_v24 = vrot.slane %v2925_v45, 1  ;;  %v2356_v57 = vcombine.high %v2180_v13, %v2180_v13  ;;  %v7742_v43 = vsel %vm3463_vm12, %v2913_v25, %v3482_v5 }
 0x2a6   : > { %9310 = vst [vmem:[#allocation34_spill] sm:$0xff] %v7742_v43  ;;  %v7745_v14 = vsel %vm3461_vm11, %v2913_v25, %v2906_v62  ;;  %v2932_v15 = vmax.f32 %v2930_v40, %v2931_v12  ;;  %v2939_v23 = vmax.f32 %v2937_v60, %v2938_v6  ;;  %v2945_v0 = vrot.slane %v2944_v33, 2 }
 0x2a7   : > { %9309 = vst [vmem:[#allocation33_spill] sm:$0xff] %v7738_v59  ;;  %v7749_v31 = vsel %vm3461_vm11, %v7738_v59, %v2913_v25  ;;  %v7751_v48 = vmax.f32 %v2925_v45, %v2926_v24  ;;  %v2363_v3 = vrot.slane %v2180_v13, %v7569_v35  ;;  %v2370_v26 = vrot.slane %v2356_v57, %v7569_v35 }
 0x2a8   : > { %9311 = vst [vmem:[#allocation35_spill] sm:$0xff] %v7749_v31  ;;  %v2933_v2 = vrot.slane %v2932_v15, 1  ;;  %v2940_v52 = vrot.slane %v2939_v23, 1  ;;  %v2181_v42 = vmax.f32 %v7639_v58, %v7641_v8  ;;  %v2946_v34 = vmax.f32 %v2944_v33, %v2945_v0 }
 0x2a9   : > { %9312 = vst [vmem:[#allocation36_spill] sm:$0xff] %v7751_v48  ;;  %v2371_v18 = vcombine.high %v2363_v3, %v2363_v3  ;;  %v2949_v40 = vsel %vm2724_vm10, %v2363_v3, -inf  ;;  %v2182_v60 = vmax.f32 %v7649_v63, %v7651_v1  ;;  %v7760_v62 = vpop.f32.mrb[36].mxu1  ;;  %v7762_v50 = vpop.f32.mrb[84].mxu0  ;;  %v2372_v25 = vcombine.high %v2370_v26, %v2370_v26 }
 0x2aa   : > { %9313 = vst [vmem:[#allocation37_spill] sm:$0xff] %v7760_v62  ;;  %9314 = vst [vmem:[#allocation38_spill] sm:$0xff] %v7762_v50  ;;  %v7764_v45 = vmax.f32 %v2932_v15, %v2933_v2  ;;  %v7766_v13 = vmax.f32 %v2939_v23, %v2940_v52  ;;  %v2950_v12 = vrot.slane %v2949_v40, 4  ;;  %v1950_v6 = vpop.f32.mrb[37].mxu1  ;;  %v2151_v49 = vpop.f32.mrb[85].mxu0  ;;  %v2947_v58 = vrot.slane %v2946_v34, 1 }
 0x2ab   : > { %v2956_v8 = vsel %vm2724_vm10, %v2371_v18, -inf  ;;  %v2963_v33 = vsel %vm2724_vm10, %v2370_v26, -inf  ;;  %v2373_v5 = vcombine.high %v2181_v42, %v2181_v42  ;;  %v7770_v24 = vpop.f32.mrb[38].mxu1  ;;  %v7772_v63 = vpop.f32.mrb[86].mxu0  ;;  %v2970_v23 = vsel %vm2724_vm10, %v2372_v25, -inf }
 0x2ac   : > { %9315 = vst [vmem:[#allocation39_spill] sm:$0xff] %v7764_v45  ;;  %9316 = vst [vmem:[#allocation40_spill] sm:$0xff] %v7766_v13  ;;  %v2951_v1 = vmax.f32 %v2949_v40, %v2950_v12  ;;  %v2957_v57 = vrot.slane %v2956_v8, 4  ;;  %v2964_v15 = vrot.slane %v2963_v33, 4  ;;  %v1953_v0 = vpop.f32.mrb[39].mxu1  ;;  %v2154_v3 = vpop.f32.mrb[87].mxu0  ;;  %v7775_v2 = vmax.f32 %v2946_v34, %v2947_v58 }
 0x2ad   : > { %9317 = vst [vmem:[#allocation41_spill] sm:$0xff] %v7770_v24  ;;  %9318 = vst [vmem:[#allocation42_spill] sm:$0xff] %v7772_v63  ;;  %v2971_v52 = vrot.slane %v2970_v23, 4  ;;  %v2380_v6 = vrot.slane %v2181_v42, %v7569_v35  ;;  %v2387_v18 = vrot.slane %v2373_v5, %v7569_v35  ;;  %v2390_v24 = vcombine.high %v2182_v60, %v2182_v60 }
 0x2ae   : > { %9319 = vst [vmem:[#allocation43_spill] sm:$0xff] %v7775_v2  ;;  %v2952_v26 = vrot.slane %v2951_v1, 2  ;;  %v2958_v49 = vmax.f32 %v2956_v8, %v2957_v57  ;;  %v2965_v43 = vmax.f32 %v2963_v33, %v2964_v15 }
 0x2af   : > { %v7779_v62 = vmax.f32 %v2970_v23, %v2971_v52  ;;  %v2388_v40 = vcombine.high %v2380_v6, %v2380_v6  ;;  %v2389_v12 = vcombine.high %v2387_v18, %v2387_v18  ;;  %v2977_v63 = vsel %vm2724_vm10, %v2380_v6, -inf }
 0x2b0   : > { %v2953_v25 = vmax.f32 %v2951_v1, %v2952_v26  ;;  %v2959_v0 = vrot.slane %v2958_v49, 2  ;;  %v2966_v3 = vrot.slane %v2965_v43, 2  ;;  %v2978_v34 = vrot.slane %v2977_v63, 4 }
 0x2b1   : > { %9320 = vst [vmem:[#allocation44_spill] sm:$0xff] %v7779_v62  ;;  %v2984_v42 = vsel %vm2724_vm10, %v2388_v40, -inf  ;;  %v2991_v5 = vsel %vm2724_vm10, %v2387_v18, -inf  ;;  %v2998_v8 = vsel %vm2724_vm10, %v2389_v12, -inf  ;;  %v7786_v33 = vpop.f32.mrb[40].mxu1  ;;  %v7788_v57 = vpop.f32.mrb[88].mxu0  ;;  %v2397_v18 = vrot.slane %v2182_v60, %v7569_v35 }
 0x2b2   : > { %9321 = vst [vmem:[#allocation45_spill] sm:$0xff] %v7786_v33  ;;  %9322 = vst [vmem:[#allocation46_spill] sm:$0xff] %v7788_v57  ;;  %v2954_v15 = vrot.slane %v2953_v25, 1  ;;  %v7790_v23 = vmax.f32 %v2958_v49, %v2959_v0  ;;  %v7792_v1 = vmax.f32 %v2965_v43, %v2966_v3  ;;  %v2979_v52 = vmax.f32 %v2977_v63, %v2978_v34  ;;  %v1958_v6 = vpop.f32.mrb[41].mxu1  ;;  %v2159_v26 = vpop.f32.mrb[89].mxu0 }
 0x2b3   : > { %v2985_v58 = vrot.slane %v2984_v42, 4  ;;  %v2992_v62 = vrot.slane %v2991_v5, 4  ;;  %v2999_v40 = vrot.slane %v2998_v8, 4  ;;  %v7795_v12 = vpop.f32.mrb[42].mxu1  ;;  %v7797_v50 = vpop.f32.mrb[90].mxu0  ;;  %v2404_v49 = vrot.slane %v2390_v24, %v7569_v35 }
 0x2b4   : > { %9323 = vst [vmem:[#allocation47_spill] sm:$0xff] %v7790_v23  ;;  %9324 = vst [vmem:[#allocation48_spill] sm:$0xff] %v7792_v1  ;;  %v7799_v33 = vmax.f32 %v2953_v25, %v2954_v15  ;;  %v2980_v57 = vrot.slane %v2979_v52, 2  ;;  %v3541_v43 = vsel %vm3463_vm12, %v7583_v4, %v7587_v17  ;;  %v1961_v63 = vpop.f32.mrb[43].mxu1  ;;  %v2162_v0 = vpop.f32.mrb[91].mxu0  ;;  %v2405_v60 = vcombine.high %v2397_v18, %v2397_v18 }
 0x2b5   : > { %9325 = vst [vmem:[#allocation49_spill] sm:$0xff] %v7795_v12  ;;  %9326 = vst [vmem:[#allocation50_spill] sm:$0xff] %v7797_v50  ;;  %v2986_v3 = vmax.f32 %v2984_v42, %v2985_v58  ;;  %v2993_v34 = vmax.f32 %v2991_v5, %v2992_v62  ;;  %v3000_v6 = vmax.f32 %v2998_v8, %v2999_v40  ;;  %v3005_v12 = vsel %vm2724_vm10, %v2397_v18, -inf }
 0x2b6   : > { %9327 = vst [vmem:[#allocation51_spill] sm:$0xff] %v7799_v33  ;;  %v2981_v26 = vmax.f32 %v2979_v52, %v2980_v57  ;;  %v2406_v1 = vcombine.high %v2404_v49, %v2404_v49  ;;  %v3019_v25 = vsel %vm2724_vm10, %v2404_v49, -inf  ;;  %v3006_v31 = vrot.slane %v3005_v12, 4 }
 0x2b7   : > { %v2987_v15 = vrot.slane %v2986_v3, 2  ;;  %v2994_v50 = vrot.slane %v2993_v34, 2  ;;  %v3001_v24 = vrot.slane %v3000_v6, 2  ;;  %v3012_v17 = vsel %vm2724_vm10, %v2405_v60, -inf }
 0x2b8   : > { %v2982_v23 = vrot.slane %v2981_v26, 1  ;;  %v3020_v63 = vrot.slane %v3019_v25, 4  ;;  %v3026_v62 = vsel %vm2724_vm10, %v2406_v1, -inf  ;;  %v3007_v8 = vmax.f32 %v3005_v12, %v3006_v31 }
 0x2b9   : > { %v2988_v58 = vmax.f32 %v2986_v3, %v2987_v15  ;;  %v2995_v42 = vmax.f32 %v2993_v34, %v2994_v50  ;;  %v3002_v5 = vmax.f32 %v3000_v6, %v3001_v24  ;;  %v7809_v57 = vpop.f32.mrb[44].mxu1  ;;  %v7811_v52 = vpop.f32.mrb[92].mxu0  ;;  %v3013_v18 = vrot.slane %v3012_v17, 4 }
 0x2ba   : > { %v2983_v40 = vmax.f32 %v2981_v26, %v2982_v23  ;;  %v3021_v49 = vmax.f32 %v3019_v25, %v3020_v63  ;;  %v3027_v0 = vrot.slane %v3026_v62, 4  ;;  %v1966_v33 = vpop.f32.mrb[45].mxu1  ;;  %v2167_v39 = vpop.f32.mrb[93].mxu0  ;;  %v3008_v13 = vrot.slane %v3007_v8, 2 }
 0x2bb   : > { %v2989_v61 = vrot.slane %v2988_v58, 1  ;;  %v2996_v60 = vrot.slane %v2995_v42, 1  ;;  %v3003_v2 = vrot.slane %v3002_v5, 1  ;;  %v7813_v1 = vpop.f32.mrb[94].mxu0  ;;  %v3014_v3 = vmax.f32 %v3012_v17, %v3013_v18 }
 0x2bc   : > { %v3022_v50 = vrot.slane %v3021_v49, 2  ;;  %v3028_v34 = vmax.f32 %v3026_v62, %v3027_v0  ;;  %v3542_v31 = vsel %vm3465_vm13, %v7592_v53, %v3541_v43  ;;  %v2170_v12 = vpop.f32.mrb[95].mxu0  ;;  %v3009_v25 = vmax.f32 %v3007_v8, %v3008_v13 }
 0x2bd   : > { %v2990_v6 = vmax.f32 %v2988_v58, %v2989_v61  ;;  %v2997_v23 = vmax.f32 %v2995_v42, %v2996_v60  ;;  %v7817_v26 = vmax.f32 %v3002_v5, %v3003_v2  ;;  %v3015_v33 = vrot.slane %v3014_v3, 2 }
 0x2be   : > { %v3023_v39 = vmax.f32 %v3021_v49, %v3022_v50  ;;  %v3029_v15 = vrot.slane %v3028_v34, 2  ;;  %v3543_v24 = vsel %vm3467_vm14, %v7602_v27, %v3542_v31  ;;  %v3010_v61 = vrot.slane %v3009_v25, 1 }
 0x2bf   : > { %9328 = vst [vmem:[#allocation52_spill] sm:$0xff] %v7817_v26  ;;  %v3489_v63 = vsel %vm3461_vm11, %v2990_v6, %v2983_v40  ;;  %v7823_v17 = vsel %vm3461_vm11, %v2997_v23, %v2990_v6  ;;  %v7827_v43 = vsel %vm3461_vm11, %v7817_v26, %v2997_v23  ;;  %v3016_v13 = vmax.f32 %v3014_v3, %v3015_v33  ;;  %v7857_v6 = vpop.f32.mrb[46].mxu1 }
 0x2c0   : > { %v7830_v2 = vsel %vm3463_vm12, %v2997_v23, %v3489_v63  ;;  %v3024_v62 = vrot.slane %v3023_v39, 1  ;;  %v3030_v58 = vmax.f32 %v3028_v34, %v3029_v15  ;;  %v7832_v42 = vmax.f32 %v3009_v25, %v3010_v61  ;;  %v1969_v15 = vpop.f32.mrb[47].mxu1 }
 0x2c1   : > { %9329 = vst [vmem:[#allocation53_spill] sm:$0xff] %v7830_v2  ;;  %v3544_v5 = vsel %vm3469_vm15, %v7594_v46, %v3543_v24  ;;  %v3548_v8 = vsel %vm3463_vm12, %v7659_v56, %v7666_v21  ;;  %v2183_v40 = vmax.f32 %v7657_v55, %v7655_v36  ;;  %v3017_v18 = vrot.slane %v3016_v13, 1 }
 0x2c2   : > { %9330 = vst [vmem:[#allocation54_spill] sm:$0xff] %v7832_v42  ;;  %v7841_v49 = vmax.f32 %v3023_v39, %v3024_v62  ;;  %v3031_v0 = vrot.slane %v3030_v58, 1  ;;  %v3545_v60 = vsel %vm3471_vm0, %v7606_v32, %v3544_v5  ;;  %v3549_v50 = vsel %vm3465_vm13, %v7674_v38, %v3548_v8 }
 0x2c3   : > { %v3546_v3 = vsel %vm3473_vm1, %v7643_v9, %v3545_v60  ;;  %v2407_v34 = vcombine.high %v2183_v40, %v2183_v40  ;;  %v2414_v31 = vrot.slane %v2183_v40, %v7569_v35  ;;  %v7850_v21 = vmax.f32 %v3016_v13, %v3017_v18 }
 0x2c4   : > { %9331 = vst [vmem:[#allocation55_spill] sm:$0xff] %v7841_v49  ;;  %v7852_v12 = vmax.f32 %v3030_v58, %v3031_v0  ;;  %v3550_v36 = vsel %vm3467_vm14, %v7680_v30, %v3549_v50  ;;  %v2793_v55 = vrot.slane %v7636_v20, 1  ;;  %v2877_v13 = vrot.slane %v7709_v22, 1 }
 0x2c5   : > { %9332 = vst [vmem:[#allocation56_spill] sm:$0xff] %v7850_v21  ;;  %v3551_v23 = vsel %vm3469_vm15, %v7687_v11, %v3550_v36  ;;  %v2421_v25 = vrot.slane %v2407_v34, %v7569_v35  ;;  %v2422_v33 = vcombine.high %v2414_v31, %v2414_v31  ;;  %v3033_v39 = vsel %vm2724_vm10, %v2414_v31, -inf }
 0x2c6   : > { %9333 = vst [vmem:[#allocation57_spill] sm:$0xff] %v7852_v12  ;;  %v3552_v24 = vsel %vm3471_vm0, %v7695_v16, %v3551_v23  ;;  %v3034_v63 = vrot.slane %v3033_v39, 4  ;;  %v7866_v61 = vmax.f32 %v7636_v20, %v2793_v55  ;;  %v7875_v34 = vmax.f32 %v7709_v22, %v2877_v13 }
 0x2c7   : > { %v3553_v62 = vsel %vm3473_vm1, %v7717_v28, %v3552_v24  ;;  %v2423_v58 = vcombine.high %v2421_v25, %v2421_v25  ;;  %v3040_v5 = vsel %vm2724_vm10, %v2422_v33, -inf  ;;  %v3047_v8 = vsel %vm2724_vm10, %v2421_v25, -inf }
 0x2c8   : > { %9334 = vst [vmem:[#allocation58_spill] sm:$0xff] %v7866_v61  ;;  %v6261_v40 = vpack.i.bf16 %v3553_v62, %v3546_v3  ;;  %v3035_v18 = vmax.f32 %v3033_v39, %v3034_v63  ;;  %v3041_v0 = vrot.slane %v3040_v5, 4  ;;  %v3048_v60 = vrot.slane %v3047_v8, 4  ;;  %9335 = vst [vmem:[#allocation59_spill] sm:$0xff] %v7875_v34 }
 0x2c9   : > { %v3054_v50 = vsel %vm2724_vm10, %v2423_v58, -inf  ;;  %v3629_v20 = vsel %vm3463_vm12, %v7592_v53, %v7598_v47  ;;  %v3636_v31 = vsel %vm3463_vm12, %v7674_v38, %v7670_v29  ;;  %v2800_v33 = vrot.slane %v7629_v7, 1 }
 0x2ca   : > { %6262 = vrot.lane.b32.xlu0 %v6261_v40, %s6666_s16  ;;  %v3036_v3 = vrot.slane %v3035_v18, 2  ;;  %v3042_v36 = vmax.f32 %v3040_v5, %v3041_v0  ;;  %v3049_v55 = vmax.f32 %v3047_v8, %v3048_v60  ;;  %v3055_v23 = vrot.slane %v3054_v50, 4 }
 0x2cb   : > { %v3630_v25 = vsel %vm3465_vm13, %v7602_v27, %v3629_v20  ;;  %v3637_v22 = vsel %vm3465_vm13, %v7680_v30, %v3636_v31  ;;  %v2884_v47 = vrot.slane %v7704_v44, 1  ;;  %v7897_v62 = vmax.f32 %v7629_v7, %v2800_v33 }
 0x2cc   : > { %v3037_v39 = vmax.f32 %v3035_v18, %v3036_v3  ;;  %v3043_v15 = vrot.slane %v3042_v36, 2  ;;  %v3050_v29 = vrot.slane %v3049_v55, 2  ;;  %v7890_v24 = vmax.f32 %v3054_v50, %v3055_v23 }
 0x2cd   : > { %v3631_v63 = vsel %vm3467_vm14, %v7594_v46, %v3630_v25  ;;  %v3638_v13 = vsel %vm3467_vm14, %v7687_v11, %v3637_v22  ;;  %9337 = vst [vmem:[#allocation61_spill] sm:$0xff] %v7897_v62  ;;  %v7900_v58 = vmax.f32 %v7704_v44, %v2884_v47  ;;  %v3716_v7 = vsel %vm3461_vm11, %v7592_v53, %v7583_v4 }
 0x2ce   : > { %9336 = vst [vmem:[#allocation60_spill] sm:$0xff] %v7890_v24  ;;  %v3038_v5 = vrot.slane %v3037_v39, 1  ;;  %v7902_v8 = vmax.f32 %v3042_v36, %v3043_v15  ;;  %v7904_v40 = vmax.f32 %v3049_v55, %v3050_v29  ;;  %v3632_v0 = vsel %vm3469_vm15, %v7606_v32, %v3631_v63 }
 0x2cf   : > { %9338 = vst [vmem:[#allocation62_spill] sm:$0xff] %v7900_v58  ;;  %v3639_v60 = vsel %vm3469_vm15, %v7695_v16, %v3638_v13  ;;  %v3723_v44 = vsel %vm3461_vm11, %v7674_v38, %v7659_v56  ;;  %v3633_v20 = vsel %vm3471_vm0, %v7643_v9, %v3632_v0  ;;  %v3717_v3 = vsel %vm3463_vm12, %v7602_v27, %v3716_v7 }
 0x2d0   : > { %v7917_v50 = vmax.f32 %v3037_v39, %v3038_v5  ;;  %v3640_v31 = vsel %vm3471_vm0, %v7717_v28, %v3639_v60  ;;  %v3634_v36 = vsel %vm3473_vm1, %v7866_v61, %v3633_v20  ;;  %v3718_v23 = vsel %vm3465_vm13, %v7594_v46, %v3717_v3 }
 0x2d1   : > { %v3641_v55 = vsel %vm3473_vm1, %v7875_v34, %v3640_v31  ;;  %v3724_v25 = vsel %vm3463_vm12, %v7680_v30, %v3723_v44  ;;  %v3719_v33 = vsel %vm3467_vm14, %v7606_v32, %v3718_v23  ;;  %v2184_v39 = vmax.f32 %v7683_v41, %v7685_v37 }
 0x2d2   : > { %9339 = vst [vmem:[#allocation63_spill] sm:$0xff] %v7917_v50  ;;  %v6266_v22 = vpack.i.bf16 %v3641_v55, %v3634_v36  ;;  %v3725_v47 = vsel %vm3465_vm13, %v7687_v11, %v3724_v25  ;;  %v3720_v15 = vsel %vm3469_vm15, %v7643_v9, %v3719_v33  ;;  %v2185_v63 = vmax.f32 %v7691_v54, %v7693_v10  ;;  %v6396_v11 = vld [vmem:[%s9192_s5 + $0x10] sm:$0xff]  }
 0x2d3   : > { %v3726_v29 = vsel %vm3467_vm14, %v7695_v16, %v3725_v47  ;;  %v7947_v13 = vmax.f32 %v7711_v51, %v7713_v19  ;;  %v3721_v5 = vsel %vm3471_vm0, %v7866_v61, %v3720_v15  ;;  %v2424_v37 = vcombine.high %v2184_v39, %v2184_v39 }
 0x2d4   : > { %6267 = vrot.lane.b32.xlu1 %v6266_v22, %s6667_s17  ;;  %v3727_v41 = vsel %vm3469_vm15, %v7717_v28, %v3726_v29  ;;  %v2431_v0 = vrot.slane %v2184_v39, %v7569_v35  ;;  %v3722_v60 = vsel %vm3473_vm1, %v7897_v62, %v3721_v5  ;;  %v2441_v10 = vcombine.high %v2185_v63, %v2185_v63 }
 0x2d5   : > { %v3728_v54 = vsel %vm3471_vm0, %v7875_v34, %v3727_v41  ;;  %v2448_v51 = vrot.slane %v2185_v63, %v7569_v35  ;;  %v2438_v7 = vrot.slane %v2424_v37, %v7569_v35 }
 0x2d6   : > { %v3729_v19 = vsel %vm3473_vm1, %v7900_v58, %v3728_v54  ;;  %v2439_v44 = vcombine.high %v2431_v0, %v2431_v0  ;;  %v3061_v20 = vsel %vm2724_vm10, %v2431_v0, -inf  ;;  %v2455_v36 = vrot.slane %v2441_v10, %v7569_v35 }
 0x2d7   : > { %v6271_v31 = vpack.i.bf16 %v3729_v19, %v3722_v60  ;;  %v3062_v3 = vrot.slane %v3061_v20, 4  ;;  %v2456_v55 = vcombine.high %v2448_v51, %v2448_v51  ;;  %v2440_v23 = vcombine.high %v2438_v7, %v2438_v7 }
 0x2d8   : > { %v3068_v25 = vsel %vm2724_vm10, %v2439_v44, -inf  ;;  %v3075_v22 = vsel %vm2724_vm10, %v2438_v7, -inf  ;;  %v3089_v33 = vsel %vm2724_vm10, %v2448_v51, -inf  ;;  %v2457_v29 = vcombine.high %v2455_v36, %v2455_v36 }
 0x2d9   : > { %6272 = vrot.lane.b32.xlu0 %v6271_v31, %s6668_s23  ;;  %v3063_v47 = vmax.f32 %v3061_v20, %v3062_v3  ;;  %v3069_v39 = vrot.slane %v3068_v25, 4  ;;  %v3076_v15 = vrot.slane %v3075_v22, 4  ;;  %v3082_v63 = vsel %vm2724_vm10, %v2440_v23, -inf  ;;  %v6391_v20 = vld [vmem:[%s9192_s5 + $0x40] sm:$0xff]  }
 0x2da   : > { %v3090_v5 = vrot.slane %v3089_v33, 4  ;;  %v3096_v41 = vsel %vm2724_vm10, %v2456_v55, -inf  ;;  %v3103_v37 = vsel %vm2724_vm10, %v2455_v36, -inf  ;;  %v3083_v10 = vrot.slane %v3082_v63, 4  ;;  %5748 = vmatprep.subr.bf16.mxu1 %v6391_v20 }
 0x2db   : > { %v3064_v0 = vrot.slane %v3063_v47, 2  ;;  %v3070_v60 = vmax.f32 %v3068_v25, %v3069_v39  ;;  %v3077_v54 = vmax.f32 %v3075_v22, %v3076_v15  ;;  %v3097_v51 = vrot.slane %v3096_v41, 4 }
 0x2dc   : > { %v3091_v19 = vmax.f32 %v3089_v33, %v3090_v5  ;;  %v3104_v7 = vrot.slane %v3103_v37, 4  ;;  %v3110_v44 = vsel %vm2724_vm10, %v2457_v29, -inf  ;;  %v3084_v18 = vmax.f32 %v3082_v63, %v3083_v10 }
 0x2dd   : > { %v3065_v31 = vmax.f32 %v3063_v47, %v3064_v0  ;;  %v3071_v3 = vrot.slane %v3070_v60, 2  ;;  %v3078_v23 = vrot.slane %v3077_v54, 2  ;;  %v3098_v2 = vmax.f32 %v3096_v41, %v3097_v51  ;;  %v6392_v41 = vld [vmem:[%s9192_s5] sm:$0xff]  }
 0x2de   : > { %v3092_v55 = vrot.slane %v3091_v19, 2  ;;  %v3105_v36 = vmax.f32 %v3103_v37, %v3104_v7  ;;  %v3111_v56 = vrot.slane %v3110_v44, 4  ;;  %v3085_v39 = vrot.slane %v3084_v18, 2  ;;  %5749 = vmatpush3.bf16.msra.mxu1 %v6392_v41 }
 0x2df   : > { %v3066_v25 = vrot.slane %v3065_v31, 1  ;;  %v3072_v22 = vmax.f32 %v3070_v60, %v3071_v3  ;;  %v3079_v33 = vmax.f32 %v3077_v54, %v3078_v23  ;;  %v3099_v5 = vrot.slane %v3098_v2, 2 }
 0x2e0   : > { %v3093_v15 = vmax.f32 %v3091_v19, %v3092_v55  ;;  %v3106_v29 = vrot.slane %v3105_v36, 2  ;;  %v3112_v4 = vmax.f32 %v3110_v44, %v3111_v56  ;;  %v3086_v47 = vmax.f32 %v3084_v18, %v3085_v39 }
 0x2e1   : > { %v3067_v58 = vmax.f32 %v3065_v31, %v3066_v25  ;;  %v3073_v34 = vrot.slane %v3072_v22, 1  ;;  %v3080_v24 = vrot.slane %v3079_v33, 1  ;;  %v3100_v28 = vmax.f32 %v3098_v2, %v3099_v5 }
 0x2e2   : > { %v3094_v0 = vrot.slane %v3093_v15, 1  ;;  %v3107_v63 = vmax.f32 %v3105_v36, %v3106_v29  ;;  %v3113_v10 = vrot.slane %v3112_v4, 2  ;;  %v3087_v54 = vrot.slane %v3086_v47, 1 }
 0x2e3   : > { %v3074_v37 = vmax.f32 %v3072_v22, %v3073_v34  ;;  %v3081_v60 = vmax.f32 %v3079_v33, %v3080_v24  ;;  %v2458_v19 = vcombine.high %v7947_v13, %v7947_v13  ;;  %v3101_v56 = vrot.slane %v3100_v28, 1  ;;  %v9342_v22 = vld [vmem:[#allocation28_spill] sm:$0xff]  ;;  %v9343_v33 = vld [vmem:[#allocation27_spill] sm:$0xff] }
 0x2e4   : > { %v7981_v51 = vmax.f32 %v3093_v15, %v3094_v0  ;;  %v3108_v7 = vrot.slane %v3107_v63, 1  ;;  %v3114_v44 = vmax.f32 %v3112_v4, %v3113_v10  ;;  %v7983_v18 = vmax.f32 %v3086_v47, %v3087_v54  ;;  %v9345_v15 = vld [vmem:[#allocation29_spill] sm:$0xff] }
 0x2e5   : > { %v3496_v2 = vsel %vm3461_vm11, %v3074_v37, %v3067_v58  ;;  %v7987_v20 = vsel %vm3461_vm11, %v3081_v60, %v3074_v37  ;;  %v2465_v34 = vrot.slane %v7947_v13, %v7569_v35  ;;  %v7994_v31 = vmax.f32 %v3100_v28, %v3101_v56  ;;  %v9344_v28 = vld [vmem:[#allocation30_spill] sm:$0xff] }
 0x2e6   : > { %9340 = vst [vmem:[#allocation64_spill] sm:$0xff] %v7983_v18  ;;  %v7992_v24 = vsel %vm3463_vm12, %v3081_v60, %v3496_v2  ;;  %v7996_v3 = vmax.f32 %v3107_v63, %v3108_v7  ;;  %v3115_v23 = vrot.slane %v3114_v44, 1  ;;  %v8000_v4 = vsel %vm3461_vm11, %v7983_v18, %v3081_v60 }
 0x2e7   : > { %9341 = vst [vmem:[#allocation65_spill] sm:$0xff] %v7992_v24  ;;  %v2472_v58 = vrot.slane %v2458_v19, %v7569_v35  ;;  %v2473_v55 = vcombine.high %v2465_v34, %v2465_v34  ;;  %v3117_v36 = vsel %vm2724_vm10, %v2465_v34, -inf  ;;  %v2187_v39 = vmax.f32 %v9343_v33, %v9342_v22 }
 0x2e8   : > { %v8004_v25 = vmax.f32 %v3114_v44, %v3115_v23  ;;  %v3118_v13 = vrot.slane %v3117_v36, 4  ;;  %v2188_v5 = vmax.f32 %v9345_v15, %v9344_v28  ;;  %v8015_v63 = vsel %vm3463_vm12, %v7738_v59, %v7745_v14 }
 0x2e9   : > { %v2474_v29 = vcombine.high %v2472_v58, %v2472_v58  ;;  %v3124_v47 = vsel %vm2724_vm10, %v2473_v55, -inf  ;;  %v3131_v0 = vsel %vm2724_vm10, %v2472_v58, -inf  ;;  %v2475_v60 = vcombine.high %v2187_v39, %v2187_v39 }
 0x2ea   : > { %v3119_v10 = vmax.f32 %v3117_v36, %v3118_v13  ;;  %v3125_v41 = vrot.slane %v3124_v47, 4  ;;  %v3132_v37 = vrot.slane %v3131_v0, 4  ;;  %v2482_v19 = vrot.slane %v2187_v39, %v7569_v35 }
 0x2eb   : > { %v3138_v54 = vsel %vm2724_vm10, %v2474_v29, -inf  ;;  %v2492_v56 = vcombine.high %v2188_v5, %v2188_v5  ;;  %v2499_v7 = vrot.slane %v2188_v5, %v7569_v35  ;;  %v2489_v58 = vrot.slane %v2475_v60, %v7569_v35 }
 0x2ec   : > { %v3120_v44 = vrot.slane %v3119_v10, 2  ;;  %v3126_v2 = vmax.f32 %v3124_v47, %v3125_v41  ;;  %v3133_v34 = vmax.f32 %v3131_v0, %v3132_v37  ;;  %v3139_v23 = vrot.slane %v3138_v54, 4 }
 0x2ed   : > { %v2490_v55 = vcombine.high %v2482_v19, %v2482_v19  ;;  %v3145_v14 = vsel %vm2724_vm10, %v2482_v19, -inf  ;;  %v2506_v36 = vrot.slane %v2492_v56, %v7569_v35  ;;  %v2491_v39 = vcombine.high %v2489_v58, %v2489_v58 }
 0x2ee   : > { %v3121_v13 = vmax.f32 %v3119_v10, %v3120_v44  ;;  %v3127_v22 = vrot.slane %v3126_v2, 2  ;;  %v3134_v33 = vrot.slane %v3133_v34, 2  ;;  %v8023_v28 = vmax.f32 %v3138_v54, %v3139_v23 }
 0x2ef   : > { %v3146_v15 = vrot.slane %v3145_v14, 4  ;;  %v3152_v5 = vsel %vm2724_vm10, %v2490_v55, -inf  ;;  %v3159_v29 = vsel %vm2724_vm10, %v2489_v58, -inf  ;;  %v3166_v56 = vsel %vm2724_vm10, %v2491_v39, -inf }
 0x2f0   : > { %9346 = vst [vmem:[#allocation28_spill] sm:$0xff] %v8023_v28  ;;  %v3122_v47 = vrot.slane %v3121_v13, 1  ;;  %v8027_v0 = vmax.f32 %v3126_v2, %v3127_v22  ;;  %v8029_v41 = vmax.f32 %v3133_v34, %v3134_v33  ;;  %v3153_v19 = vrot.slane %v3152_v5, 4 }
 0x2f1   : > { %v3147_v60 = vmax.f32 %v3145_v14, %v3146_v15  ;;  %v3160_v10 = vrot.slane %v3159_v29, 4  ;;  %v3167_v44 = vrot.slane %v3166_v56, 4  ;;  %v2507_v23 = vcombine.high %v2499_v7, %v2499_v7 }
 0x2f2   : > { %v8033_v54 = vmax.f32 %v3121_v13, %v3122_v47  ;;  %v2508_v24 = vcombine.high %v2506_v36, %v2506_v36  ;;  %v3154_v62 = vmax.f32 %v3152_v5, %v3153_v19  ;;  %v3173_v2 = vsel %vm2724_vm10, %v2499_v7, -inf  ;;  %v6393_v13 = vld [vmem:[%s9192_s5 + $0x48] sm:$0xff]   ;;  %v6395_v7 = vld [vmem:[%s9192_s5 + $0x50] sm:$0xff]  }
 0x2f3   : > { %v3148_v55 = vrot.slane %v3147_v60, 2  ;;  %v3161_v58 = vmax.f32 %v3159_v29, %v3160_v10  ;;  %v3168_v22 = vmax.f32 %v3166_v56, %v3167_v44  ;;  %v3174_v34 = vrot.slane %v3173_v2, 4  ;;  %v6394_v5 = vld [vmem:[%s9192_s5 + $0x8] sm:$0xff]   ;;  %5750 = vmatprep.subr.bf16.mxu1 %v6393_v13 }
 0x2f4   : > { %v3180_v33 = vsel %vm2724_vm10, %v2507_v23, -inf  ;;  %v3187_v14 = vsel %vm2724_vm10, %v2506_v36, -inf  ;;  %v3155_v37 = vrot.slane %v3154_v62, 2  ;;  %v3194_v36 = vsel %vm2724_vm10, %v2508_v24, -inf  ;;  %5751 = vmatpush3.bf16.msra.mxu1 %v6394_v5 }
 0x2f5   : > { %v3149_v15 = vmax.f32 %v3147_v60, %v3148_v55  ;;  %v3162_v28 = vrot.slane %v3161_v58, 2  ;;  %v3181_v39 = vrot.slane %v3180_v33, 4  ;;  %v3169_v29 = vrot.slane %v3168_v22, 2  ;;  %5752 = vmatprep.subr.bf16.mxu1 %v6395_v7 }
 0x2f6   : > { %v3175_v47 = vmax.f32 %v3173_v2, %v3174_v34  ;;  %v3188_v19 = vrot.slane %v3187_v14, 4  ;;  %v3156_v10 = vmax.f32 %v3154_v62, %v3155_v37  ;;  %v3195_v61 = vrot.slane %v3194_v36, 4  ;;  %v6397_v62 = vld [vmem:[%s9192_s5 + $0x58] sm:$0xff]  }
 0x2f7   : > { %v3150_v60 = vrot.slane %v3149_v15, 1  ;;  %v3163_v56 = vmax.f32 %v3161_v58, %v3162_v28  ;;  %v3182_v44 = vmax.f32 %v3180_v33, %v3181_v39  ;;  %v3170_v23 = vmax.f32 %v3168_v22, %v3169_v29  ;;  %v6398_v29 = vld [vmem:[%s9192_s5 + $0x18] sm:$0xff]  }
 0x2f8   : > { %v3176_v55 = vrot.slane %v3175_v47, 2  ;;  %v3189_v16 = vmax.f32 %v3187_v14, %v3188_v19  ;;  %v3157_v30 = vrot.slane %v3156_v10, 1  ;;  %v3196_v58 = vmax.f32 %v3194_v36, %v3195_v61  ;;  %5753 = vmatpush3.bf16.msra.mxu1 %v6396_v11 }
 0x2f9   : > { %v3151_v9 = vmax.f32 %v3149_v15, %v3150_v60  ;;  %v3164_v2 = vrot.slane %v3163_v56, 1  ;;  %v3183_v34 = vrot.slane %v3182_v44, 2  ;;  %v3171_v24 = vrot.slane %v3170_v23, 1  ;;  %5754 = vmatprep.subr.bf16.mxu1 %v6397_v62 }
 0x2fa   : > { %v3177_v28 = vmax.f32 %v3175_v47, %v3176_v55  ;;  %v3190_v37 = vrot.slane %v3189_v16, 2  ;;  %v3158_v22 = vmax.f32 %v3156_v10, %v3157_v30  ;;  %v3556_v39 = vsel %vm3465_vm13, %v7751_v48, %v8015_v63 }
 0x2fb   : > { %v3165_v33 = vmax.f32 %v3163_v56, %v3164_v2  ;;  %v3184_v14 = vmax.f32 %v3182_v44, %v3183_v34  ;;  %v8057_v15 = vmax.f32 %v3170_v23, %v3171_v24  ;;  %v3197_v7 = vrot.slane %v3196_v58, 2  ;;  %v9349_v56 = vld [vmem:[#allocation40_spill] sm:$0xff]  ;;  %v9350_v2 = vld [vmem:[#allocation43_spill] sm:$0xff] }
 0x2fc   : > { %v3178_v13 = vrot.slane %v3177_v28, 1  ;;  %v3191_v5 = vmax.f32 %v3189_v16, %v3190_v37  ;;  %v3503_v47 = vsel %vm3461_vm11, %v3158_v22, %v3151_v9  ;;  %v3557_v19 = vsel %vm3467_vm14, %v7764_v45, %v3556_v39  ;;  %v6399_v16 = vld [vmem:[%s9192_s5 + $0x60] sm:$0xff]   ;;  %v9351_v24 = vld [vmem:[#allocation31_spill] sm:$0xff]  ;;  %5755 = vmatpush3.bf16.msra.mxu1 %v6398_v29 }
 0x2fd   : > { %9347 = vst [vmem:[#allocation27_spill] sm:$0xff] %v8057_v15  ;;  %v8064_v30 = vsel %vm3461_vm11, %v3165_v33, %v3158_v22  ;;  %v3185_v61 = vrot.slane %v3184_v14, 1  ;;  %v8072_v11 = vsel %vm3463_vm12, %v3165_v33, %v3503_v47  ;;  %v8076_v63 = vsel %vm3461_vm11, %v8057_v15, %v3165_v33  ;;  %v9353_v33 = vld [vmem:[#allocation51_spill] sm:$0xff]  ;;  %5756 = vmatprep.subr.bf16.mxu1 %v6399_v16 }
 0x2fe   : > { %9348 = vst [vmem:[#allocation30_spill] sm:$0xff] %v8072_v11  ;;  %v8078_v9 = vmax.f32 %v3177_v28, %v3178_v13  ;;  %v3192_v36 = vrot.slane %v3191_v5, 1  ;;  %v3198_v10 = vmax.f32 %v3196_v58, %v3197_v7  ;;  %v3558_v44 = vsel %vm3469_vm15, %v9349_v56, %v3557_v19  ;;  %v9352_v28 = vld [vmem:[#allocation32_spill] sm:$0xff]  ;;  %v9354_v39 = vld [vmem:[#allocation47_spill] sm:$0xff] }
 0x2ff   : > { %v8080_v60 = vmax.f32 %v3184_v14, %v3185_v61  ;;  %v3562_v23 = vsel %vm3463_vm12, %v7817_v26, %v7823_v17  ;;  %v3559_v34 = vsel %vm3471_vm0, %v9350_v2, %v3558_v44  ;;  %v2189_v37 = vmax.f32 %v9352_v28, %v9351_v24  ;;  %v6400_v58 = vld [vmem:[%s9192_s5 + $0x20] sm:$0xff]   ;;  %v9356_v16 = vld [vmem:[#allocation35_spill] sm:$0xff] }
 0x300   : > { %v8087_v55 = vmax.f32 %v3191_v5, %v3192_v36  ;;  %v3563_v62 = vsel %vm3465_vm13, %v7832_v42, %v3562_v23  ;;  %v3199_v22 = vrot.slane %v3198_v10, 1  ;;  %v3560_v17 = vsel %vm3473_vm1, %v9353_v33, %v3559_v34  ;;  %v6401_v5 = vld [vmem:[%s9192_s5 + $0x68] sm:$0xff]   ;;  %5757 = vmatpush3.bf16.msra.mxu1 %v6400_v58 }
 0x301   : > { %v3564_v14 = vsel %vm3467_vm14, %v7850_v21, %v3563_v62  ;;  %v2961_v13 = vrot.slane %v9354_v39, 1  ;;  %v2509_v29 = vcombine.high %v2189_v37, %v2189_v37  ;;  %v2516_v47 = vrot.slane %v2189_v37, %v7569_v35  ;;  %5758 = vmatprep.subr.bf16.mxu1 %v6401_v5 }
 0x302   : > { %v3565_v7 = vsel %vm3469_vm15, %v7841_v49, %v3564_v14  ;;  %v3045_v61 = vrot.slane %v7902_v8, 1  ;;  %v8110_v19 = vmax.f32 %v3198_v10, %v3199_v22  ;;  %v3643_v23 = vsel %vm3463_vm12, %v7751_v48, %v9356_v16  ;;  %v6402_v10 = vld [vmem:[%s9192_s5 + $0x28] sm:$0xff]  }
 0x303   : > { %v3566_v36 = vsel %vm3471_vm0, %v7852_v12, %v3565_v7  ;;  %v8115_v44 = vmax.f32 %v9354_v39, %v2961_v13  ;;  %v2523_v62 = vrot.slane %v2509_v29, %v7569_v35  ;;  %v2524_v24 = vcombine.high %v2516_v47, %v2516_v47  ;;  %v6403_v13 = vld [vmem:[%s9192_s5 + $0x70] sm:$0xff]  }
 0x304   : > { %v3567_v34 = vsel %vm3473_vm1, %v7917_v50, %v3566_v36  ;;  %v3201_v28 = vsel %vm2724_vm10, %v2516_v47, -inf  ;;  %v8128_v14 = vmax.f32 %v7902_v8, %v3045_v61  ;;  %v3644_v39 = vsel %vm3465_vm13, %v7764_v45, %v3643_v23  ;;  %5759 = vmatpush3.bf16.msra.mxu1 %v6402_v10 }
 0x305   : > { %9355 = vst [vmem:[#allocation29_spill] sm:$0xff] %v8115_v44  ;;  %v6276_v37 = vpack.i.bf16 %v3567_v34, %v3560_v17  ;;  %v3202_v22 = vrot.slane %v3201_v28, 4  ;;  %v2525_v7 = vcombine.high %v2523_v62, %v2523_v62  ;;  %v3208_v58 = vsel %vm2724_vm10, %v2524_v24, -inf  ;;  %v9358_v34 = vld [vmem:[#allocation48_spill] sm:$0xff]  ;;  %v6404_v24 = vld [vmem:[%s9192_s5 + $0x30] sm:$0xff]   ;;  %5760 = vmatprep.subr.bf16.mxu1 %v6403_v13 }
 0x306   : > { %9357 = vst [vmem:[#allocation31_spill] sm:$0xff] %v8128_v14  ;;  %v3215_v29 = vsel %vm2724_vm10, %v2523_v62, -inf  ;;  %v3645_v17 = vsel %vm3467_vm14, %v9349_v56, %v3644_v39  ;;  %v3209_v47 = vrot.slane %v3208_v58, 4  ;;  %v3650_v23 = vsel %vm3463_vm12, %v7832_v42, %v7827_v43 }
 0x307   : > { %6277 = vrot.lane.b32.xlu1 %v6276_v37, %s6666_s16  ;;  %v3203_v8 = vmax.f32 %v3201_v28, %v3202_v22  ;;  %v3216_v61 = vrot.slane %v3215_v29, 4  ;;  %v3646_v5 = vsel %vm3469_vm15, %v9350_v2, %v3645_v17  ;;  %v3222_v36 = vsel %vm2724_vm10, %v2525_v7, -inf  ;;  %v6405_v7 = vld [vmem:[%s9192_s5 + $0x78] sm:$0xff]  }
 0x308   : > { %v3647_v16 = vsel %vm3471_vm0, %v9353_v33, %v3646_v5  ;;  %v2968_v62 = vrot.slane %v9358_v34, 1  ;;  %v3210_v37 = vmax.f32 %v3208_v58, %v3209_v47  ;;  %v3223_v39 = vrot.slane %v3222_v36, 4  ;;  %5761 = vmatpush3.bf16.msra.mxu1 %v6404_v24 }
 0x309   : > { %v3204_v28 = vrot.slane %v3203_v8, 2  ;;  %v3217_v22 = vmax.f32 %v3215_v29, %v3216_v61  ;;  %v3648_v17 = vsel %vm3473_vm1, %v8115_v44, %v3647_v16  ;;  %v3651_v43 = vsel %vm3465_vm13, %v7850_v21, %v3650_v23  ;;  %5762 = vmatprep.subr.bf16.mxu1 %v6405_v7 }
 0x30a   : > { %v8160_v10 = vmax.f32 %v9358_v34, %v2968_v62  ;;  %v3052_v5 = vrot.slane %v7904_v40, 1  ;;  %v3211_v58 = vrot.slane %v3210_v37, 2  ;;  %v8163_v47 = vmax.f32 %v3222_v36, %v3223_v39 }
 0x30b   : > { %v3205_v11 = vmax.f32 %v3203_v8, %v3204_v28  ;;  %v3218_v29 = vrot.slane %v3217_v22, 2  ;;  %v3652_v13 = vsel %vm3467_vm14, %v7841_v49, %v3651_v43  ;;  %v3730_v16 = vsel %vm3461_vm11, %v7751_v48, %v7738_v59  ;;  %v6406_v8 = vld [vmem:[%s9192_s5 + $0x38] sm:$0xff]   ;;  %v9362_v43 = vld [vmem:[#allocation38_spill] sm:$0xff] }
 0x30c   : > { %9359 = vst [vmem:[#allocation32_spill] sm:$0xff] %v8160_v10  ;;  %9360 = vst [vmem:[#allocation47_spill] sm:$0xff] %v8163_v47  ;;  %v8168_v61 = vmax.f32 %v7904_v40, %v3052_v5  ;;  %v3737_v23 = vsel %vm3461_vm11, %v7832_v42, %v7817_v26  ;;  %v8179_v34 = vmax.f32 %v3210_v37, %v3211_v58  ;;  %v9363_v5 = vld [vmem:[#allocation37_spill] sm:$0xff]  ;;  %5763 = vmatpush3.bf16.msra.mxu1 %v6406_v8  ;;  %v9366_v40 = vld [vmem:[#allocation46_spill] sm:$0xff] }
 0x30d   : > { %v3206_v36 = vrot.slane %v3205_v11, 1  ;;  %v8181_v62 = vmax.f32 %v3217_v22, %v3218_v29  ;;  %v3653_v28 = vsel %vm3469_vm15, %v7852_v12, %v3652_v13  ;;  %v3731_v39 = vsel %vm3463_vm12, %v7764_v45, %v3730_v16 }
 0x30e   : > { %9361 = vst [vmem:[#allocation35_spill] sm:$0xff] %v8168_v61  ;;  %v3738_v24 = vsel %vm3463_vm12, %v7850_v21, %v3737_v23  ;;  %v2190_v26 = vmax.f32 %v9363_v5, %v9362_v43  ;;  %v3654_v37 = vsel %vm3471_vm0, %v7917_v50, %v3653_v28  ;;  %v3732_v22 = vsel %vm3465_vm13, %v9349_v56, %v3731_v39  ;;  %v9364_v5 = vld [vmem:[#allocation42_spill] sm:$0xff] }
 0x30f   : > { %v8192_v59 = vmax.f32 %v3205_v11, %v3206_v36  ;;  %v3739_v7 = vsel %vm3465_vm13, %v7841_v49, %v3738_v24  ;;  %v3655_v58 = vsel %vm3473_vm1, %v8128_v14, %v3654_v37  ;;  %v3733_v29 = vsel %vm3467_vm14, %v9350_v2, %v3732_v22  ;;  %v9365_v37 = vld [vmem:[#allocation41_spill] sm:$0xff] }
 0x310   : > { %v3740_v13 = vsel %vm3467_vm14, %v7852_v12, %v3739_v7  ;;  %v2526_v11 = vcombine.high %v2190_v26, %v2190_v26  ;;  %v6281_v16 = vpack.i.bf16 %v3655_v58, %v3648_v17  ;;  %v3734_v23 = vsel %vm3469_vm15, %v9353_v33, %v3733_v29 }
 0x311   : > { %v3741_v36 = vsel %vm3469_vm15, %v7917_v50, %v3740_v13  ;;  %v2533_v28 = vrot.slane %v2190_v26, %v7569_v35  ;;  %v3735_v39 = vsel %vm3471_vm0, %v8115_v44, %v3734_v23  ;;  %v2191_v8 = vmax.f32 %v9365_v37, %v9364_v5 }
 0x312   : > { %v3742_v24 = vsel %vm3471_vm0, %v8128_v14, %v3741_v36  ;;  %v2540_v43 = vrot.slane %v2526_v11, %v7569_v35  ;;  %6282 = vrot.lane.b32.xlu0 %v6281_v16, %s6667_s17  ;;  %v3736_v17 = vsel %vm3473_vm1, %v8160_v10, %v3735_v39 }
 0x313   : > { %v3743_v22 = vsel %vm3473_vm1, %v8168_v61, %v3742_v24  ;;  %v2541_v26 = vcombine.high %v2533_v28, %v2533_v28  ;;  %v3229_v7 = vsel %vm2724_vm10, %v2533_v28, -inf  ;;  %v2543_v5 = vcombine.high %v2191_v8, %v2191_v8  ;;  %v9367_v61 = vld [vmem:[#allocation45_spill] sm:$0xff] }
 0x314   : > { %v6286_v58 = vpack.i.bf16 %v3743_v22, %v3736_v17  ;;  %v2542_v29 = vcombine.high %v2540_v43, %v2540_v43  ;;  %v3230_v13 = vrot.slane %v3229_v7, 4  ;;  %v3243_v23 = vsel %vm2724_vm10, %v2540_v43, -inf }
 0x315   : > { %v3236_v11 = vsel %vm2724_vm10, %v2541_v26, -inf  ;;  %v3244_v36 = vrot.slane %v3243_v23, 4  ;;  %v2550_v16 = vrot.slane %v2191_v8, %v7569_v35  ;;  %v2192_v28 = vmax.f32 %v9367_v61, %v9366_v40 }
 0x316   : > { %6287 = vrot.lane.b32.xlu1 %v6286_v58, %s6668_s23  ;;  %v3231_v39 = vmax.f32 %v3229_v7, %v3230_v13  ;;  %v3237_v37 = vrot.slane %v3236_v11, 4  ;;  %v3250_v24 = vsel %vm2724_vm10, %v2542_v29, -inf  ;;  %v2557_v14 = vrot.slane %v2543_v5, %v7569_v35 }
 0x317   : > { %v3245_v17 = vmax.f32 %v3243_v23, %v3244_v36  ;;  %v3251_v22 = vrot.slane %v3250_v24, 4  ;;  %v2558_v43 = vcombine.high %v2550_v16, %v2550_v16  ;;  %v3257_v47 = vsel %vm2724_vm10, %v2550_v16, -inf }
 0x318   : > { %v3232_v10 = vrot.slane %v3231_v39, 2  ;;  %v3238_v26 = vmax.f32 %v3236_v11, %v3237_v37  ;;  %v2560_v50 = vcombine.high %v2192_v28, %v2192_v28  ;;  %v2559_v58 = vcombine.high %v2557_v14, %v2557_v14 }
 0x319   : > { %v3246_v8 = vrot.slane %v3245_v17, 2  ;;  %v3252_v44 = vmax.f32 %v3250_v24, %v3251_v22  ;;  %v3258_v7 = vrot.slane %v3257_v47, 4  ;;  %v3264_v29 = vsel %vm2724_vm10, %v2558_v43, -inf }
 0x31a   : > { %v3233_v13 = vmax.f32 %v3231_v39, %v3232_v10  ;;  %v3239_v12 = vrot.slane %v3238_v26, 2  ;;  %v3271_v61 = vsel %vm2724_vm10, %v2557_v14, -inf  ;;  %v3265_v5 = vrot.slane %v3264_v29, 4 }
 0x31b   : > { %v3247_v40 = vmax.f32 %v3245_v17, %v3246_v8  ;;  %v3253_v23 = vrot.slane %v3252_v44, 2  ;;  %v3259_v36 = vmax.f32 %v3257_v47, %v3258_v7  ;;  %v3272_v11 = vrot.slane %v3271_v61, 4 }
 0x31c   : > { %v3234_v33 = vrot.slane %v3233_v13, 1  ;;  %v3240_v49 = vmax.f32 %v3238_v26, %v3239_v12  ;;  %v3278_v16 = vsel %vm2724_vm10, %v2559_v58, -inf  ;;  %v3266_v22 = vmax.f32 %v3264_v29, %v3265_v5 }
 0x31d   : > { %v3248_v37 = vrot.slane %v3247_v40, 1  ;;  %v3254_v2 = vmax.f32 %v3252_v44, %v3253_v23  ;;  %v3260_v24 = vrot.slane %v3259_v36, 2  ;;  %v3273_v39 = vmax.f32 %v3271_v61, %v3272_v11  ;;  %v9370_v11 = vld [vmem:[#allocation50_spill] sm:$0xff] }
 0x31e   : > { %v3235_v21 = vmax.f32 %v3233_v13, %v3234_v33  ;;  %v3241_v10 = vrot.slane %v3240_v49, 1  ;;  %v3279_v42 = vrot.slane %v3278_v16, 4  ;;  %v3267_v17 = vrot.slane %v3266_v22, 2 }
 0x31f   : > { %v3249_v43 = vmax.f32 %v3247_v40, %v3248_v37  ;;  %v3255_v56 = vrot.slane %v3254_v2, 1  ;;  %v3261_v14 = vmax.f32 %v3259_v36, %v3260_v24  ;;  %v3274_v47 = vrot.slane %v3273_v39, 2 }
 0x320   : > { %v3242_v8 = vmax.f32 %v3240_v49, %v3241_v10  ;;  %v3280_v7 = vmax.f32 %v3278_v16, %v3279_v42  ;;  %v2567_v12 = vrot.slane %v2192_v28, %v7569_v35  ;;  %v3268_v45 = vmax.f32 %v3266_v22, %v3267_v17  ;;  %v9371_v16 = vld [vmem:[#allocation49_spill] sm:$0xff] }
 0x321   : > { %v8237_v26 = vmax.f32 %v3254_v2, %v3255_v56  ;;  %v3262_v58 = vrot.slane %v3261_v14, 1  ;;  %v2574_v44 = vrot.slane %v2560_v50, %v7569_v35  ;;  %v3275_v29 = vmax.f32 %v3273_v39, %v3274_v47 }
 0x322   : > { %v3510_v33 = vsel %vm3461_vm11, %v3242_v8, %v3235_v21  ;;  %v8242_v13 = vsel %vm3461_vm11, %v3249_v43, %v3242_v8  ;;  %v3281_v61 = vrot.slane %v3280_v7, 2  ;;  %v3269_v56 = vrot.slane %v3268_v45, 1 }
 0x323   : > { %9368 = vst [vmem:[#allocation48_spill] sm:$0xff] %v8237_v26  ;;  %v8245_v40 = vsel %vm3463_vm12, %v3249_v43, %v3510_v33  ;;  %v8249_v42 = vsel %vm3461_vm11, %v8237_v26, %v3249_v43  ;;  %v8251_v49 = vmax.f32 %v3261_v14, %v3262_v58  ;;  %v3276_v2 = vrot.slane %v3275_v29, 1 }
 0x324   : > { %9369 = vst [vmem:[#allocation38_spill] sm:$0xff] %v8245_v40  ;;  %v3282_v28 = vmax.f32 %v3280_v7, %v3281_v61  ;;  %v2575_v50 = vcombine.high %v2567_v12, %v2567_v12  ;;  %v2576_v23 = vcombine.high %v2574_v44, %v2574_v44  ;;  %v8253_v21 = vmax.f32 %v3268_v45, %v3269_v56 }
 0x325   : > { %v3285_v36 = vsel %vm2724_vm10, %v2567_v12, -inf  ;;  %v3299_v5 = vsel %vm2724_vm10, %v2574_v44, -inf  ;;  %v2193_v37 = vmax.f32 %v9371_v16, %v9370_v11  ;;  %v8259_v24 = vmax.f32 %v3275_v29, %v3276_v2 }
 0x326   : > { %v3283_v22 = vrot.slane %v3282_v28, 1  ;;  %v3286_v10 = vrot.slane %v3285_v36, 4  ;;  %v3292_v39 = vsel %vm2724_vm10, %v2575_v50, -inf  ;;  %v3300_v14 = vrot.slane %v3299_v5, 4 }
 0x327   : > { %v3293_v43 = vrot.slane %v3292_v39, 4  ;;  %v3306_v17 = vsel %vm2724_vm10, %v2576_v23, -inf  ;;  %v2577_v8 = vcombine.high %v2193_v37, %v2193_v37  ;;  %v2584_v12 = vrot.slane %v2193_v37, %v7569_v35 }
 0x328   : > { %v8263_v45 = vmax.f32 %v3282_v28, %v3283_v22  ;;  %v3287_v47 = vmax.f32 %v3285_v36, %v3286_v10  ;;  %v3307_v7 = vrot.slane %v3306_v17, 4  ;;  %v3301_v44 = vmax.f32 %v3299_v5, %v3300_v14 }
 0x329   : > { %v3294_v58 = vmax.f32 %v3292_v39, %v3293_v43  ;;  %v2591_v33 = vrot.slane %v2577_v8, %v7569_v35  ;;  %v2194_v29 = vmax.f32 %v7809_v57, %v7811_v52  ;;  %v2592_v2 = vcombine.high %v2584_v12, %v2584_v12 }
 0x32a   : > { %v3288_v61 = vrot.slane %v3287_v47, 2  ;;  %v8269_v56 = vmax.f32 %v3306_v17, %v3307_v7  ;;  %v3313_v50 = vsel %vm2724_vm10, %v2584_v12, -inf  ;;  %v3302_v28 = vrot.slane %v3301_v44, 2 }
 0x32b   : > { %v3295_v23 = vrot.slane %v3294_v58, 2  ;;  %v2593_v11 = vcombine.high %v2591_v33, %v2591_v33  ;;  %v3314_v36 = vrot.slane %v3313_v50, 4  ;;  %v3320_v5 = vsel %vm2724_vm10, %v2592_v2, -inf }
 0x32c   : > { %9372 = vst [vmem:[#allocation37_spill] sm:$0xff] %v8269_v56  ;;  %v3289_v16 = vmax.f32 %v3287_v47, %v3288_v61  ;;  %v3327_v22 = vsel %vm2724_vm10, %v2591_v33, -inf  ;;  %v8277_v57 = vmax.f32 %v3301_v44, %v3302_v28  ;;  %v3321_v39 = vrot.slane %v3320_v5, 4 }
 0x32d   : > { %v8275_v10 = vmax.f32 %v3294_v58, %v3295_v23  ;;  %v3315_v52 = vmax.f32 %v3313_v50, %v3314_v36  ;;  %v3328_v14 = vrot.slane %v3327_v22, 4  ;;  %v3334_v17 = vsel %vm2724_vm10, %v2593_v11, -inf }
 0x32e   : > { %v3290_v43 = vrot.slane %v3289_v16, 1  ;;  %v2594_v8 = vcombine.high %v2194_v29, %v2194_v29  ;;  %v3322_v12 = vmax.f32 %v3320_v5, %v3321_v39  ;;  %v3335_v47 = vrot.slane %v3334_v17, 4 }
 0x32f   : > { %v3316_v7 = vrot.slane %v3315_v52, 2  ;;  %v2601_v61 = vrot.slane %v2194_v29, %v7569_v35  ;;  %v3329_v2 = vmax.f32 %v3327_v22, %v3328_v14  ;;  %v3569_v44 = vsel %vm3463_vm12, %v7983_v18, %v7987_v20 }
 0x330   : > { %v8281_v37 = vmax.f32 %v3289_v16, %v3290_v43  ;;  %v2608_v58 = vrot.slane %v2594_v8, %v7569_v35  ;;  %v3323_v50 = vrot.slane %v3322_v12, 2  ;;  %v3336_v23 = vmax.f32 %v3334_v17, %v3335_v47 }
 0x331   : > { %v3317_v33 = vmax.f32 %v3315_v52, %v3316_v7  ;;  %v2609_v28 = vcombine.high %v2601_v61, %v2601_v61  ;;  %v3330_v11 = vrot.slane %v3329_v2, 2  ;;  %v3341_v5 = vsel %vm2724_vm10, %v2601_v61, -inf }
 0x332   : > { %v2610_v36 = vcombine.high %v2608_v58, %v2608_v58  ;;  %v3355_v39 = vsel %vm2724_vm10, %v2608_v58, -inf  ;;  %v3324_v16 = vmax.f32 %v3322_v12, %v3323_v50  ;;  %v3337_v43 = vrot.slane %v3336_v23, 2 }
 0x333   : > { %v3318_v29 = vrot.slane %v3317_v33, 1  ;;  %v3342_v22 = vrot.slane %v3341_v5, 4  ;;  %v3331_v14 = vmax.f32 %v3329_v2, %v3330_v11  ;;  %v3348_v8 = vsel %vm2724_vm10, %v2609_v28, -inf }
 0x334   : > { %v3356_v40 = vrot.slane %v3355_v39, 4  ;;  %v3362_v20 = vsel %vm2724_vm10, %v2610_v36, -inf  ;;  %v3325_v7 = vrot.slane %v3324_v16, 1  ;;  %v3338_v17 = vmax.f32 %v3336_v23, %v3337_v43 }
 0x335   : > { %v3319_v52 = vmax.f32 %v3317_v33, %v3318_v29  ;;  %v3343_v47 = vmax.f32 %v3341_v5, %v3342_v22  ;;  %v3332_v56 = vrot.slane %v3331_v14, 1  ;;  %v3349_v48 = vrot.slane %v3348_v8, 4 }
 0x336   : > { %v3357_v38 = vmax.f32 %v3355_v39, %v3356_v40  ;;  %v3363_v61 = vrot.slane %v3362_v20, 4  ;;  %v3326_v32 = vmax.f32 %v3324_v16, %v3325_v7  ;;  %v3339_v58 = vrot.slane %v3338_v17, 1 }
 0x337   : > { %v3344_v46 = vrot.slane %v3343_v47, 2  ;;  %v3570_v12 = vsel %vm3465_vm13, %v7981_v51, %v3569_v44  ;;  %v3333_v2 = vmax.f32 %v3331_v14, %v3332_v56  ;;  %v3350_v50 = vmax.f32 %v3348_v8, %v3349_v48 }
 0x338   : > { %v3358_v28 = vrot.slane %v3357_v38, 2  ;;  %v3364_v11 = vmax.f32 %v3362_v20, %v3363_v61  ;;  %v8293_v27 = vmax.f32 %v3338_v17, %v3339_v58  ;;  %v3517_v33 = vsel %vm3461_vm11, %v3326_v32, %v3319_v52 }
 0x339   : > { %v3345_v23 = vmax.f32 %v3343_v47, %v3344_v46  ;;  %v3571_v36 = vsel %vm3467_vm14, %v7994_v31, %v3570_v12  ;;  %v8299_v40 = vsel %vm3463_vm12, %v3333_v2, %v3517_v33  ;;  %v8302_v5 = vsel %vm3461_vm11, %v3333_v2, %v3326_v32 }
 0x33a   : > { %9373 = vst [vmem:[#allocation42_spill] sm:$0xff] %v8293_v27  ;;  %9374 = vst [vmem:[#allocation41_spill] sm:$0xff] %v8299_v40  ;;  %v3351_v39 = vrot.slane %v3350_v50, 2  ;;  %v3359_v44 = vmax.f32 %v3357_v38, %v3358_v28  ;;  %v8306_v48 = vsel %vm3461_vm11, %v8293_v27, %v3333_v2  ;;  %v3365_v29 = vrot.slane %v3364_v11, 2 }
 0x33b   : > { %v3346_v56 = vrot.slane %v3345_v23, 1  ;;  %v3572_v46 = vsel %vm3469_vm15, %v7996_v3, %v3571_v36  ;;  %v3576_v32 = vsel %vm3463_vm12, %v8057_v15, %v8064_v30  ;;  %v2195_v47 = vmax.f32 %v7857_v6, %v7813_v1 }
 0x33c   : > { %v3352_v16 = vmax.f32 %v3350_v50, %v3351_v39  ;;  %v3360_v43 = vrot.slane %v3359_v44, 1  ;;  %v3573_v22 = vsel %vm3471_vm0, %v8004_v25, %v3572_v46  ;;  %v3366_v38 = vmax.f32 %v3364_v11, %v3365_v29 }
 0x33d   : > { %v8315_v14 = vmax.f32 %v3345_v23, %v3346_v56  ;;  %v3574_v8 = vsel %vm3473_vm1, %v8033_v54, %v3573_v22  ;;  %v3577_v20 = vsel %vm3465_vm13, %v8078_v9, %v3576_v32  ;;  %v3129_v58 = vrot.slane %v8027_v0, 1 }
 0x33e   : > { %v3353_v52 = vrot.slane %v3352_v16, 1  ;;  %v8321_v7 = vmax.f32 %v3359_v44, %v3360_v43  ;;  %v3578_v17 = vsel %vm3467_vm14, %v8080_v60, %v3577_v20  ;;  %v3367_v61 = vrot.slane %v3366_v38, 1 }
 0x33f   : > { %v3579_v30 = vsel %vm3469_vm15, %v8087_v55, %v3578_v17  ;;  %v3213_v12 = vrot.slane %v8179_v34, 1  ;;  %v2611_v28 = vcombine.high %v2195_v47, %v2195_v47  ;;  %v2618_v11 = vrot.slane %v2195_v47, %v7569_v35 }
 0x340   : > { %v8331_v2 = vmax.f32 %v3352_v16, %v3353_v52  ;;  %v3580_v50 = vsel %vm3471_vm0, %v8110_v19, %v3579_v30  ;;  %v8336_v33 = vmax.f32 %v3366_v38, %v3367_v61  ;;  %v8341_v6 = vmax.f32 %v8027_v0, %v3129_v58 }
 0x341   : > { %v3581_v1 = vsel %vm3473_vm1, %v8192_v59, %v3580_v50  ;;  %v8344_v23 = vmax.f32 %v8179_v34, %v3213_v12  ;;  %v2625_v39 = vrot.slane %v2611_v28, %v7569_v35  ;;  %v2626_v44 = vcombine.high %v2618_v11, %v2618_v11 }
 0x342   : > { %v6291_v36 = vpack.i.bf16 %v3581_v1, %v3574_v8  ;;  %v3369_v56 = vsel %vm2724_vm10, %v2618_v11, -inf  ;;  %v3657_v46 = vsel %vm3463_vm12, %v7981_v51, %v8000_v4  ;;  %v3664_v16 = vsel %vm3463_vm12, %v8078_v9, %v8076_v63 }
 0x343   : > { %v3370_v29 = vrot.slane %v3369_v56, 4  ;;  %v3136_v0 = vrot.slane %v8029_v41, 1  ;;  %v2627_v34 = vcombine.high %v2625_v39, %v2625_v39  ;;  %v3376_v43 = vsel %vm2724_vm10, %v2626_v44, -inf }
 0x344   : > { %6292 = vrot.lane.b32.xlu0 %v6291_v36, %s6666_s16  ;;  %v3383_v22 = vsel %vm2724_vm10, %v2625_v39, -inf  ;;  %v3658_v32 = vsel %vm3465_vm13, %v7994_v31, %v3657_v46  ;;  %v3377_v8 = vrot.slane %v3376_v43, 4  ;;  %v3665_v17 = vsel %vm3465_vm13, %v8080_v60, %v3664_v16 }
 0x345   : > { %v3371_v38 = vmax.f32 %v3369_v56, %v3370_v29  ;;  %v3384_v20 = vrot.slane %v3383_v22, 4  ;;  %v3659_v4 = vsel %vm3467_vm14, %v7996_v3, %v3658_v32  ;;  %v3390_v63 = vsel %vm2724_vm10, %v2627_v34, -inf }
 0x346   : > { %v3660_v52 = vsel %vm3469_vm15, %v8004_v25, %v3659_v4  ;;  %v8368_v47 = vmax.f32 %v8029_v41, %v3136_v0  ;;  %v3378_v30 = vmax.f32 %v3376_v43, %v3377_v8  ;;  %v3391_v12 = vrot.slane %v3390_v63, 4 }
 0x347   : > { %v3372_v61 = vrot.slane %v3371_v38, 2  ;;  %v3385_v58 = vmax.f32 %v3383_v22, %v3384_v20  ;;  %v3661_v50 = vsel %vm3471_vm0, %v8033_v54, %v3660_v52  ;;  %v3666_v28 = vsel %vm3467_vm14, %v8087_v55, %v3665_v17  ;;  %v8411_v17 = vld [vmem:[%s9192_s5 + $0x80] sm:$0xff]  }
 0x348   : > { %v3220_v11 = vrot.slane %v8181_v62, 1  ;;  %v3744_v1 = vsel %vm3461_vm11, %v7981_v51, %v7983_v18  ;;  %v3379_v39 = vrot.slane %v3378_v30, 2  ;;  %v8378_v44 = vmax.f32 %v3390_v63, %v3391_v12  ;;  %9375 = vst [vmem:[#allocation46_spill] sm:$0xff] %v8411_v17  ;;  %5861 = vmatprep.subr.bf16.mxu1 %v8411_v17  ;;  %v9396_v18 = vld [vmem:[#allocation36_spill] sm:$0xff]  ;;  %v9405_v17 = vld [vmem:[#allocation57_spill] sm:$0xff] }
 0x349   : > { %v3373_v36 = vmax.f32 %v3371_v38, %v3372_v61  ;;  %v3386_v41 = vrot.slane %v3385_v58, 2  ;;  %v3662_v56 = vsel %vm3473_vm1, %v8341_v6, %v3661_v50  ;;  %v3667_v29 = vsel %vm3469_vm15, %v8110_v19, %v3666_v28 }
 0x34a   : > { %v8385_v46 = vmax.f32 %v8181_v62, %v3220_v11  ;;  %v3745_v16 = vsel %vm3463_vm12, %v7994_v31, %v3744_v1  ;;  %v3380_v34 = vmax.f32 %v3378_v30, %v3379_v39  ;;  %v3668_v32 = vsel %vm3471_vm0, %v8192_v59, %v3667_v29 }
 0x34b   : > { %v3374_v0 = vrot.slane %v3373_v36, 1  ;;  %v3387_v43 = vmax.f32 %v3385_v58, %v3386_v41  ;;  %v3746_v38 = vsel %vm3465_vm13, %v7996_v3, %v3745_v16  ;;  %v3751_v8 = vsel %vm3461_vm11, %v8078_v9, %v8057_v15  ;;  %v9406_v15 = vld [vmem:[#allocation29_spill] sm:$0xff] }
 0x34c   : > { %v3583_v62 = vsel %vm3463_vm12, %v8237_v26, %v8242_v13  ;;  %v3669_v4 = vsel %vm3473_vm1, %v8344_v23, %v3668_v32  ;;  %v3747_v63 = vsel %vm3467_vm14, %v8004_v25, %v3746_v38  ;;  %v3752_v52 = vsel %vm3463_vm12, %v8080_v60, %v3751_v8 }
 0x34d   : > { %v8400_v20 = vmax.f32 %v3373_v36, %v3374_v0  ;;  %v6296_v61 = vpack.i.bf16 %v3669_v4, %v3662_v56  ;;  %v3748_v13 = vsel %vm3469_vm15, %v8033_v54, %v3747_v63  ;;  %v3753_v30 = vsel %vm3465_vm13, %v8087_v55, %v3752_v52 }
 0x34e   : > { %v3584_v58 = vsel %vm3465_vm13, %v8251_v49, %v3583_v62  ;;  %v3749_v12 = vsel %vm3471_vm0, %v8341_v6, %v3748_v13  ;;  %v3754_v50 = vsel %vm3467_vm14, %v8110_v19, %v3753_v30  ;;  %v3590_v11 = vsel %vm3463_vm12, %v8293_v27, %v8302_v5 }
 0x34f   : > { %v3585_v28 = vsel %vm3467_vm14, %v8253_v21, %v3584_v58  ;;  %6297 = vrot.lane.b32.xlu1 %v6296_v61, %s6667_s17  ;;  %v3750_v1 = vsel %vm3473_vm1, %v8368_v47, %v3749_v12  ;;  %v3755_v36 = vsel %vm3469_vm15, %v8192_v59, %v3754_v50  ;;  %v3591_v41 = vsel %vm3465_vm13, %v8315_v14, %v3590_v11 }
 0x350   : > { %v3586_v39 = vsel %vm3469_vm15, %v8259_v24, %v3585_v28  ;;  %v3756_v56 = vsel %vm3471_vm0, %v8344_v23, %v3755_v36  ;;  %v3592_v29 = vsel %vm3467_vm14, %v8331_v2, %v3591_v41  ;;  %v3297_v16 = vrot.slane %v8275_v10, 1 }
 0x351   : > { %v3587_v5 = vsel %vm3471_vm0, %v8263_v45, %v3586_v39  ;;  %v3757_v0 = vsel %vm3473_vm1, %v8385_v46, %v3756_v56  ;;  %v3593_v38 = vsel %vm3469_vm15, %v8321_v7, %v3592_v29  ;;  %v3381_v8 = vrot.slane %v3380_v34, 1 }
 0x352   : > { %v3588_v32 = vsel %vm3473_vm1, %v8281_v37, %v3587_v5  ;;  %v6301_v62 = vpack.i.bf16 %v3757_v0, %v3750_v1  ;;  %v3594_v4 = vsel %vm3471_vm0, %v8336_v33, %v3593_v38  ;;  %v8454_v63 = vmax.f32 %v8275_v10, %v3297_v16  ;;  %v9376_v38 = vld [vmem:[#allocation17_spill] sm:$0xff] }
 0x353   : > { %v3671_v52 = vsel %vm3463_vm12, %v8251_v49, %v8249_v42  ;;  %v3595_v61 = vsel %vm3473_vm1, %v8400_v20, %v3594_v4  ;;  %v8461_v13 = vmax.f32 %v3380_v34, %v3381_v8  ;;  %v3678_v58 = vsel %vm3463_vm12, %v8315_v14, %v8306_v48 }
 0x354   : > { %v3672_v30 = vsel %vm3465_vm13, %v8253_v21, %v3671_v52  ;;  %6302 = vrot.lane.b32.xlu0 %v6301_v62, %s6668_s23  ;;  %v6306_v10 = vpack.i.bf16 %v3595_v61, %v3588_v32  ;;  %v3679_v42 = vsel %vm3465_vm13, %v8331_v2, %v3678_v58  ;;  %v3304_v50 = vrot.slane %v8277_v57, 1  ;;  %v9378_v61 = vld [vmem:[#allocation25_spill] sm:$0xff] }
 0x355   : > { %v3673_v12 = vsel %vm3467_vm14, %v8259_v24, %v3672_v30  ;;  %v3680_v28 = vsel %vm3467_vm14, %v8321_v7, %v3679_v42  ;;  %v3388_v11 = vrot.slane %v3387_v43, 1  ;;  %v3758_v48 = vsel %vm3461_vm11, %v8251_v49, %v8237_v26 }
 0x356   : > { %v3674_v34 = vsel %vm3469_vm15, %v8263_v45, %v3673_v12  ;;  %6307 = vrot.lane.b32.xlu1 %v6306_v10, %s6666_s16  ;;  %v3681_v36 = vsel %vm3469_vm15, %v8336_v33, %v3680_v28  ;;  %v8487_v39 = vmax.f32 %v8277_v57, %v3304_v50  ;;  %v3759_v41 = vsel %vm3463_vm12, %v8253_v21, %v3758_v48  ;;  %v9380_v50 = vld [vmem:[#allocation15_spill] sm:$0xff]  ;;  %s6669_s16 = smov 32  }
 0x357   : > { %v3675_v1 = vsel %vm3471_vm0, %v8281_v37, %v3674_v34  ;;  %v3682_v5 = vsel %vm3471_vm0, %v8400_v20, %v3681_v36  ;;  %v8495_v29 = vmax.f32 %v3387_v43, %v3388_v11  ;;  %v3760_v16 = vsel %vm3465_vm13, %v8259_v24, %v3759_v41 }
 0x358   : > { %v3676_v56 = vsel %vm3473_vm1, %v8454_v63, %v3675_v1  ;;  %v3683_v0 = vsel %vm3473_vm1, %v8461_v13, %v3682_v5  ;;  %v3761_v57 = vsel %vm3467_vm14, %v8263_v45, %v3760_v16  ;;  %v3765_v32 = vsel %vm3461_vm11, %v8315_v14, %v8293_v27  ;;  %v9381_v1 = vld [vmem:[#allocation14_spill] sm:$0xff]  ;;  %v9382_v5 = vld [vmem:[#allocation16_spill] sm:$0xff]  ;;  %v9397_v27 = vld [vmem:[#allocation39_spill] sm:$0xff] }
 0x359   : > { %v9377_v8 = vrot.slane %v9376_v38, 2  ;;  %v6311_v4 = vpack.i.bf16 %v3683_v0, %v3676_v56  ;;  %v3762_v43 = vsel %vm3469_vm15, %v8281_v37, %v3761_v57  ;;  %v3766_v52 = vsel %vm3463_vm12, %v8331_v2, %v3765_v32  ;;  %v9383_v0 = vld [vmem:[#allocation21_spill] sm:$0xff]  ;;  %v9384_v57 = vld [vmem:[#allocation22_spill] sm:$0xff] }
 0x35a   : > { %v9379_v30 = vrot.slane %v9378_v61, 2  ;;  %v3763_v10 = vsel %vm3471_vm0, %v8454_v63, %v3762_v43  ;;  %v3767_v12 = vsel %vm3465_vm13, %v8321_v7, %v3766_v52  ;;  %v3804_v34 = vsel %vm3461_vm11, %v9380_v50, %v7592_v53  ;;  %v9386_v52 = vld [vmem:[#allocation23_spill] sm:$0xff] }
 0x35b   : > { %v2806_v62 = vmax.f32 %v9376_v38, %v9377_v8  ;;  %6312 = vrot.lane.b32.xlu0 %v6311_v4, %s6667_s17  ;;  %v3764_v28 = vsel %vm3473_vm1, %v8487_v39, %v3763_v10  ;;  %v3768_v11 = vsel %vm3467_vm14, %v8336_v33, %v3767_v12  ;;  %v3805_v36 = vsel %vm3463_vm12, %v9381_v1, %v3804_v34  ;;  %v9385_v4 = vld [vmem:[#allocation18_spill] sm:$0xff]  ;;  %v9388_v12 = vld [vmem:[#allocation24_spill] sm:$0xff] }
 0x35c   : > { %v2890_v58 = vmax.f32 %v9378_v61, %v9379_v30  ;;  %v3769_v41 = vsel %vm3469_vm15, %v8400_v20, %v3768_v11  ;;  %v3806_v16 = vsel %vm3465_vm13, %v9382_v5, %v3805_v36  ;;  %v3811_v32 = vsel %vm3461_vm11, %v9384_v57, %v9383_v0  ;;  %v9387_v30 = vld [vmem:[#allocation58_spill] sm:$0xff]  ;;  %v9389_v34 = vld [vmem:[#allocation44_spill] sm:$0xff] }
 0x35d   : > { %v2807_v42 = vrot.slane %v2806_v62, 1  ;;  %v3770_v38 = vsel %vm3471_vm0, %v8461_v13, %v3769_v41  ;;  %v3807_v43 = vsel %vm3467_vm14, %v9385_v4, %v3806_v16  ;;  %v3812_v61 = vsel %vm3463_vm12, %v9386_v52, %v3811_v32  ;;  %v9392_v16 = vld [vmem:[#allocation26_spill] sm:$0xff]  ;;  %v9393_v4 = vld [vmem:[#allocation60_spill] sm:$0xff] }
 0x35e   : > { %v2891_v48 = vrot.slane %v2890_v58, 1  ;;  %v3808_v10 = vsel %vm3469_vm15, %v9387_v30, %v3807_v43  ;;  %v9390_v11 = vrot.slane %v9389_v34, 2  ;;  %v9394_v22 = vrot.slane %v9393_v4, 2  ;;  %v9395_v30 = vld [vmem:[#allocation59_spill] sm:$0xff] }
 0x35f   : > { %v2808_v56 = vmax.f32 %v2806_v62, %v2807_v42  ;;  %v3771_v62 = vsel %vm3473_vm1, %v8495_v29, %v3770_v38  ;;  %v3813_v42 = vsel %vm3465_vm13, %v9388_v12, %v3812_v61  ;;  %vm6673_vm10 = vmmov 0  }
 0x360   : > { %v2892_v8 = vmax.f32 %v2890_v58, %v2891_v48  ;;  %v2974_v36 = vmax.f32 %v9389_v34, %v9390_v11  ;;  %v6316_v58 = vpack.i.bf16 %v3771_v62, %v3764_v28  ;;  %v9391_v48 = vld [vmem:[#allocation61_spill] sm:$0xff]  ;;  %v3814_v32 = vsel %vm3467_vm14, %v9392_v16, %v3813_v42  ;;  %v9398_v62 = vld [vmem:[#allocation62_spill] sm:$0xff]  ;;  %v9399_v34 = vld [vmem:[#allocation40_spill] sm:$0xff] }
 0x361   : > { %v3809_v41 = vsel %vm3471_vm0, %v9391_v48, %v3808_v10  ;;  %v3058_v38 = vmax.f32 %v9393_v4, %v9394_v22  ;;  %v3815_v61 = vsel %vm3469_vm15, %v9395_v30, %v3814_v32  ;;  %v3818_v28 = vsel %vm3461_vm11, %v9397_v27, %v9396_v18  ;;  %v9400_v22 = vld [vmem:[#allocation54_spill] sm:$0xff]  ;;  %v9401_v48 = vld [vmem:[#allocation56_spill] sm:$0xff]  ;;  %v9402_v32 = vld [vmem:[#allocation43_spill] sm:$0xff] }
 0x362   : > { %v3810_v43 = vsel %vm3473_vm1, %v2808_v56, %v3809_v41  ;;  %v2975_v35 = vrot.slane %v2974_v36, 1  ;;  %6317 = vrot.lane.b32.xlu1 %v6316_v58, %s6668_s23  ;;  %v3816_v10 = vsel %vm3471_vm0, %v9398_v62, %v3815_v61  ;;  %v3819_v11 = vsel %vm3463_vm12, %v9399_v34, %v3818_v28  ;;  %v9403_v30 = vld [vmem:[#allocation55_spill] sm:$0xff]  ;;  %s488_s23 = sand.u32 1, %s6650_s19  }
 0x363   : > { %v3059_v42 = vrot.slane %v3058_v38, 1  ;;  %v3825_v56 = vsel %vm3461_vm11, %v9401_v48, %v9400_v22  ;;  %v3817_v41 = vsel %vm3473_vm1, %v2892_v8, %v3816_v10  ;;  %v3820_v4 = vsel %vm3465_vm13, %v9402_v32, %v3819_v11  ;;  %v9404_v61 = vld [vmem:[#allocation51_spill] sm:$0xff]  ;;  %v9408_v8 = vld [vmem:[#allocation28_spill] sm:$0xff]  ;;  %s5587_s24 = sshll.u32 %s488_s23, 3  ;;  %s5511_s17 = scalar_lea.sflag [#allocation3], %s488_s23 }
 0x364   : > { %v2976_v16 = vmax.f32 %v2974_v36, %v2975_v35  ;;  %v3826_v58 = vsel %vm3463_vm12, %v9403_v30, %v3825_v56  ;;  %v6321_v40 = vpack.i.bf16 %v3817_v41, %v3810_v43  ;;  %v3821_v62 = vsel %vm3467_vm14, %v9404_v61, %v3820_v4  ;;  %v9407_v22 = vld [vmem:[#allocation63_spill] sm:$0xff]  ;;  %v9412_v43 = vld [vmem:[#allocation32_spill] sm:$0xff]  ;;  %s490_s26 = scalar_lea.vmem [#allocation2], %s5587_s24  ;;  %s6674_s24 = smov [#allocation2]  }
 0x365   : > { %v3060_v26 = vmax.f32 %v3058_v38, %v3059_v42  ;;  %v3827_v28 = vsel %vm3465_vm13, %v9405_v17, %v3826_v58  ;;  %v3822_v48 = vsel %vm3469_vm15, %v9406_v15, %v3821_v62  ;;  %v9409_v36 = vrot.slane %v9408_v8, 2  ;;  %v9410_v11 = vld [vmem:[#allocation47_spill] sm:$0xff]  ;;  %s5524_s18 = sshll.u32 %s490_s26, 4  ;;  %s6600_s27 = sshll.u32 %s6674_s24, 4  ;;  %s9147_s18 = int_to_ptr.vmem [resolvable:$true] %s5524_s18  ;;  %s6601_s27 = int_to_ptr.vmem [resolvable:$false] %s6600_s27 }
 0x366   : > { %v3828_v35 = vsel %vm3467_vm14, %v9407_v22, %v3827_v28  ;;  %v9411_v56 = vrot.slane %v9410_v11, 2  ;;  %6322 = vrot.lane.b32.xlu0 %v6321_v40, %s6669_s16  ;;  %v3823_v42 = vsel %vm3471_vm0, %v9412_v43, %v3822_v48  ;;  %v9413_v41 = vld [vmem:[#allocation31_spill] sm:$0xff]  ;;  %v3832_v22 = vsel %vm3461_vm11, %v7994_v31, %v7981_v51  ;;  %s6602_s29 = scalar_lea.vmem %s6601_s27, 256  ;;  %p6603_p0 = scmp.lt.s32.totalorder %s9147_s18, %s6601_s27 }
 0x367   : > { %v3142_v10 = vmax.f32 %v9408_v8, %v9409_v36  ;;  %v3829_v15 = vsel %vm3469_vm15, %v9413_v41, %v3828_v35  ;;  %v3839_v4 = vsel %vm3461_vm11, %v8080_v60, %v8078_v9  ;;  %v3824_v58 = vsel %vm3473_vm1, %v2976_v16, %v3823_v42  ;;  %v9414_v61 = vld [vmem:[#allocation35_spill] sm:$0xff]  ;;  %v9415_v36 = vld [vmem:[#allocation37_spill] sm:$0xff] }
 0x368   : > { %v3226_v38 = vmax.f32 %v9410_v11, %v9411_v56  ;;  %v3830_v62 = vsel %vm3471_vm0, %v9414_v61, %v3829_v15  ;;  %v3833_v35 = vsel %vm3463_vm12, %v7996_v3, %v3832_v22  ;;  %v3840_v8 = vsel %vm3463_vm12, %v8087_v55, %v3839_v4 }
 0x369   : > { %v3143_v40 = vrot.slane %v3142_v10, 1  ;;  %v3831_v48 = vsel %vm3473_vm1, %v3060_v26, %v3830_v62  ;;  %v9416_v11 = vrot.slane %v9415_v36, 2  ;;  %v3834_v42 = vsel %vm3465_vm13, %v8004_v25, %v3833_v35 }
 0x36a   : > { %v3227_v28 = vrot.slane %v3226_v38, 1  ;;  %v6326_v43 = vpack.i.bf16 %v3831_v48, %v3824_v58  ;;  %v3835_v15 = vsel %vm3467_vm14, %v8033_v54, %v3834_v42  ;;  %v3841_v26 = vsel %vm3465_vm13, %v8110_v19, %v3840_v8  ;;  %v9419_v42 = vld [vmem:[#allocation12_spill] sm:$0xff] }
 0x36b   : > { %v3310_v56 = vmax.f32 %v9415_v36, %v9416_v11  ;;  %v3144_v41 = vmax.f32 %v3142_v10, %v3143_v40  ;;  %v9417_v61 = vrot.slane %v8378_v44, 2  ;;  %v3836_v10 = vsel %vm3469_vm15, %v8341_v6, %v3835_v15  ;;  %v6263_v6 = vpop.permute.xlu0 %6262 }
 0x36c   : > { %v3228_v16 = vmax.f32 %v3226_v38, %v3227_v28  ;;  %6327 = vrot.lane.b32.xlu1 %v6326_v43, %s6669_s16  ;;  %v3842_v38 = vsel %vm3467_vm14, %v8192_v59, %v3841_v26  ;;  %v3846_v54 = vsel %vm3461_vm11, %v8253_v21, %v8251_v49  ;;  %v3853_v58 = vsel %vm3461_vm11, %v8331_v2, %v8315_v14 }
 0x36d   : > { %v3311_v22 = vrot.slane %v3310_v56, 1  ;;  %v3394_v4 = vmax.f32 %v8378_v44, %v9417_v61  ;;  %v3837_v62 = vsel %vm3471_vm0, %v8368_v47, %v3836_v10  ;;  %v3843_v44 = vsel %vm3469_vm15, %v8344_v23, %v3842_v38  ;;  %v9420_v61 = vld [vmem:[#allocation20_spill] sm:$0xff]  ;;  %v6268_v38 = vpop.permute.xlu1 %6267 }
 0x36e   : > { %v3838_v48 = vsel %vm3473_vm1, %v3144_v41, %v3837_v62  ;;  %v3844_v59 = vsel %vm3471_vm0, %v8385_v46, %v3843_v44  ;;  %v3847_v35 = vsel %vm3463_vm12, %v8259_v24, %v3846_v54  ;;  %v3854_v8 = vsel %vm3463_vm12, %v8321_v7, %v3853_v58  ;;  %v9418_v41 = vld [vmem:[#allocation13_spill] sm:$0xff] }
 0x36f   : > { %v3312_v40 = vmax.f32 %v3310_v56, %v3311_v22  ;;  %v3395_v28 = vrot.slane %v3394_v4, 1  ;;  %v3845_v36 = vsel %vm3473_vm1, %v3228_v16, %v3844_v59  ;;  %v3848_v23 = vsel %vm3465_vm13, %v8263_v45, %v3847_v35  ;;  %v8681_v62 = vpop.permute.xlu0 %6272 }
 0x370   : > { %v3855_v11 = vsel %vm3465_vm13, %v8336_v33, %v3854_v8  ;;  %v6331_v56 = vpack.i.bf16 %v3845_v36, %v3838_v48  ;;  %v3849_v43 = vsel %vm3467_vm14, %v8281_v37, %v3848_v23  ;;  %v3466_v15 = vsel %vm3465_vm13, %v9419_v42, %v9418_v41  ;;  %v9422_v8 = vld [vmem:[#allocation34_spill] sm:$0xff]  ;;  %v9423_v36 = vld [vmem:[#allocation33_spill] sm:$0xff]  ;;  %v9425_v41 = vld [vmem:[#allocation52_spill] sm:$0xff] }
 0x371   : > { %v3396_v47 = vmax.f32 %v3394_v4, %v3395_v28  ;;  %v3856_v46 = vsel %vm3467_vm14, %v8400_v20, %v3855_v11  ;;  %v3850_v16 = vsel %vm3469_vm15, %v8454_v63, %v3849_v43  ;;  %v3468_v22 = vsel %vm3467_vm14, %v7592_v53, %v3466_v15  ;;  %v9421_v4 = vld [vmem:[#allocation19_spill] sm:$0xff] }
 0x372   : > { %v3857_v26 = vsel %vm3469_vm15, %v8461_v13, %v3856_v46  ;;  %v3477_v37 = vsel %vm3465_vm13, %v9421_v4, %v9420_v61  ;;  %6332 = vrot.lane.b32.xlu0 %v6331_v56, %s6669_s16  ;;  %v3851_v20 = vsel %vm3471_vm0, %v8487_v39, %v3850_v16  ;;  %v3470_v63 = vsel %vm3469_vm15, %v9380_v50, %v3468_v22  ;;  %v9424_v46 = vld [vmem:[#allocation53_spill] sm:$0xff]  ;;  %v9426_v22 = vld [vmem:[#allocation54_spill] sm:$0xff] }
 0x373   : > { %v3858_v10 = vsel %vm3471_vm0, %v8495_v29, %v3857_v26  ;;  %v3478_v13 = vsel %vm3467_vm14, %v9383_v0, %v3477_v37  ;;  %v3852_v53 = vsel %vm3473_vm1, %v3312_v40, %v3851_v20  ;;  %v3472_v58 = vsel %vm3471_vm0, %v9381_v1, %v3470_v63  ;;  %v9427_v37 = vld [vmem:[#allocation56_spill] sm:$0xff] }
 0x374   : > { %v3859_v54 = vsel %vm3473_vm1, %v3396_v47, %v3858_v10  ;;  %v3479_v39 = vsel %vm3469_vm15, %v9384_v57, %v3478_v13  ;;  %v3474_v50 = vsel %vm3473_vm1, %v9382_v5, %v3472_v58  ;;  %v6265_v40 = vunpack.i.h.bf16 %v6263_v6  ;;  %v9429_v13 = vld [vmem:[#allocation27_spill] sm:$0xff] }
 0x375   : > { %v6336_v29 = vpack.i.bf16 %v3859_v54, %v3852_v53  ;;  %v3480_v0 = vsel %vm3471_vm0, %v9386_v52, %v3479_v39  ;;  %v6264_v28 = vunpack.i.l.bf16 %v6263_v6  ;;  %v6270_v48 = vunpack.i.h.bf16 %v6268_v38 }
 0x376   : > { %v3481_v44 = vsel %vm3473_vm1, %v9388_v12, %v3480_v0  ;;  %v6269_v1 = vunpack.i.l.bf16 %v6268_v38  ;;  %v6275_v57 = vunpack.i.h.bf16 %v8681_v62  ;;  %v6274_v59 = vunpack.i.l.bf16 %v8681_v62 }
 0x377   : > { %6337 = vrot.lane.b32.xlu1 %v6336_v29, %s6669_s16  ;;  %v3886_v5 = vsel %vm3884_vm2, %v3481_v44, %v6265_v40  ;;  %v3885_v35 = vsel %vm3884_vm2, %v3474_v50, %v6264_v28  ;;  %v3894_v52 = vsel %vm1805_vm9, %v6265_v40, %v6270_v48  ;;  %v3484_v12 = vsel %vm3465_vm13, %v9423_v36, %v9422_v8  ;;  %v9430_v29 = vld [vmem:[#allocation46_spill] sm:$0xff]  ;;  %v9432_v50 = vld [vmem:[#allocation48_spill] sm:$0xff] }
 0x378   : > { %v3919_v6 = vpack.c.bf16 %v3886_v5, %v3885_v35  ;;  %v3893_v47 = vsel %vm1805_vm9, %v6264_v28, %v6269_v1  ;;  %v3903_v23 = vsel %vm3901_vm4, %v3894_v52, %v6275_v57  ;;  %v3485_v11 = vsel %vm3467_vm14, %v9396_v18, %v3484_v12  ;;  %v9433_v28 = vld [vmem:[#allocation41_spill] sm:$0xff] }
 0x379   : > { %v3902_v56 = vsel %vm3901_vm4, %v3893_v47, %v6274_v59  ;;  %v3486_v43 = vsel %vm3469_vm15, %v9397_v27, %v3485_v11  ;;  %v3491_v42 = vsel %vm3465_vm13, %v9425_v41, %v9424_v46  ;;  %v6278_v16 = vpop.permute.xlu1 %6277  ;;  %v6408_v27 = vld [vmem:[%s9192_s5 + $0x88] sm:$0xff]  }
 0x37a   : > { %v3920_v15 = vpack.c.bf16 %v3903_v23, %v3902_v56  ;;  %v3487_v26 = vsel %vm3471_vm0, %v9399_v34, %v3486_v43  ;;  %v3492_v61 = vsel %vm3467_vm14, %v9426_v22, %v3491_v42  ;;  %v6280_v18 = vunpack.i.h.bf16 %v6278_v16  ;;  %v9428_v34 = vld [vmem:[#allocation30_spill] sm:$0xff]  ;;  %v6412_v47 = vld [vmem:[%s9192_s5 + $0xa8] sm:$0xff]   ;;  %v9436_v42 = vld [vmem:[#allocation64_spill] sm:$0xff] }
 0x37b   : > { %v6279_v4 = vunpack.i.l.bf16 %v6278_v16  ;;  %v3493_v20 = vsel %vm3469_vm15, %v9427_v37, %v3492_v61  ;;  %v3488_v10 = vsel %vm3473_vm1, %v9402_v32, %v3487_v26  ;;  %v3505_v38 = vsel %vm3465_vm13, %v9429_v13, %v9428_v34  ;;  %v6413_v43 = vld [vmem:[%s9192_s5 + $0xb0] ss:$0 sps:$4 sm:$0xff]   ;;  %v9435_v41 = vld [vmem:[#allocation65_spill] sm:$0xff] }
 0x37c   : > { %4166 = vmatprep.mubr.bf16.mxu1 %v3920_v15  ;;  %v3494_v63 = vsel %vm3471_vm0, %v9403_v30, %v3493_v20  ;;  %v3506_v58 = vsel %vm3467_vm14, %v8078_v9, %v3505_v38  ;;  %v9431_v30 = vld [vmem:[#allocation38_spill] sm:$0xff]  ;;  %v4132_v46 = vsel %vm950_vm3, %v6413_v43, 0  ;;  %v3498_v15 = vsel %vm3465_vm13, %v9436_v42, %v9435_v41 }
 0x37d   : > { %4167 = vmatmul.mubr.bf16.vlgmr.msra.gmra.mrb[48].mxu1 %v3919_v6  ;;  %v3495_v53 = vsel %vm3473_vm1, %v9405_v17, %v3494_v63  ;;  %v3887_v54 = vsel %vm3884_vm2, %v3488_v10, %v6279_v4  ;;  %v3507_v32 = vsel %vm3469_vm15, %v8080_v60, %v3506_v58  ;;  %v3512_v0 = vsel %vm3465_vm13, %v9432_v50, %v9431_v30  ;;  %v6409_v9 = vld [vmem:[%s9192_s5 + $0x90] sm:$0xff]  }
 0x37e   : > { %v3888_v39 = vsel %vm3884_vm2, %v3495_v53, %v6280_v18  ;;  %5862 = vmatpush3.bf16.msra.mxu1 %v9430_v29  ;;  %v3508_v17 = vsel %vm3471_vm0, %v8087_v55, %v3507_v32  ;;  %v3513_v40 = vsel %vm3467_vm14, %v8251_v49, %v3512_v0  ;;  %v9434_v60 = vld [vmem:[#allocation42_spill] sm:$0xff]  ;;  %v3499_v16 = vsel %vm3467_vm14, %v7981_v51, %v3498_v15 }
 0x37f   : > { %v3922_v44 = vpack.c.bf16 %v3888_v39, %v3887_v54  ;;  %5863 = vmatprep.subr.bf16.mxu1 %v6408_v27  ;;  %v3519_v48 = vsel %vm3465_vm13, %v9434_v60, %v9433_v28  ;;  %v3509_v1 = vsel %vm3473_vm1, %v8110_v19, %v3508_v17  ;;  %v3514_v5 = vsel %vm3469_vm15, %v8253_v21, %v3513_v40  ;;  %v6410_v19 = vld [vmem:[%s9192_s5 + $0x98] sm:$0xff]   ;;  %v6414_v40 = vld [vmem:[%s9195_s8] sm:$0xff]   ;;  %v6415_v28 = vld [vmem:[%s9195_s8 + $0x8] sm:$0xff]  }
 0x380   : > { %v3520_v55 = vsel %vm3467_vm14, %v8315_v14, %v3519_v48  ;;  %v3515_v35 = vsel %vm3471_vm0, %v8259_v24, %v3514_v5  ;;  %v3500_v26 = vsel %vm3469_vm15, %v7994_v31, %v3499_v16  ;;  %5907 = vmatprep.subr.bf16.mxu0 %v6414_v40 }
 0x381   : > { %v3521_v52 = vsel %vm3469_vm15, %v8331_v2, %v3520_v55  ;;  %v3516_v49 = vsel %vm3473_vm1, %v8263_v45, %v3515_v35  ;;  %v6411_v45 = vld [vmem:[%s9192_s5 + $0xa0] sm:$0xff]   ;;  %v3501_v22 = vsel %vm3471_vm0, %v7996_v3, %v3500_v26  ;;  %5908 = vmatpush3.bf16.msra.mxu0 %v6414_v40 }
 0x382   : > { %5864 = vmatpush3.bf16.msra.mxu1 %v6408_v27  ;;  %v3522_v8 = vsel %vm3471_vm0, %v8321_v7, %v3521_v52  ;;  %v3502_v37 = vsel %vm3473_vm1, %v8004_v25, %v3501_v22  ;;  %5909 = vmatprep.subr.bf16.mxu0 %v6415_v28  ;;  %v6418_v22 = vld [vmem:[%s9195_s8 + $0x20] sm:$0xff]  }
 0x383   : > { %5865 = vmatprep.subr.bf16.mxu1 %v6409_v9  ;;  %v3523_v21 = vsel %vm3473_vm1, %v8336_v33, %v3522_v8 }
 0x384   : > { %v6283_v14 = vpop.permute.xlu0 %6282 }
 0x385   : > { %v6285_v24 = vunpack.i.h.bf16 %v6283_v14  ;;  %v6284_v36 = vunpack.i.l.bf16 %v6283_v14  ;;  %5910 = vmatpush3.bf16.msra.mxu0 %v6415_v28 }
 0x386   : > { %5866 = vmatpush3.bf16.msra.mxu1 %v6409_v9 }
 0x387   : > { %5867 = vmatprep.subr.bf16.mxu1 %v6410_v19  ;;  %v3896_v6 = vsel %vm1805_vm9, %v6280_v18, %v6285_v24  ;;  %v3895_v33 = vsel %vm1805_vm9, %v6279_v4, %v6284_v36 }
 0x388   : > { %v8772_v2 = vpop.permute.xlu1 %6287 }
 0x389   : > { %v6290_v7 = vunpack.i.h.bf16 %v8772_v2  ;;  %v6289_v12 = vunpack.i.l.bf16 %v8772_v2  ;;  %v6417_v2 = vld [vmem:[%s9195_s8 + $0x18] sm:$0xff]  }
 0x38a   : > { %5868 = vmatpush3.bf16.msra.mxu1 %v6410_v19 }
 0x38b   : > { %5869 = vmatprep.subr.bf16.mxu1 %v6411_v45  ;;  %v3904_v23 = vsel %vm3901_vm4, %v3895_v33, %v6289_v12  ;;  %v3905_v11 = vsel %vm3901_vm4, %v3896_v6, %v6290_v7 }
 0x38c   : > { %v3923_v56 = vpack.c.bf16 %v3905_v11, %v3904_v23 }
 0x38e   : > { %5870 = vmatpush3.bf16.msra.mxu1 %v6411_v45  ;;  %4174 = vmatprep.mubr.bf16.mxu1 %v3923_v56 }
 0x38f   : > { %5871 = vmatprep.subr.bf16.mxu1 %v6412_v47  ;;  %4175 = vmatmul.mubr.bf16.gmra.mrb[52].mxu1 %v3922_v44 }
 0x392   : > { %5872 = vmatpush3.bf16.msra.mxu1 %v6412_v47 }
 0x393   : > { %5967 = vmatprep.subr.msk.bf16.mxu1 %vm950_vm3, %v6413_v43 }
 0x396   : > { %5874 = vmatpush3.bf16.msra.mxu1 %v4132_v46  ;;  %v6416_v46 = vld [vmem:[%s9195_s8 + $0x10] sm:$0xff]  }
 0x397   : > { %5911 = vmatprep.subr.bf16.mxu0 %v6416_v46 }
 0x398   : > { %5912 = vmatpush3.bf16.msra.mxu0 %v6416_v46 }
 0x399   : > { %5913 = vmatprep.subr.bf16.mxu0 %v6417_v2 }
 0x39c   : > { %5914 = vmatpush3.bf16.msra.mxu0 %v6417_v2 }
 0x39d   : > { %5915 = vmatprep.subr.bf16.mxu0 %v6418_v22 }
 0x3a0   : > { %5916 = vmatpush3.bf16.msra.mxu0 %v6418_v22 }
 0x3b6   : > { %v6293_v61 = vpop.permute.xlu0 %6292 }
 0x3b7   : > { %v6295_v18 = vunpack.i.h.bf16 %v6293_v61  ;;  %v6294_v4 = vunpack.i.l.bf16 %v6293_v61  ;;  %v6419_v61 = vld [vmem:[%s9195_s8 + $0x28] sm:$0xff]  }
 0x3b8   : > { %5917 = vmatprep.subr.bf16.mxu0 %v6419_v61 }
 0x3b9   : > { %v3889_v20 = vsel %vm3884_vm2, %v3502_v37, %v6294_v4  ;;  %v3890_v27 = vsel %vm3884_vm2, %v3509_v1, %v6295_v18  ;;  %5918 = vmatpush3.bf16.msra.mxu0 %v6419_v61  ;;  %v6422_v37 = vld [vmem:[%s9195_s8 + $0x30] sm:$0xff]  }
 0x3ba   : > { %v3925_v10 = vpack.c.bf16 %v3890_v27, %v3889_v20  ;;  %5919 = vmatprep.subr.bf16.mxu0 %v6422_v37  ;;  %v6423_v20 = vld [vmem:[%s9194_s7 + $0x10] sm:$0xff]   ;;  %v6424_v27 = vld [vmem:[%s9194_s7 + $0x18] sm:$0xff]  }
 0x3bd   : > { %5920 = vmatpush3.bf16.msra.mxu0 %v6422_v37 }
 0x3c1   : > { %v6298_v63 = vpop.permute.xlu1 %6297 }
 0x3c2   : > { %v6300_v34 = vunpack.i.h.bf16 %v6298_v63  ;;  %v6299_v51 = vunpack.i.l.bf16 %v6298_v63 }
 0x3c4   : > { %v3898_v53 = vsel %vm1805_vm9, %v6295_v18, %v6300_v34  ;;  %v3897_v3 = vsel %vm1805_vm9, %v6294_v4, %v6299_v51  ;;  %v6420_v18 = vld [vmem:[%s9194_s7] sm:$0xff]   ;;  %v6421_v4 = vld [vmem:[%s9194_s7 + $0x8] sm:$0xff]  }
 0x3c5   : > { %5883 = vmatprep.subr.bf16.mxu1 %v6420_v18 }
 0x3c6   : > { %v6303_v13 = vpop.permute.xlu0 %6302 }
 0x3c7   : > { %v6305_v38 = vunpack.i.h.bf16 %v6303_v13  ;;  %v6304_v31 = vunpack.i.l.bf16 %v6303_v13 }
 0x3c8   : > { %v6308_v54 = vpop.permute.xlu1 %6307 }
 0x3c9   : > { %v3906_v58 = vsel %vm3901_vm4, %v3897_v3, %v6304_v31  ;;  %v3907_v25 = vsel %vm3901_vm4, %v3898_v53, %v6305_v38  ;;  %v6310_v39 = vunpack.i.h.bf16 %v6308_v54  ;;  %v6309_v32 = vunpack.i.l.bf16 %v6308_v54  ;;  %v6426_v53 = vld [vmem:[%s9195_s8 + $0x38] sm:$0xff]   ;;  %v6427_v3 = vld [vmem:[%s9194_s7 + $0x28] sm:$0xff]   ;;  %v6428_v54 = vld [vmem:[%s9194_s7 + $0x30] sm:$0xff]  }
 0x3ca   : > { %v3926_v29 = vpack.c.bf16 %v3907_v25, %v3906_v58  ;;  %5921 = vmatprep.subr.bf16.mxu0 %v6426_v53  ;;  %v6429_v58 = vld [vmem:[%s9194_s7 + $0x38] sm:$0xff]  }
 0x3cb   : > { %v3891_v30 = vsel %vm3884_vm2, %v3516_v49, %v6309_v32  ;;  %v3892_v50 = vsel %vm3884_vm2, %v3523_v21, %v6310_v39  ;;  %5922 = vmatpush3.bf16.msra.mxu0 %v6426_v53 }
 0x3cc   : > { %4182 = vmatprep.mubr.bf16.mxu1 %v3926_v29  ;;  %v3928_v0 = vpack.c.bf16 %v3892_v50, %v3891_v30 }
 0x3cd   : > { %4183 = vmatmul.mubr.bf16.gmra.mrb[56].mxu1 %v3925_v10  ;;  %v6313_v44 = vpop.permute.xlu0 %6312 }
 0x3ce   : > { %v6315_v17 = vunpack.i.h.bf16 %v6313_v44  ;;  %v6314_v9 = vunpack.i.l.bf16 %v6313_v44 }
 0x3d0   : > { %v3900_v5 = vsel %vm1805_vm9, %v6310_v39, %v6315_v17  ;;  %v3899_v55 = vsel %vm1805_vm9, %v6309_v32, %v6314_v9  ;;  %vm5107_vm9 = vcmask 523264  }
 0x3d4   : > { %v6318_v60 = vpop.permute.xlu1 %6317 }
 0x3d5   : > { %v6320_v48 = vunpack.i.h.bf16 %v6318_v60  ;;  %v6319_v1 = vunpack.i.l.bf16 %v6318_v60 }
 0x3d7   : > { %v3908_v35 = vsel %vm3901_vm4, %v3899_v55, %v6319_v1  ;;  %v3909_v52 = vsel %vm3901_vm4, %v3900_v5, %v6320_v48 }
 0x3d8   : > { %v6323_v49 = vpop.permute.xlu0 %6322  ;;  %v3929_v8 = vpack.c.bf16 %v3909_v52, %v3908_v35  ;;  %v5664_v52 = vld [vmem:[%s9193_s6] ss:$0 sm:$0xff] }
 0x3d9   : > { %v6325_v19 = vunpack.i.h.bf16 %v6323_v49  ;;  %v6324_v21 = vunpack.i.l.bf16 %v6323_v49 }
 0x3da   : > { %4190 = vmatprep.mubr.bf16.mxu1 %v3929_v8 }
 0x3db   : > { %v3912_v14 = vsel %vm3910_vm5, %v6275_v57, %v6325_v19  ;;  %v3911_v24 = vsel %vm3910_vm5, %v6274_v59, %v6324_v21  ;;  %4191 = vmatmul.mubr.bf16.gmra.mrb[60].mxu1 %v3928_v0 }
 0x3dc   : > { %v3921_v36 = vpack.c.bf16 %v3912_v14, %v3911_v24 }
 0x3de   : > { %v6328_v45 = vpop.permute.xlu1 %6327  ;;  %5875 = vmatprep.mubr.msk.bf16.mxu1 %vm4118_vm7, %v3921_v36 }
 0x3df   : > { %v6330_v6 = vunpack.i.h.bf16 %v6328_v45  ;;  %v6329_v33 = vunpack.i.l.bf16 %v6328_v45 }
 0x3e1   : > { %v3914_v47 = vsel %vm3910_vm5, %v6290_v7, %v6330_v6  ;;  %v3913_v57 = vsel %vm3910_vm5, %v6289_v12, %v6329_v33 }
 0x3e2   : > { %v3924_v23 = vpack.c.bf16 %v3914_v47, %v3913_v57 }
 0x3e4   : > { %v6333_v62 = vpop.permute.xlu0 %6332  ;;  %5876 = vmatmul.mubr.msk.bf16.vlgmr.msra.gmra.mrb[64].mxu1 %vm4118_vm7, %v3924_v23 }
 0x3e5   : > { %v6335_v59 = vunpack.i.h.bf16 %v6333_v62  ;;  %v6334_v11 = vunpack.i.l.bf16 %v6333_v62  ;;  %5884 = vmatpush3.bf16.msra.mxu1 %v6420_v18 }
 0x3e6   : > { %5885 = vmatprep.subr.bf16.mxu1 %v6421_v4 }
 0x3e7   : > { %v3916_v56 = vsel %vm3910_vm5, %v6305_v38, %v6335_v59  ;;  %v3915_v43 = vsel %vm3910_vm5, %v6304_v31, %v6334_v11  ;;  %v6425_v31 = vld [vmem:[%s9194_s7 + $0x20] sm:$0xff]  }
 0x3e8   : > { %v3927_v7 = vpack.c.bf16 %v3916_v56, %v3915_v43 }
 0x3e9   : > { %v6338_v12 = vpop.permute.xlu1 %6337  ;;  %5886 = vmatpush3.bf16.msra.mxu1 %v6421_v4 }
 0x3ea   : > { %v6340_v41 = vunpack.i.h.bf16 %v6338_v12  ;;  %v6339_v42 = vunpack.i.l.bf16 %v6338_v12  ;;  %5879 = vmatprep.mubr.msk.bf16.mxu1 %vm4118_vm7, %v3927_v7  ;;  %5887 = vmatprep.subr.bf16.mxu1 %v6423_v20 }
 0x3ec   : > { %v3918_v15 = vsel %vm3910_vm5, %v6320_v48, %v6340_v41  ;;  %v3917_v16 = vsel %vm3910_vm5, %v6319_v1, %v6339_v42 }
 0x3ed   : > { %v3930_v26 = vpack.c.bf16 %v3918_v15, %v3917_v16  ;;  %5888 = vmatpush3.bf16.msra.mxu1 %v6423_v20 }
 0x3ee   : > { %5889 = vmatprep.subr.bf16.mxu1 %v6424_v27 }
 0x3ef   : > { %5880 = vmatmul.mubr.msk.bf16.gmra.mrb[68].mxu1 %vm4118_vm7, %v3930_v26 }
 0x3f1   : > { %5890 = vmatpush3.bf16.msra.mxu1 %v6424_v27 }
 0x3f2   : > { %5891 = vmatprep.subr.bf16.mxu1 %v6425_v31 }
 0x3f5   : > { %5892 = vmatpush3.bf16.msra.mxu1 %v6425_v31 }
 0x3f6   : > { %5893 = vmatprep.subr.bf16.mxu1 %v6427_v3 }
 0x3f9   : > { %5894 = vmatpush3.bf16.msra.mxu1 %v6427_v3 }
 0x3fa   : > { %5895 = vmatprep.subr.bf16.mxu1 %v6428_v54 }
 0x3fd   : > { %5896 = vmatpush3.bf16.msra.mxu1 %v6428_v54 }
 0x3fe   : > { %5897 = vmatprep.subr.bf16.mxu1 %v6429_v58 }
 0x401   : > { %5898 = vmatpush3.bf16.msra.mxu1 %v6429_v58 }
 0x450   : > { %v5764_v10 = vpop.f32.mrb[48].mxu1 }
 0x451   : > { %v5765_v63 = vpop.f32.mrb[49].mxu1 }
 0x452   : > { %v5766_v34 = vadd.f32 %v5765_v63, %v5764_v10  ;;  %v5767_v51 = vpop.f32.mrb[50].mxu1 }
 0x453   : > { %v5768_v13 = vpop.f32.mrb[51].mxu1 }
 0x454   : > { %v5769_v38 = vadd.f32 %v5768_v13, %v5767_v51  ;;  %v4169_v19 = vadd.f32 %v5766_v34, %v5664_v52 }
 0x456   : > { %v4172_v6 = vadd.f32 %v5769_v38, %v5664_v52 }
 0x462   : > { %v5770_v25 = vpop.f32.mrb[52].mxu1 }
 0x463   : > { %v5771_v39 = vpop.f32.mrb[53].mxu1 }
 0x464   : > { %v5772_v32 = vadd.f32 %v5771_v39, %v5770_v25  ;;  %v5773_v29 = vpop.f32.mrb[54].mxu1 }
 0x465   : > { %v5774_v30 = vpop.f32.mrb[55].mxu1 }
 0x466   : > { %v5775_v50 = vadd.f32 %v5774_v30, %v5773_v29  ;;  %v4177_v49 = vadd.f32 %v5772_v32, %v5664_v52 }
 0x468   : > { %v4180_v24 = vadd.f32 %v5775_v50, %v5664_v52 }
 0x4a0   : > { %v5776_v0 = vpop.f32.mrb[56].mxu1 }
 0x4a1   : > { %v5777_v44 = vpop.f32.mrb[57].mxu1 }
 0x4a2   : > { %v5778_v17 = vadd.f32 %v5777_v44, %v5776_v0  ;;  %v5779_v9 = vpop.f32.mrb[58].mxu1 }
 0x4a3   : > { %v5780_v40 = vpop.f32.mrb[59].mxu1 }
 0x4a4   : > { %v5781_v28 = vadd.f32 %v5780_v40, %v5779_v9  ;;  %v4185_v46 = vadd.f32 %v5778_v17, %v5664_v52 }
 0x4a6   : > { %v4188_v15 = vadd.f32 %v5781_v28, %v5664_v52 }
 0x4ae   : > { %v5782_v60 = vpop.f32.mrb[60].mxu1 }
 0x4af   : > { %v5783_v48 = vpop.f32.mrb[61].mxu1 }
 0x4b0   : > { %v5784_v1 = vadd.f32 %v5783_v48, %v5782_v60  ;;  %v5785_v5 = vpop.f32.mrb[62].mxu1 }
 0x4b1   : > { %v5786_v55 = vpop.f32.mrb[63].mxu1 }
 0x4b2   : > { %v5787_v35 = vadd.f32 %v5786_v55, %v5785_v5  ;;  %v4193_v56 = vadd.f32 %v5784_v1, %v5664_v52  ;;  %v6430_v5 = vld [vmem:[%s9196_s9 + $0x40] sm:$0xff]  }
 0x4b3   : > { %v6431_v55 = vld [vmem:[%s9196_s9] sm:$0xff]   ;;  %5823 = vmatprep.subr.bf16.mxu1 %v6430_v5 }
 0x4b4   : > { %v4196_v12 = vadd.f32 %v5787_v35, %v5664_v52  ;;  %v6432_v35 = vld [vmem:[%s9196_s9 + $0x48] sm:$0xff]  }
 0x4b5   : > { %v6433_v52 = vld [vmem:[%s9196_s9 + $0x8] sm:$0xff]  }
 0x4b7   : > { %v5877_v8 = vpop.f32.mrb[64].mxu1 }
 0x4b8   : > { %v4242_v21 = vadd.f32 %v5877_v8, %v4177_v49  ;;  %v4233_v14 = vpop.f32.mrb[65].mxu1  ;;  %v6434_v49 = vld [vmem:[%s9196_s9 + $0x50] sm:$0xff]  }
 0x4b9   : > { %v4234_v36 = vadd.f32 %v4233_v14, %v4169_v19  ;;  %v5878_v45 = vpop.f32.mrb[66].mxu1  ;;  %v6435_v8 = vld [vmem:[%s9196_s9 + $0x10] sm:$0xff]   ;;  %v6436_v19 = vld [vmem:[%s9196_s9 + $0x58] sm:$0xff]   ;;  %v6438_v14 = vld [vmem:[%s9196_s9 + $0x60] sm:$0xff]  }
 0x4ba   : > { %v4266_v33 = vmul.f32 0.5, %v4242_v21  ;;  %v4245_v47 = vadd.f32 %v5878_v45, %v4180_v24  ;;  %v4236_v57 = vpop.f32.mrb[67].mxu1  ;;  %v6437_v21 = vld [vmem:[%s9196_s9 + $0x18] sm:$0xff]   ;;  %v6439_v24 = vld [vmem:[%s9196_s9 + $0x20] sm:$0xff]   ;;  %v6441_v45 = vld [vmem:[%s9196_s9 + $0x28] sm:$0xff]  }
 0x4bb   : > { %v4264_v23 = vmul.f32 0.5, %v4234_v36  ;;  %v4237_v62 = vadd.f32 %v4236_v57, %v4172_v6  ;;  %v6440_v36 = vld [vmem:[%s9196_s9 + $0x68] sm:$0xff]   ;;  %v6442_v6 = vld [vmem:[%s9196_s9 + $0x70] sm:$0xff]  }
 0x4bc   : > { %6556 = vtanh.f32 %v4266_v33  ;;  %v4267_v59 = vmul.f32 0.5, %v4245_v47  ;;  %v6443_v33 = vld [vmem:[%s9196_s9 + $0x30] sm:$0xff]  }
 0x4bd   : > { %6558 = vtanh.f32 %v4264_v23  ;;  %v4265_v11 = vmul.f32 0.5, %v4237_v62 }
 0x4be   : > { %6560 = vtanh.f32 %v4267_v59 }
 0x4bf   : > { %6562 = vtanh.f32 %v4265_v11 }
 0x4c2   : > { %v5881_v43 = vpop.f32.mrb[68].mxu1 }
 0x4c3   : > { %v4258_v2 = vadd.f32 %v5881_v43, %v4193_v56  ;;  %v4249_v7 = vpop.f32.mrb[69].mxu1 }
 0x4c4   : > { %v4250_v41 = vadd.f32 %v4249_v7, %v4185_v46  ;;  %v5882_v42 = vpop.f32.mrb[70].mxu1 }
 0x4c5   : > { %v4270_v16 = vmul.f32 0.5, %v4258_v2  ;;  %v4261_v26 = vadd.f32 %v5882_v42, %v4196_v12  ;;  %v4252_v22 = vpop.f32.mrb[71].mxu1  ;;  %v9437_v2 = vld [vmem:[#allocation11_spill] sm:$0xff] }
 0x4c6   : > { %v4268_v61 = vmul.f32 0.5, %v4250_v41  ;;  %v4253_v18 = vadd.f32 %v4252_v22, %v4188_v15  ;;  %v6557_v4 = vpop.eup %6556 }
 0x4c7   : > { %6564 = vtanh.f32 %v4270_v16  ;;  %v4271_v37 = vmul.f32 0.5, %v4261_v26  ;;  %v6559_v20 = vpop.eup %6558  ;;  %v4282_v27 = vmul.f32 0.5, %v6557_v4 }
 0x4c8   : > { %6566 = vtanh.f32 %v4268_v61  ;;  %v4269_v10 = vmul.f32 0.5, %v4253_v18  ;;  %v6561_v63 = vpop.eup %6560  ;;  %v4280_v34 = vmul.f32 0.5, %v6559_v20 }
 0x4c9   : > { %6568 = vtanh.f32 %v4271_v37  ;;  %v6563_v51 = vpop.eup %6562  ;;  %v4283_v13 = vmul.f32 0.5, %v6561_v63  ;;  %v4290_v31 = vadd.f32 0.5, %v4282_v27 }
 0x4ca   : > { %6570 = vtanh.f32 %v4269_v10  ;;  %v4281_v38 = vmul.f32 0.5, %v6563_v51  ;;  %v4288_v3 = vadd.f32 0.5, %v4280_v34 }
 0x4cb   : > { %v4291_v53 = vadd.f32 0.5, %v4283_v13 }
 0x4cc   : > { %v4289_v54 = vadd.f32 0.5, %v4281_v38 }
 0x4cd   : > { %v4297_v58 = vpack.c.bf16 %v4291_v53, %v4290_v31 }
 0x4ce   : > { %v4296_v25 = vpack.c.bf16 %v4289_v54, %v4288_v3 }
 0x4d0   : > { %5899 = vmatprep.mubr.bf16.mxu1 %v4296_v25  ;;  %5923 = vmatprep.mubr.bf16.mxu0 %v4296_v25 }
 0x4d1   : > { %v6565_v39 = vpop.eup %6564  ;;  %5900 = vmatmul.mubr.bf16.vlgmr.msra.gmra.mrb[72].mxu1 %v4297_v58  ;;  %5924 = vmatmul.mubr.bf16.vlgmr.msra.gmra.mrb[96].mxu0 %v4297_v58 }
 0x4d2   : > { %v6567_v32 = vpop.eup %6566  ;;  %v4286_v29 = vmul.f32 0.5, %v6565_v39  ;;  %5824 = vmatpush3.bf16.msra.mxu1 %v6431_v55 }
 0x4d3   : > { %v6569_v30 = vpop.eup %6568  ;;  %v4284_v50 = vmul.f32 0.5, %v6567_v32  ;;  %5825 = vmatprep.subr.bf16.mxu1 %v6432_v35 }
 0x4d4   : > { %v6571_v0 = vpop.eup %6570  ;;  %v4287_v44 = vmul.f32 0.5, %v6569_v30  ;;  %v4294_v9 = vadd.f32 0.5, %v4286_v29 }
 0x4d5   : > { %v4285_v17 = vmul.f32 0.5, %v6571_v0  ;;  %v4292_v28 = vadd.f32 0.5, %v4284_v50 }
 0x4d6   : > { %v4295_v40 = vadd.f32 0.5, %v4287_v44  ;;  %5826 = vmatpush3.bf16.msra.mxu1 %v6433_v52 }
 0x4d7   : > { %v4293_v60 = vadd.f32 0.5, %v4285_v17  ;;  %5827 = vmatprep.subr.bf16.mxu1 %v6434_v49 }
 0x4d8   : > { %v4299_v48 = vpack.c.bf16 %v4295_v40, %v4294_v9 }
 0x4d9   : > { %v4298_v1 = vpack.c.bf16 %v4293_v60, %v4292_v28 }
 0x4da   : > { %5828 = vmatpush3.bf16.msra.mxu1 %v6435_v8 }
 0x4db   : > { %5903 = vmatprep.mubr.bf16.mxu1 %v4298_v1  ;;  %5927 = vmatprep.mubr.bf16.mxu0 %v4298_v1 }
 0x4dc   : > { %5904 = vmatmul.mubr.bf16.gmra.mrb[76].mxu1 %v4299_v48  ;;  %5928 = vmatmul.mubr.bf16.gmra.mrb[100].mxu0 %v4299_v48 }
 0x4dd   : > { %5829 = vmatprep.subr.bf16.mxu1 %v6436_v19 }
 0x4de   : > { %5830 = vmatpush3.bf16.msra.mxu1 %v6437_v21 }
 0x4df   : > { %5831 = vmatprep.subr.bf16.mxu1 %v6438_v14 }
 0x4e2   : > { %5832 = vmatpush3.bf16.msra.mxu1 %v6439_v24 }
 0x4e3   : > { %5833 = vmatprep.subr.bf16.mxu1 %v6440_v36 }
 0x4e6   : > { %5834 = vmatpush3.bf16.msra.mxu1 %v6441_v45 }
 0x4e7   : > { %5835 = vmatprep.subr.bf16.mxu1 %v6442_v6 }
 0x4ea   : > { %5836 = vmatpush3.bf16.msra.mxu1 %v6443_v33 }
 0x5a4   : > { %v5901_v47 = vpop.f32.mrb[72].mxu1  ;;  %v5925_v57 = vpop.f32.mrb[96].mxu0 }
 0x5a5   : > { %v4560_v23 = vmax.f32 %v5901_v47, %v5925_v57  ;;  %v4398_v62 = vpop.f32.mrb[73].mxu1  ;;  %v4527_v59 = vpop.f32.mrb[97].mxu0 }
 0x5a6   : > { %v4558_v11 = vmax.f32 %v4398_v62, %v4527_v59  ;;  %v5902_v56 = vpop.f32.mrb[74].mxu1  ;;  %v5926_v43 = vpop.f32.mrb[98].mxu0 }
 0x5a7   : > { %v4608_v46 = vcombine.high %v4560_v23, %v4560_v23  ;;  %v4615_v7 = vrot.slane %v4560_v23, %v9437_v2  ;;  %v8929_v12 = vmax.f32 %v5902_v56, %v5926_v43  ;;  %v4401_v41 = vpop.f32.mrb[75].mxu1  ;;  %v4530_v42 = vpop.f32.mrb[99].mxu0 }
 0x5a8   : > { %v4574_v15 = vcombine.high %v4558_v11, %v4558_v11  ;;  %v4581_v16 = vrot.slane %v4558_v11, %v9437_v2  ;;  %v8932_v26 = vmax.f32 %v4401_v41, %v4530_v42 }
 0x5a9   : > { %v4622_v22 = vrot.slane %v4608_v46, %v9437_v2  ;;  %v4623_v61 = vcombine.high %v4615_v7, %v4615_v7  ;;  %v4799_v18 = vsel %vm4742_vm8, %v4615_v7, -inf  ;;  %v4625_v62 = vcombine.high %v8929_v12, %v8929_v12 }
 0x5aa   : > { %v4800_v4 = vrot.slane %v4799_v18, 4  ;;  %v4588_v37 = vrot.slane %v4574_v15, %v9437_v2  ;;  %v4589_v20 = vcombine.high %v4581_v16, %v4581_v16  ;;  %v4743_v27 = vsel %vm4742_vm8, %v4581_v16, -inf }
 0x5ab   : > { %v4624_v10 = vcombine.high %v4622_v22, %v4622_v22  ;;  %v4806_v63 = vsel %vm4742_vm8, %v4623_v61, -inf  ;;  %v4813_v34 = vsel %vm4742_vm8, %v4622_v22, -inf  ;;  %v4744_v51 = vrot.slane %v4743_v27, 4 }
 0x5ac   : > { %v4801_v13 = vmax.f32 %v4799_v18, %v4800_v4  ;;  %v4807_v38 = vrot.slane %v4806_v63, 4  ;;  %v4814_v31 = vrot.slane %v4813_v34, 4  ;;  %v4590_v53 = vcombine.high %v4588_v37, %v4588_v37 }
 0x5ad   : > { %v4820_v3 = vsel %vm4742_vm8, %v4624_v10, -inf  ;;  %v4745_v54 = vmax.f32 %v4743_v27, %v4744_v51  ;;  %v4750_v58 = vsel %vm4742_vm8, %v4589_v20, -inf  ;;  %v4757_v25 = vsel %vm4742_vm8, %v4588_v37, -inf }
 0x5ae   : > { %v4802_v39 = vrot.slane %v4801_v13, 2  ;;  %v4808_v32 = vmax.f32 %v4806_v63, %v4807_v38  ;;  %v4815_v29 = vmax.f32 %v4813_v34, %v4814_v31  ;;  %v4821_v30 = vrot.slane %v4820_v3, 4 }
 0x5af   : > { %v8943_v50 = vpop.f32.mrb[76].mxu1  ;;  %v8945_v0 = vpop.f32.mrb[100].mxu0  ;;  %v4746_v44 = vrot.slane %v4745_v54, 2  ;;  %v4751_v17 = vrot.slane %v4750_v58, 4  ;;  %v4758_v9 = vrot.slane %v4757_v25, 4  ;;  %v4764_v40 = vsel %vm4742_vm8, %v4590_v53, -inf }
 0x5b0   : > { %v8948_v28 = vpop.f32.mrb[77].mxu1  ;;  %v4543_v60 = vpop.f32.mrb[101].mxu0  ;;  %v4803_v48 = vmax.f32 %v4801_v13, %v4802_v39  ;;  %v4809_v1 = vrot.slane %v4808_v32, 2  ;;  %v4816_v5 = vrot.slane %v4815_v29, 2  ;;  %v4822_v55 = vmax.f32 %v4820_v3, %v4821_v30 }
 0x5b1   : > { %v8950_v35 = vpop.f32.mrb[78].mxu1  ;;  %v8952_v52 = vpop.f32.mrb[102].mxu0  ;;  %v4747_v49 = vmax.f32 %v4745_v54, %v4746_v44  ;;  %v4752_v8 = vmax.f32 %v4750_v58, %v4751_v17  ;;  %v4759_v19 = vmax.f32 %v4757_v25, %v4758_v9  ;;  %v4765_v21 = vrot.slane %v4764_v40, 4 }
 0x5b2   : > { %v8954_v14 = vpop.f32.mrb[79].mxu1  ;;  %v8956_v24 = vpop.f32.mrb[103].mxu0  ;;  %v4804_v36 = vrot.slane %v4803_v48, 1  ;;  %v4810_v45 = vmax.f32 %v4808_v32, %v4809_v1  ;;  %v4817_v6 = vmax.f32 %v4815_v29, %v4816_v5  ;;  %v4823_v33 = vrot.slane %v4822_v55, 2 }
 0x5b3   : > { %v4753_v47 = vrot.slane %v4752_v8, 2  ;;  %v4760_v57 = vrot.slane %v4759_v19, 2  ;;  %v4766_v23 = vmax.f32 %v4764_v40, %v4765_v21  ;;  %v4748_v43 = vrot.slane %v4747_v49, 1 }
 0x5b4   : > { %v4811_v59 = vrot.slane %v4810_v45, 1  ;;  %v4818_v11 = vrot.slane %v4817_v6, 1  ;;  %v4824_v56 = vmax.f32 %v4822_v55, %v4823_v33  ;;  %v4805_v46 = vmax.f32 %v4803_v48, %v4804_v36 }
 0x5b5   : > { %v4754_v7 = vmax.f32 %v4752_v8, %v4753_v47  ;;  %v4761_v41 = vmax.f32 %v4759_v19, %v4760_v57  ;;  %v4767_v42 = vrot.slane %v4766_v23, 2  ;;  %v4632_v61 = vrot.slane %v8929_v12, %v9437_v2 }
 0x5b6   : > { %v4812_v15 = vmax.f32 %v4810_v45, %v4811_v59  ;;  %v4819_v16 = vmax.f32 %v4817_v6, %v4818_v11  ;;  %v4825_v22 = vrot.slane %v4824_v56, 1  ;;  %v4639_v37 = vrot.slane %v4625_v62, %v9437_v2 }
 0x5b7   : > { %v4755_v18 = vrot.slane %v4754_v7, 1  ;;  %v4762_v4 = vrot.slane %v4761_v41, 1  ;;  %v4768_v27 = vmax.f32 %v4766_v23, %v4767_v42  ;;  %v4640_v10 = vcombine.high %v4632_v61, %v4632_v61 }
 0x5b8   : > { %v5005_v20 = vsel %vm3461_vm11, %v4812_v15, %v4805_v46  ;;  %v4827_v63 = vsel %vm4742_vm8, %v4632_v61, -inf  ;;  %v8965_v34 = vmax.f32 %v4824_v56, %v4825_v22  ;;  %v4749_v13 = vmax.f32 %v4747_v49, %v4748_v43 }
 0x5b9   : > { %v8968_v51 = vsel %vm3463_vm12, %v4819_v16, %v5005_v20  ;;  %v4641_v38 = vcombine.high %v4639_v37, %v4639_v37  ;;  %v4828_v31 = vrot.slane %v4827_v63, 4  ;;  %v4834_v12 = vsel %vm4742_vm8, %v4640_v10, -inf }
 0x5ba   : > { %v4841_v53 = vsel %vm4742_vm8, %v4639_v37, -inf  ;;  %v4756_v3 = vmax.f32 %v4754_v7, %v4755_v18  ;;  %v4763_v54 = vmax.f32 %v4761_v41, %v4762_v4  ;;  %v4835_v58 = vrot.slane %v4834_v12, 4 }
 0x5bb   : > { %v4842_v25 = vrot.slane %v4841_v53, 4  ;;  %v4769_v39 = vrot.slane %v4768_v27, 1  ;;  %v4829_v32 = vmax.f32 %v4827_v63, %v4828_v31  ;;  %v4848_v29 = vsel %vm4742_vm8, %v4641_v38, -inf }
 0x5bc   : > { %v4591_v30 = vcombine.high %v8932_v26, %v8932_v26  ;;  %v4836_v44 = vmax.f32 %v4834_v12, %v4835_v58  ;;  %v4849_v9 = vrot.slane %v4848_v29, 4  ;;  %v4598_v40 = vrot.slane %v8932_v26, %v9437_v2 }
 0x5bd   : > { %v4843_v17 = vmax.f32 %v4841_v53, %v4842_v25  ;;  %v4830_v48 = vrot.slane %v4829_v32, 2  ;;  %v4564_v5 = vmax.f32 %v8943_v50, %v8945_v0  ;;  %v8981_v55 = vmax.f32 %v8948_v28, %v4543_v60 }
 0x5be   : > { %v4605_v1 = vrot.slane %v4591_v30, %v9437_v2  ;;  %v4837_v49 = vrot.slane %v4836_v44, 2  ;;  %v4850_v19 = vmax.f32 %v4848_v29, %v4849_v9  ;;  %v4606_v21 = vcombine.high %v4598_v40, %v4598_v40 }
 0x5bf   : > { %v4844_v8 = vrot.slane %v4843_v17, 2  ;;  %v4831_v36 = vmax.f32 %v4829_v32, %v4830_v48  ;;  %v4771_v6 = vsel %vm4742_vm8, %v4598_v40, -inf  ;;  %v4999_v62 = vsel %vm3461_vm11, %v4756_v3, %v4749_v13 }
 0x5c0   : > { %v4607_v45 = vcombine.high %v4605_v1, %v4605_v1  ;;  %v4785_v33 = vsel %vm4742_vm8, %v4605_v1, -inf  ;;  %v4838_v26 = vmax.f32 %v4836_v44, %v4837_v49  ;;  %v4851_v57 = vrot.slane %v4850_v19, 2 }
 0x5c1   : > { %v4845_v47 = vmax.f32 %v4843_v17, %v4844_v8  ;;  %v4772_v23 = vrot.slane %v4771_v6, 4  ;;  %v4778_v50 = vsel %vm4742_vm8, %v4606_v21, -inf  ;;  %v4786_v0 = vrot.slane %v4785_v33, 4 }
 0x5c2   : > { %v4792_v28 = vsel %vm4742_vm8, %v4607_v45, -inf  ;;  %v4832_v60 = vrot.slane %v4831_v36, 1  ;;  %v4839_v59 = vrot.slane %v4838_v26, 1  ;;  %v4852_v11 = vmax.f32 %v4850_v19, %v4851_v57 }
 0x5c3   : > { %v4773_v56 = vmax.f32 %v4771_v6, %v4772_v23  ;;  %v4846_v43 = vrot.slane %v4845_v47, 1  ;;  %v4779_v46 = vrot.slane %v4778_v50, 4  ;;  %v4787_v7 = vmax.f32 %v4785_v33, %v4786_v0 }
 0x5c4   : > { %v4793_v41 = vrot.slane %v4792_v28, 4  ;;  %v8988_v42 = vmax.f32 %v4768_v27, %v4769_v39  ;;  %v8991_v15 = vsel %vm3463_vm12, %v4763_v54, %v4999_v62  ;;  %v4840_v16 = vmax.f32 %v4838_v26, %v4839_v59 }
 0x5c5   : > { %v4774_v22 = vrot.slane %v4773_v56, 2  ;;  %v4780_v61 = vmax.f32 %v4778_v50, %v4779_v46  ;;  %v4788_v18 = vrot.slane %v4787_v7, 2  ;;  %v4676_v37 = vcombine.high %v4564_v5, %v4564_v5 }
 0x5c6   : > { %v4794_v4 = vmax.f32 %v4792_v28, %v4793_v41  ;;  %v4833_v20 = vmax.f32 %v4831_v36, %v4832_v60  ;;  %v4853_v10 = vrot.slane %v4852_v11, 1  ;;  %v4683_v13 = vrot.slane %v4564_v5, %v9437_v2 }
 0x5c7   : > { %v4775_v63 = vmax.f32 %v4773_v56, %v4774_v22  ;;  %v4847_v38 = vmax.f32 %v4845_v47, %v4846_v43  ;;  %v4781_v31 = vrot.slane %v4780_v61, 2  ;;  %v4789_v12 = vmax.f32 %v4787_v7, %v4788_v18 }
 0x5c8   : > { %v4795_v53 = vrot.slane %v4794_v4, 2  ;;  %v5008_v27 = vsel %vm3461_vm11, %v4840_v16, %v4833_v20  ;;  %v4690_v3 = vrot.slane %v4676_v37, %v9437_v2  ;;  %v4691_v54 = vcombine.high %v4683_v13, %v4683_v13 }
 0x5c9   : > { %v4911_v58 = vsel %vm4742_vm8, %v4683_v13, -inf  ;;  %v4776_v25 = vrot.slane %v4775_v63, 1  ;;  %v4782_v39 = vmax.f32 %v4780_v61, %v4781_v31  ;;  %v4790_v32 = vrot.slane %v4789_v12, 1 }
 0x5ca   : > { %v4912_v29 = vrot.slane %v4911_v58, 4  ;;  %v8997_v30 = vmax.f32 %v4852_v11, %v4853_v10  ;;  %v4692_v44 = vcombine.high %v4690_v3, %v4690_v3  ;;  %v4918_v17 = vsel %vm4742_vm8, %v4691_v54, -inf }
 0x5cb   : > { %v4925_v9 = vsel %vm4742_vm8, %v4690_v3, -inf  ;;  %v9002_v40 = vsel %vm3463_vm12, %v4847_v38, %v5008_v27  ;;  %v4783_v48 = vrot.slane %v4782_v39, 1  ;;  %v4796_v1 = vmax.f32 %v4794_v4, %v4795_v53 }
 0x5cc   : > { %v4913_v5 = vmax.f32 %v4911_v58, %v4912_v29  ;;  %v4919_v49 = vrot.slane %v4918_v17, 4  ;;  %v4926_v8 = vrot.slane %v4925_v9, 4  ;;  %v4932_v19 = vsel %vm4742_vm8, %v4692_v44, -inf }
 0x5cd   : > { %v4642_v21 = vcombine.high %v8981_v55, %v8981_v55  ;;  %v4777_v36 = vmax.f32 %v4775_v63, %v4776_v25  ;;  %v4791_v45 = vmax.f32 %v4789_v12, %v4790_v32  ;;  %v4933_v33 = vrot.slane %v4932_v19, 4 }
 0x5ce   : > { %v4914_v6 = vrot.slane %v4913_v5, 2  ;;  %v4920_v26 = vmax.f32 %v4918_v17, %v4919_v49  ;;  %v4927_v47 = vmax.f32 %v4925_v9, %v4926_v8  ;;  %v4649_v57 = vrot.slane %v8981_v55, %v9437_v2 }
 0x5cf   : > { %v4656_v23 = vrot.slane %v4642_v21, %v9437_v2  ;;  %v4784_v62 = vmax.f32 %v4782_v39, %v4783_v48  ;;  %v4934_v0 = vmax.f32 %v4932_v19, %v4933_v33  ;;  %v4565_v28 = vmax.f32 %v8950_v35, %v8952_v52 }
 0x5d0   : > { %v4915_v50 = vmax.f32 %v4913_v5, %v4914_v6  ;;  %v4797_v60 = vrot.slane %v4796_v1, 1  ;;  %v4921_v59 = vrot.slane %v4920_v26, 2  ;;  %v4928_v11 = vrot.slane %v4927_v47, 2 }
 0x5d1   : > { %v4657_v56 = vcombine.high %v4649_v57, %v4649_v57  ;;  %v4935_v46 = vrot.slane %v4934_v0, 2  ;;  %v4658_v7 = vcombine.high %v4656_v23, %v4656_v23  ;;  %v4855_v41 = vsel %vm4742_vm8, %v4649_v57, -inf }
 0x5d2   : > { %v4916_v43 = vrot.slane %v4915_v50, 1  ;;  %v4922_v16 = vmax.f32 %v4920_v26, %v4921_v59  ;;  %v4929_v22 = vmax.f32 %v4927_v47, %v4928_v11  ;;  %v4856_v55 = vrot.slane %v4855_v41, 4 }
 0x5d3   : > { %v4862_v61 = vsel %vm4742_vm8, %v4657_v56, -inf  ;;  %v5002_v18 = vsel %vm3461_vm11, %v4784_v62, %v4777_v36  ;;  %v4936_v4 = vmax.f32 %v4934_v0, %v4935_v46  ;;  %v4869_v35 = vsel %vm4742_vm8, %v4656_v23, -inf }
 0x5d4   : > { %v4863_v37 = vrot.slane %v4862_v61, 4  ;;  %v9016_v52 = vmax.f32 %v4796_v1, %v4797_v60  ;;  %v4923_v20 = vrot.slane %v4922_v16, 1  ;;  %v4857_v10 = vmax.f32 %v4855_v41, %v4856_v55 }
 0x5d5   : > { %v4870_v63 = vrot.slane %v4869_v35, 4  ;;  %v4930_v13 = vrot.slane %v4929_v22, 1  ;;  %v4876_v31 = vsel %vm4742_vm8, %v4658_v7, -inf  ;;  %v4693_v12 = vcombine.high %v4565_v28, %v4565_v28 }
 0x5d6   : > { %v4864_v38 = vmax.f32 %v4862_v61, %v4863_v37  ;;  %v9020_v53 = vsel %vm3463_vm12, %v4791_v45, %v5002_v18  ;;  %v4917_v27 = vmax.f32 %v4915_v50, %v4916_v43  ;;  %v4858_v3 = vrot.slane %v4857_v10, 2 }
 0x5d7   : > { %v4871_v54 = vmax.f32 %v4869_v35, %v4870_v63  ;;  %v4937_v58 = vrot.slane %v4936_v4, 1  ;;  %v4877_v39 = vrot.slane %v4876_v31, 4  ;;  %v4700_v32 = vrot.slane %v4565_v28, %v9437_v2 }
 0x5d8   : > { %v4865_v25 = vrot.slane %v4864_v38, 2  ;;  %v4924_v29 = vmax.f32 %v4922_v16, %v4923_v20  ;;  %v4859_v44 = vmax.f32 %v4857_v10, %v4858_v3  ;;  %v4707_v9 = vrot.slane %v4693_v12, %v9437_v2 }
 0x5d9   : > { %v4872_v17 = vrot.slane %v4871_v54, 2  ;;  %v4931_v48 = vmax.f32 %v4929_v22, %v4930_v13  ;;  %v4878_v5 = vmax.f32 %v4876_v31, %v4877_v39  ;;  %v4708_v49 = vcombine.high %v4700_v32, %v4700_v32 }
 0x5da   : > { %v4866_v1 = vmax.f32 %v4864_v38, %v4865_v25  ;;  %v4860_v8 = vrot.slane %v4859_v44, 1  ;;  %v4709_v21 = vcombine.high %v4707_v9, %v4707_v9  ;;  %v4939_v36 = vsel %vm4742_vm8, %v4700_v32, -inf }
 0x5db   : > { %v4873_v19 = vmax.f32 %v4871_v54, %v4872_v17  ;;  %v4879_v6 = vrot.slane %v4878_v5, 2  ;;  %v4940_v33 = vrot.slane %v4939_v36, 4  ;;  %v4946_v26 = vsel %vm4742_vm8, %v4708_v49, -inf }
 0x5dc   : > { %v4867_v45 = vrot.slane %v4866_v1, 1  ;;  %v5017_v47 = vsel %vm3461_vm11, %v4924_v29, %v4917_v27  ;;  %v4947_v23 = vrot.slane %v4946_v26, 4  ;;  %v4953_v62 = vsel %vm4742_vm8, %v4707_v9, -inf }
 0x5dd   : > { %v4874_v57 = vrot.slane %v4873_v19, 1  ;;  %v4938_v50 = vmax.f32 %v4936_v4, %v4937_v58  ;;  %v4880_v0 = vmax.f32 %v4878_v5, %v4879_v6  ;;  %v4941_v28 = vmax.f32 %v4939_v36, %v4940_v33 }
 0x5de   : > { %v4954_v60 = vrot.slane %v4953_v62, 4  ;;  %v4868_v59 = vmax.f32 %v4866_v1, %v4867_v45  ;;  %v4948_v11 = vmax.f32 %v4946_v26, %v4947_v23  ;;  %v4960_v56 = vsel %vm4742_vm8, %v4709_v21, -inf }
 0x5df   : > { %v4563_v43 = vmax.f32 %v8954_v14, %v8956_v24  ;;  %v5018_v46 = vsel %vm3463_vm12, %v4931_v48, %v5017_v47  ;;  %v4861_v7 = vmax.f32 %v4859_v44, %v4860_v8  ;;  %v4942_v41 = vrot.slane %v4941_v28, 2 }
 0x5e0   : > { %v4955_v16 = vmax.f32 %v4953_v62, %v4954_v60  ;;  %v4875_v22 = vmax.f32 %v4873_v19, %v4874_v57  ;;  %v4949_v55 = vrot.slane %v4948_v11, 2  ;;  %v4961_v61 = vrot.slane %v4960_v56, 4 }
 0x5e1   : > { %v4659_v18 = vcombine.high %v4563_v43, %v4563_v43  ;;  %v4881_v4 = vrot.slane %v4880_v0, 1  ;;  %v4943_v37 = vmax.f32 %v4941_v28, %v4942_v41  ;;  %v4666_v20 = vrot.slane %v4563_v43, %v9437_v2 }
 0x5e2   : > { %v4956_v35 = vrot.slane %v4955_v16, 2  ;;  %v5011_v10 = vsel %vm3461_vm11, %v4868_v59, %v4861_v7  ;;  %v4950_v63 = vmax.f32 %v4948_v11, %v4949_v55  ;;  %v4962_v13 = vmax.f32 %v4960_v56, %v4961_v61 }
 0x5e3   : > { %v4673_v14 = vrot.slane %v4659_v18, %v9437_v2  ;;  %v4944_v24 = vrot.slane %v4943_v37, 1  ;;  %v4674_v31 = vcombine.high %v4666_v20, %v4666_v20  ;;  %v4883_v12 = vsel %vm4742_vm8, %v4666_v20, -inf }
 0x5e4   : > { %v4957_v38 = vmax.f32 %v4955_v16, %v4956_v35  ;;  %v4951_v27 = vrot.slane %v4950_v63, 1  ;;  %v4963_v3 = vrot.slane %v4962_v13, 2  ;;  %v4884_v58 = vrot.slane %v4883_v12, 4 }
 0x5e5   : > { %v4675_v54 = vcombine.high %v4673_v14, %v4673_v14  ;;  %v5012_v25 = vsel %vm3463_vm12, %v4875_v22, %v5011_v10  ;;  %v4890_v32 = vsel %vm4742_vm8, %v4674_v31, -inf  ;;  %v4897_v29 = vsel %vm4742_vm8, %v4673_v14, -inf }
 0x5e6   : > { %v4958_v39 = vrot.slane %v4957_v38, 1  ;;  %v4882_v44 = vmax.f32 %v4880_v0, %v4881_v4  ;;  %v4964_v17 = vmax.f32 %v4962_v13, %v4963_v3  ;;  %v4885_v9 = vmax.f32 %v4883_v12, %v4884_v58  ;;  %v9438_v12 = vld [vmem:[#allocation10_spill] sm:$0xff]  ;;  %v6444_v58 = vld [vmem:[%s9196_s9 + $0x78] sm:$0xff]  }
 0x5e7   : > { %v4891_v48 = vrot.slane %v4890_v32, 4  ;;  %v4945_v1 = vmax.f32 %v4943_v37, %v4944_v24  ;;  %v4898_v5 = vrot.slane %v4897_v29, 4  ;;  %v4904_v49 = vsel %vm4742_vm8, %v4675_v54, -inf  ;;  %5837 = vmatprep.subr.bf16.mxu1 %v6444_v58 }
 0x5e8   : > { %v5001_v8 = vsel %vm3465_vm13, %v8988_v42, %v8991_v15  ;;  %v4952_v19 = vmax.f32 %v4950_v63, %v4951_v27  ;;  %v4959_v21 = vmax.f32 %v4957_v38, %v4958_v39  ;;  %v4886_v36 = vrot.slane %v4885_v9, 2 }
 0x5e9   : > { %v4892_v45 = vmax.f32 %v4890_v32, %v4891_v48  ;;  %v4899_v6 = vmax.f32 %v4897_v29, %v4898_v5  ;;  %v4905_v33 = vrot.slane %v4904_v49, 4  ;;  %v5004_v26 = vsel %vm3465_vm13, %v9016_v52, %v9020_v53 }
 0x5ea   : > { %v5007_v47 = vsel %vm3465_vm13, %v8965_v34, %v8968_v51  ;;  %v4965_v57 = vrot.slane %v4964_v17, 1  ;;  %v4887_v23 = vmax.f32 %v4885_v9, %v4886_v36  ;;  %v5010_v42 = vsel %vm3465_vm13, %v8997_v30, %v9002_v40 }
 0x5eb   : > { %v4893_v62 = vrot.slane %v4892_v45, 2  ;;  %v4900_v15 = vrot.slane %v4899_v6, 2  ;;  %v4906_v0 = vmax.f32 %v4904_v49, %v4905_v33  ;;  %v5013_v28 = vsel %vm3465_vm13, %v4882_v44, %v5012_v25  ;;  %v6445_v25 = vld [vmem:[%s9196_s9 + $0x38] sm:$0xff]   ;;  %v6446_v44 = vld [vmem:[%s9198_s11] sm:$0xff]  }
 0x5ec   : > { %v5019_v60 = vsel %vm3465_vm13, %v4938_v50, %v5018_v46  ;;  %v5020_v59 = vsel %vm3461_vm11, %v4952_v19, %v4945_v1  ;;  %v4888_v52 = vrot.slane %v4887_v23, 1  ;;  %v5031_v11 = vcombine.low %v5001_v8, %v5007_v47  ;;  %5838 = vmatpush3.bf16.msra.mxu1 %v6445_v25  ;;  %v6447_v1 = vld [vmem:[%s9198_s11 + $0x8] sm:$0xff]  }
 0x5ed   : > { %v4894_v53 = vmax.f32 %v4892_v45, %v4893_v62  ;;  %v4901_v56 = vmax.f32 %v4899_v6, %v4900_v15  ;;  %v4907_v34 = vrot.slane %v4906_v0, 2  ;;  %v5039_v51 = vcombine.low %v5004_v26, %v5010_v42  ;;  %v6449_v62 = vld [vmem:[%s9198_s11 + $0x18] sm:$0xff]   ;;  %v6454_v42 = vld [vmem:[%s9200_s13] sm:$0xff]  }
 0x5ee   : > { %v5047_v43 = vcombine.low %v5013_v28, %v5019_v60  ;;  %v4966_v7 = vmax.f32 %v4964_v17, %v4965_v57  ;;  %v6670_v16 = vmov 1934713408   ;;  %v5038_v55 = vrot.slane %v5031_v11, %v9437_v2  ;;  %v6450_v15 = vld [vmem:[%s9198_s11 + $0x20] sm:$0xff]   ;;  %v6452_v28 = vld [vmem:[%s9198_s11 + $0x30] sm:$0xff]   ;;  %v6453_v60 = vld [vmem:[%s9198_s11 + $0x38] ss:$0 sps:$4 sm:$0xff]  }
 0x5ef   : > { %v4895_v41 = vrot.slane %v4894_v53, 1  ;;  %v5066_v22 = vunpack.c.l.s4 %v6670_v16  ;;  %v4902_v30 = vrot.slane %v4901_v56, 1  ;;  %v4908_v40 = vmax.f32 %v4906_v0, %v4907_v34  ;;  %v6451_v0 = vld [vmem:[%s9198_s11 + $0x28] sm:$0xff]  }
 0x5f0   : > { %v5046_v61 = vrot.slane %v5039_v51, %v9437_v2  ;;  %v5021_v50 = vsel %vm3463_vm12, %v4959_v21, %v5020_v59  ;;  %v4889_v46 = vmax.f32 %v4887_v23, %v4888_v52  ;;  %v5054_v3 = vrot.slane %v5047_v43, %v9437_v2  ;;  %v6448_v23 = vld [vmem:[%s9198_s11 + $0x10] sm:$0xff]  }
 0x5f1   : > { %v4896_v18 = vmax.f32 %v4894_v53, %v4895_v41  ;;  %v4903_v4 = vmax.f32 %v4901_v56, %v4902_v30  ;;  %v4909_v37 = vrot.slane %v4908_v40, 1  ;;  %v5022_v14 = vsel %vm3465_vm13, %v4966_v7, %v5021_v50  ;;  %v5708_v53 = vld [vmem:[%s9197_s10] ss:$0 sm:$0xff] }
 0x5f2   : > { %v5063_v35 = vcombine.low %v5038_v55, %v5046_v61  ;;  %v5064_v20 = vcombine.high %v5038_v55, %v5046_v61  ;;  %v5067_v24 = vunpack.c.0.s8 %v5066_v22  ;;  %v6671_v48 = vmov 0.0   ;;  %v6456_v55 = vld [vmem:[%s9200_s13 + $0x10] sm:$0xff]   ;;  %v6457_v61 = vld [vmem:[%s9200_s13 + $0x18] sm:$0xff]   ;;  %v6458_v50 = vld [vmem:[%s9200_s13 + $0x20] sm:$0xff]  }
 0x5f3   : > { %v5014_v10 = vsel %vm3461_vm11, %v4896_v18, %v4889_v46  ;;  %v4910_v63 = vmax.f32 %v4908_v40, %v4909_v37  ;;  %5931 = vmatprep.subr.bf16.mxu0 %v6671_v48  ;;  %5951 = vmatprep.subr.bf16.mxu1 %v6671_v48  ;;  %v5364_v59 = vsel %vm950_vm3, %v6453_v60, 0  ;;  %vm5359_vm11 = vcmask 982016   ;;  %v6455_v40 = vld [vmem:[%s9200_s13 + $0x8] sm:$0xff]  }
 0x5f4   : > { %v5015_v13 = vsel %vm3463_vm12, %v4903_v4, %v5014_v10  ;;  %v5070_v27 = vsub.s32 %v5067_v24, %v9438_v12  ;;  %5932 = vmatpush3.bf16.msra.mxu0 %v6446_v44  ;;  %5947 = vmatprep.mubr.msk.bf16.mxu0 %vm6673_vm10, %v6671_v48  ;;  %v6459_v46 = vld [vmem:[%s9200_s13 + $0x28] ss:$0 sps:$4 sm:$0x33]   ;;  %vm5465_vm3 = vcmask 1041408   ;;  %v5725_v4 = vld [vmem:[%s9199_s12] ss:$0 sm:$0xff] }
 0x5f5   : > { %v5016_v38 = vsel %vm3465_vm13, %v4910_v63, %v5015_v13  ;;  %5933 = vmatprep.subr.bf16.mxu0 %v6671_v48  ;;  %v5467_v18 = vsel %vm5465_vm3, %v6459_v46, 0  ;;  %v5735_v12 = vld [vmem:[%s9201_s14] ss:$0 sm:$0xff] }
 0x5f6   : > { %v5055_v31 = vcombine.low %v5016_v38, %v5022_v14  ;;  %v5071_v29 = vrot.slane %v5063_v35, %v5070_v27  ;;  %v5078_v17 = vrot.slane %v5064_v20, %v5070_v27 }
 0x5f8   : > { %v5062_v54 = vrot.slane %v5055_v31, %v9437_v2  ;;  %5934 = vmatpush3.bf16.msra.mxu0 %v6447_v1 }
 0x5f9   : > { %5935 = vmatprep.subr.bf16.mxu0 %v6671_v48 }
 0x5fa   : > { %v5079_v39 = vcombine.low %v5054_v3, %v5062_v54  ;;  %v5080_v32 = vcombine.high %v5054_v3, %v5062_v54 }
 0x5fc   : > { %v5087_v9 = vrot.slane %v5079_v39, %v5070_v27  ;;  %v5094_v2 = vrot.slane %v5080_v32, %v5070_v27  ;;  %5936 = vmatpush3.bf16.msra.mxu0 %v6448_v23 }
 0x5fd   : > { %5937 = vmatprep.subr.bf16.mxu0 %v6671_v48 }
 0x5fe   : > { %v5096_v5 = vcombine.high %v5071_v29, %v5087_v9  ;;  %v5098_v49 = vcombine.high %v5078_v17, %v5094_v2  ;;  %v5095_v8 = vcombine.low %v5071_v29, %v5087_v9  ;;  %v5097_v19 = vcombine.low %v5078_v17, %v5094_v2 }
 0x600   : > { %v6341_v21 = vpack.i.bf16 %v5096_v5, %v5098_v49  ;;  %5938 = vmatpush3.bf16.msra.mxu0 %v6449_v62 }
 0x601   : > { %5939 = vmatprep.subr.bf16.mxu0 %v6671_v48 }
 0x602   : > { %6342 = vrot.lane.b32.xlu0 %v6341_v21, %s6672_s30  ;;  %s5744_s30 = sshll.u32 %s6776_s22, 7  ;;  %s6596_s22 = scalar_lea.vmem %s9147_s18, 128 }
 0x603   : > { %s9145_s16 = scalar_lea.hbm %s9202_s15, %s5744_s30  ;;  %p6597_p11 = scmp.ne.s32.totalorder %s9147_s18, %s6596_s22 }
 0x604   : > { %5940 = vmatpush3.bf16.msra.mxu0 %v6450_v15  ;;  %p6604_p1 = scmp.lt.s32.totalorder %s6602_s29, %s6596_s22 }
 0x605   : > { %5941 = vmatprep.subr.bf16.mxu0 %v6671_v48  ;;  %p6598_p12 = pnand %p6597_p11, %p6793_p5 }
 0x606   : > { %p6605_p2 = por %p6604_p1, %p6603_p0 }
 0x607   : > { %p6599_p13 = pneg %p6598_p12 }
 0x608   : > { %5942 = vmatpush3.bf16.msra.mxu0 %v6451_v0 }
 0x609   : > { %5943 = vmatprep.subr.bf16.mxu0 %v6671_v48  ;;  %p6606_p3 = pnand %p6605_p2, %p6599_p13 }
 0x60c   : > { %5944 = vmatpush3.bf16.msra.mxu0 %v6452_v28 }
 0x60d   : > { %5945 = vmatprep.subr.bf16.mxu0 %v6671_v48 }
 0x610   : > { %5946 = vmatpush3.bf16.msra.mxu0 %v5364_v59 }
 0x674   : > { %v6343_v36 = vpop.permute.xlu0 %6342 }
 0x675   : > { %v6345_v45 = vunpack.i.h.bf16 %v6343_v36  ;;  %v6344_v6 = vunpack.i.l.bf16 %v6343_v36 }
 0x677   : > { %v5108_v33 = vsel %vm5107_vm9, %v5095_v8, %v6345_v45  ;;  %v5109_v26 = vsel %vm5107_vm9, %v5097_v19, %v6344_v6 }
 0x678   : > { %v5110_v47 = vpack.c.bf16 %v5108_v33, %v5108_v33  ;;  %v5111_v57 = vpack.c.bf16 %v5109_v26, %v5109_v26 }
 0x67a   : > { %5279 = vmatprep.mubr.bf16.mxu1 %v5111_v57 }
 0x67b   : > { %5280 = vmatmul.mubr.bf16.vlgmr.msra.gmra.mrb[80].mxu1 %v5110_v47 }
 0x67c   : > { %5963 = vmatprep.mubr.msk.bf16.mxu1 %vm6673_vm10, %v6671_v48  ;;  %5952 = vmatpush3.bf16.msra.mxu1 %v6454_v42 }
 0x67d   : > { %5953 = vmatprep.subr.bf16.mxu1 %v6671_v48 }
 0x680   : > { %5954 = vmatpush3.bf16.msra.mxu1 %v6455_v40 }
 0x681   : > { %5955 = vmatprep.subr.bf16.mxu1 %v6671_v48 }
 0x684   : > { %5956 = vmatpush3.bf16.msra.mxu1 %v6456_v55 }
 0x685   : > { %5957 = vmatprep.subr.bf16.mxu1 %v6671_v48 }
 0x688   : > { %5958 = vmatpush3.bf16.msra.mxu1 %v6457_v61 }
 0x689   : > { %5959 = vmatprep.subr.bf16.mxu1 %v6671_v48 }
 0x68c   : > { %5960 = vmatpush3.bf16.msra.mxu1 %v6458_v50 }
 0x68d   : > { %5961 = vmatprep.subr.bf16.mxu1 %v6671_v48 }
 0x690   : > { %5962 = vmatpush3.bf16.msra.mxu1 %v5467_v18 }
 0x74e   : > { %v5839_v52 = vpop.f32.mrb[80].mxu1 }
 0x74f   : > { %v5840_v11 = vpop.f32.mrb[81].mxu1 }
 0x750   : > { %v5841_v56 = vadd.f32 %v5840_v11, %v5839_v52  ;;  %v5842_v34 = vpop.f32.mrb[82].mxu1 }
 0x751   : > { %v5843_v51 = vpop.f32.mrb[83].mxu1 }
 0x752   : > { %v5282_v43 = vadd.f32 %v5841_v56, %v5708_v53 }
 0x754   : > { %v5287_v7 = vmul.f32 0.5, %v5282_v43 }
 0x756   : > { %6572 = vtanh.f32 %v5287_v7 }
 0x760   : > { %v6573_v41 = vpop.eup %6572 }
 0x761   : > { %v5289_v16 = vmul.f32 0.5, %v6573_v41 }
 0x763   : > { %v5290_v22 = vadd.f32 0.5, %v5289_v16 }
 0x765   : > { %v5291_v30 = vpack.c.bf16 %v5290_v22, %v5290_v22 }
 0x767   : > { %5948 = vmatmul.mubr.msk.bf16.vlgmr.msra.gmra.mrb[104].mxu0 %vm5359_vm11, %v5291_v30 }
 0x83a   : > { %v5400_v37 = vpop.f32.mrb[104].mxu0 }
 0x83b   : > { %v5401_v35 = vadd.f32 %v5725_v4, %v5400_v37  ;;  %v5949_v20 = vpop.f32.mrb[105].mxu0 }
 0x83c   : > { %v5403_v10 = vpop.f32.mrb[106].mxu0 }
 0x83d   : > { %v5406_v63 = vmul.f32 0.5, %v5401_v35  ;;  %v5950_v13 = vpop.f32.mrb[107].mxu0 }
 0x83f   : > { %6574 = vtanh.f32 %v5406_v63 }
 0x849   : > { %v6575_v14 = vpop.eup %6574 }
 0x84a   : > { %v5408_v24 = vmul.f32 0.5, %v6575_v14 }
 0x84c   : > { %v5409_v38 = vadd.f32 0.5, %v5408_v24 }
 0x84e   : > { %v5410_v31 = vpack.c.bf16 %v5409_v38, %v5409_v38 }
 0x850   : > { %5964 = vmatmul.mubr.msk.bf16.vlgmr.msra.gmra.mrb[84].mxu1 %vm1129_vm6, %v5410_v31 }
 0x923   : > { %v5503_v27 = vpop.f32.mrb[84].mxu1 }
 0x924   : > { %v5504_v3 = vadd.f32 %v5735_v12, %v5503_v27  ;;  %v5965_v54 = vpop.f32.mrb[85].mxu1 }
 0x925   : > { %v5506_v58 = vpop.f32.mrb[86].mxu1 }
 0x926   : > { %5509 = vst [vmem:[%s490_s26] sm:$0xff] %v5504_v3  ;;  %v5966_v25 = vpop.f32.mrb[87].mxu1 }
 0x927   : > { %6609 = shalt.err (!%p6606_p3)
}
 0x928   : > { %s6610_s23 = scalar_lea.hbm %s9145_s16, 128  ;;  %s6614_s20 = scalar_lea.hbm %s9202_s15, 256 }
 0x929   : > { %p6611_p4 = scmp.ne.s32.totalorder %s9145_s16, %s6610_s23  ;;  %p6615_p9 = scmp.lt.u32.totalorder %s9145_s16, %s9202_s15 }
 0x92a   : > { %p6616_p10 = scmp.lt.u32.totalorder %s6614_s20, %s6610_s23  ;;  %p6618_p12 = scmp.lt.u32.totalorder %s6610_s23, %s9145_s16 }
 0x92b   : > { %p6612_p7 = pnand %p6611_p4, %p6793_p5 }
 0x92c   : > { %p6617_p11 = por %p6616_p10, %p6615_p9 }
 0x92d   : > { %p6613_p8 = pneg %p6612_p7 }
 0x92e   : > { %p6619_p13 = por %p6618_p12, %p6617_p11 }
 0x930   : > { %p6620_p0 = pnand %p6619_p13, %p6613_p8 }
 0x932   : > { %6623 = shalt.err (!%p6620_p0)
}
 0x933   : > { %5968 = dma.vmem_to_hbm [thread:$0]  (%p6793_p5), %s9147_s18, 128, %s9145_s16, %s5511_s17  }
 0x934 PF: > { %s9439_s22 = sld [smem:[#allocation5_spill]]  ;;  %p5974_p1 = scmp.ge.s32.totalorder %s6658_s21, 2 }
 0x936   : > { %p5971_p2 = pnand %p5974_p1, %p6797_p6 }
 0x93a   : > { %s5536_s29 = sand.u32 1, %s9439_s22  }
 0x93b   : > { %s5537_s30 = scalar_lea.sflag [#allocation3], %s5536_s29 }
 0x93c   : > { %6641 = dma.done.wait (!%p5971_p2), %s5537_s30, 128  }
 0x93d   : > { %6643 = vsyncadd (!%p5971_p2), %s5537_s30, 4294967168  ;;  %s9441_s21 = sld [smem:[#allocation7_spill]]  ;;  %s9442_s23 = sld [smem:[#allocation6_spill]] }
 0x93e   : > { %s9443_s20 = sld [smem:[#allocation8_spill]]  ;;  %s9444_s18 = smov %s6650_s19 }
 0x943   : > { %p25_p3 = scmp.ge.s32.totalorder %s9441_s21, 4   ;;  %s9445_s19 = smov %s9442_s23 }
 0x945   :  { %27 = sbr.rel (!%p25_p3) target bundleno = 3 (0x3), region = 115 }
 0x94c   :  { %5542 = vsyncpa [#allocation3], 1 }
 0x94d   :  { %5544 = vsyncpa [#allocation3 + $0x1], 1 }

</bundles_post_ra>
